<compile_context>
chip_gen: v7x
topology: tpu7x:2x2x1
jax: 0.10.0
libtpu: 0.0.40
codegen_flags: <defaults>
</compile_context>

<pallas_src>
import jax
import jax.numpy as jnp
from jax.experimental import pallas as pl
from jax.experimental.pallas import tpu as pltpu


_VMEM_LIMIT = 64 * 1024 * 1024   # fits v7x's 64 MiB physical VMEM; plenty on v5e/v6e


def _pick_strip(H, W):
    """Largest divisor R of H with strip-matmul M = R*W <= ~4096 (and >= 2 strips when
    possible) so the per-strip pad buffer + f32 accumulator stay small on all chips."""
    cap = max(1, 4096 // max(W, 1))
    cand = [r for r in range(1, H) if H % r == 0 and r <= cap]
    return max(cand) if cand else H


# ----------------------------- Pallas kernels ------------------------------

def _conv3x3_acc(xpad_ref, w_ref, b_ref, R, W, Cin, Cout):
    """3x3 conv over the strip pad buffer as 9 tap matmuls (K=Cin each), accumulated in
    f32 — no (M, 9*Cin) im2col scratch.  Per-tap operands are ref-view slices."""
    acc = jnp.zeros((R * W, Cout), jnp.float32) + b_ref[...]      # bias broadcast
    for ky in range(3):
        for kx in range(3):
            t = ky * 3 + kx
            xs = xpad_ref[ky:ky + R, kx:kx + W, :].reshape(R * W, Cin)
            acc = acc + jnp.dot(xs, w_ref[t * Cin:(t + 1) * Cin, :],
                                preferred_element_type=jnp.float32)
    return acc


def _store_out_and_stats(acc, y_ref, s_ref, q_ref, R, W, Cout):
    """Store the raw conv output (bf16) and per-strip BN partials: channel sum and
    CENTERED sum-of-squares (Chan-combinable, avoids E[x^2]-E[x]^2 cancellation)."""
    y_ref[...] = acc.reshape(1, R, W, Cout).astype(y_ref.dtype)
    blk_sum = jnp.sum(acc, axis=0, keepdims=True)                 # (1, Cout)
    blk_mean = blk_sum * (1.0 / (R * W))
    cen = acc - blk_mean
    s_ref[...] = blk_sum.reshape(1, 1, 1, Cout)
    q_ref[...] = jnp.sum(cen * cen, axis=0, keepdims=True).reshape(1, 1, 1, Cout)


def _conv1_kernel(x2_ref, x1_ref, w_ref, b_ref, y_ref, s_ref, q_ref, xpad_ref):
    """Strip (n, s): channel-concat [x2, up(x1)] + 1px zero halo assembled in a
    strip-sized VMEM pad buffer, then conv3x3 + bias + BN1 per-strip partials."""
    _, R, W, Cout = y_ref.shape
    H = x2_ref.shape[1]
    C2 = x2_ref.shape[-1]
    C1 = x1_ref.shape[-1]
    Cin = C2 + C1
    dt = xpad_ref.dtype
    s_idx = pl.program_id(1)
    n_s = pl.num_programs(1)
    row0 = s_idx * R

    # Left/right 1px halo columns: zeroed every step (tiny).  Interior and top/bottom
    # halo rows are fully rewritten below -> no whole-buffer memset needed.
    xpad_ref[:, 0:1, :] = jnp.zeros((R + 2, 1, Cin), dt)
    xpad_ref[:, W + 1:W + 2, :] = jnp.zeros((R + 2, 1, Cin), dt)

    top_m = jnp.where(s_idx > 0, 1.0, 0.0).astype(dt)          # 0 at the image top edge
    bot_m = jnp.where(s_idx < n_s - 1, 1.0, 0.0).astype(dt)    # 0 at the image bottom edge

    def fill(src_ref, c0, c1):
        # interior R rows of this strip
        xpad_ref[1:R + 1, 1:W + 1, c0:c1] = src_ref[0, pl.ds(row0, R), :, :].astype(dt)
        # 1-row top/bottom halo from neighbouring strips (masked to zero at image edges)
        top = src_ref[0, pl.ds(jnp.maximum(row0 - 1, 0), 1), :, :].astype(dt) * top_m
        bot = src_ref[0, pl.ds(jnp.minimum(row0 + R, H - 1), 1), :, :].astype(dt) * bot_m
        xpad_ref[0:1, 1:W + 1, c0:c1] = top
        xpad_ref[R + 1:R + 2, 1:W + 1, c0:c1] = bot

    fill(x2_ref, 0, C2)        # skip connection  -> channels [0, C2)
    fill(x1_ref, C2, Cin)      # upsampled features -> channels [C2, Cin)

    acc = _conv3x3_acc(xpad_ref, w_ref, b_ref, R, W, Cin, Cout)
    _store_out_and_stats(acc, y_ref, s_ref, q_ref, R, W, Cout)


def _conv2_kernel(x_ref, scale_ref, shift_ref, w_ref, b_ref, y_ref, s_ref, q_ref,
                  xpad_ref):
    """Strip (n, s): BN1 (folded scale/shift) + ReLU applied as the pad-fill prologue,
    then conv3x3 + bias + BN2 per-strip partials."""
    _, R, W, Cout = y_ref.shape
    H = x_ref.shape[1]
    Cin = x_ref.shape[-1]
    dt = xpad_ref.dtype
    s_idx = pl.program_id(1)
    n_s = pl.num_programs(1)
    row0 = s_idx * R

    sc = scale_ref[...].reshape(1, 1, Cin)
    sh = shift_ref[...].reshape(1, 1, Cin)

    def act(rows):   # BN1 + ReLU prologue (f32 math, bf16 store)
        return jnp.maximum(rows.astype(jnp.float32) * sc + sh, 0.0).astype(dt)

    xpad_ref[:, 0:1, :] = jnp.zeros((R + 2, 1, Cin), dt)
    xpad_ref[:, W + 1:W + 2, :] = jnp.zeros((R + 2, 1, Cin), dt)

    top_m = jnp.where(s_idx > 0, 1.0, 0.0).astype(dt)
    bot_m = jnp.where(s_idx < n_s - 1, 1.0, 0.0).astype(dt)

    xpad_ref[1:R + 1, 1:W + 1, :] = act(x_ref[0, pl.ds(row0, R), :, :])
    # conv2's zero padding is applied AFTER the activation (torch pads relu(bn1(x))),
    # so the edge mask multiplies the *activated* halo rows.
    top = act(x_ref[0, pl.ds(jnp.maximum(row0 - 1, 0), 1), :, :]) * top_m
    bot = act(x_ref[0, pl.ds(jnp.minimum(row0 + R, H - 1), 1), :, :]) * bot_m
    xpad_ref[0:1, 1:W + 1, :] = top
    xpad_ref[R + 1:R + 2, 1:W + 1, :] = bot

    acc = _conv3x3_acc(xpad_ref, w_ref, b_ref, R, W, Cin, Cout)
    _store_out_and_stats(acc, y_ref, s_ref, q_ref, R, W, Cout)


def _bn_relu_kernel(x_ref, scale_ref, shift_ref, o_ref):
    # x block: (1, Rb, lane) bf16; scale/shift: (1, 1, lane) f32 broadcast over rows.
    o_ref[...] = jnp.maximum(
        x_ref[...].astype(jnp.float32) * scale_ref[...] + shift_ref[...], 0.0)


# ----------------------------- wrappers ------------------------------------

def conv3x3_cat_bias_stats(x2, x1u, w, b):
    """conv3x3(concat([x2, x1u], channel)) + bias.
    Returns (raw bf16 output, per-strip channel sums, per-strip centered sumsq)."""
    N, H, W, C2 = x2.shape
    C1 = x1u.shape[-1]
    Cin, Cout = C2 + C1, w.shape[-1]
    R = _pick_strip(H, W)
    nS = H // R
    w2d = w.reshape(9 * Cin, Cout).astype(jnp.bfloat16)   # tap-major, in-channel-minor
    b2d = b.reshape(1, Cout).astype(jnp.float32)
    return pl.pallas_call(
        _conv1_kernel,
        out_shape=(jax.ShapeDtypeStruct((N, H, W, Cout), jnp.bfloat16),
                   jax.ShapeDtypeStruct((N, nS, 1, Cout), jnp.float32),
                   jax.ShapeDtypeStruct((N, nS, 1, Cout), jnp.float32)),
        grid=(N, nS),
        in_specs=[
            # Full-image blocks with a strip-invariant index map: fetched once per n and
            # kept resident; per-strip rows (2-row halo) are sliced in-kernel.
            pl.BlockSpec((1, H, W, C2), lambda n, s: (n, 0, 0, 0)),
            pl.BlockSpec((1, H, W, C1), lambda n, s: (n, 0, 0, 0)),
            pl.BlockSpec((9 * Cin, Cout), lambda n, s: (0, 0)),
            pl.BlockSpec((1, Cout), lambda n, s: (0, 0)),
        ],
        out_specs=(pl.BlockSpec((1, R, W, Cout), lambda n, s: (n, s, 0, 0)),
                   pl.BlockSpec((1, 1, 1, Cout), lambda n, s: (n, s, 0, 0)),
                   pl.BlockSpec((1, 1, 1, Cout), lambda n, s: (n, s, 0, 0))),
        scratch_shapes=[pltpu.VMEM((R + 2, W + 2, Cin), jnp.bfloat16)],
        compiler_params=pltpu.CompilerParams(
            dimension_semantics=("parallel", "parallel"),
            vmem_limit_bytes=_VMEM_LIMIT),
    )(x2, x1u, w2d, b2d)


def affine_relu_conv3x3_bias_stats(x, scale, shift, w, b):
    """relu(x*scale+shift) -> conv3x3 + bias.
    Returns (raw bf16 output, per-strip channel sums, per-strip centered sumsq)."""
    N, H, W, Cin = x.shape
    Cout = w.shape[-1]
    R = _pick_strip(H, W)
    nS = H // R
    w2d = w.reshape(9 * Cin, Cout).astype(jnp.bfloat16)
    b2d = b.reshape(1, Cout).astype(jnp.float32)
    return pl.pallas_call(
        _conv2_kernel,
        out_shape=(jax.ShapeDtypeStruct((N, H, W, Cout), jnp.bfloat16),
                   jax.ShapeDtypeStruct((N, nS, 1, Cout), jnp.float32),
                   jax.ShapeDtypeStruct((N, nS, 1, Cout), jnp.float32)),
        grid=(N, nS),
        in_specs=[
            pl.BlockSpec((1, H, W, Cin), lambda n, s: (n, 0, 0, 0)),
            pl.BlockSpec((1, Cin), lambda n, s: (0, 0)),
            pl.BlockSpec((1, Cin), lambda n, s: (0, 0)),
            pl.BlockSpec((9 * Cin, Cout), lambda n, s: (0, 0)),
            pl.BlockSpec((1, Cout), lambda n, s: (0, 0)),
        ],
        out_specs=(pl.BlockSpec((1, R, W, Cout), lambda n, s: (n, s, 0, 0)),
                   pl.BlockSpec((1, 1, 1, Cout), lambda n, s: (n, s, 0, 0)),
                   pl.BlockSpec((1, 1, 1, Cout), lambda n, s: (n, s, 0, 0))),
        scratch_shapes=[pltpu.VMEM((R + 2, W + 2, Cin), jnp.bfloat16)],
        compiler_params=pltpu.CompilerParams(
            dimension_semantics=("parallel", "parallel"),
            vmem_limit_bytes=_VMEM_LIMIT),
    )(x, scale.reshape(1, Cin).astype(jnp.float32),
      shift.reshape(1, Cin).astype(jnp.float32), w2d, b2d)


def bn_relu_lane_dense(y, scale, shift):
    """Final BN(scale/shift)+ReLU over a lane-dense flattened view of NHWC y.
    scale/shift are tiled only to a single (1,1,lane) row and broadcast in-kernel."""
    N, H, W, C = y.shape
    total = H * W * C
    lane = C   # fallback: masked but correct when nothing in the list divides
    for c in (2048, 1024, 512, 256, 128):
        if total % c == 0 and c % C == 0:
            lane = c
            break
    rows = total // lane
    Rb = rows
    for r in (2048, 1024, 512, 256, 128, 64, 32, 16, 8):
        if r < rows and rows % r == 0:
            Rb = r
            break
    nR = rows // Rb
    reps = lane // C
    yf = y.reshape(N, rows, lane)
    scale_l = jnp.tile(scale.astype(jnp.float32), reps).reshape(1, 1, lane)
    shift_l = jnp.tile(shift.astype(jnp.float32), reps).reshape(1, 1, lane)
    out = pl.pallas_call(
        _bn_relu_kernel,
        out_shape=jax.ShapeDtypeStruct((N, rows, lane), jnp.float32),
        grid=(N, nR),
        in_specs=[pl.BlockSpec((1, Rb, lane), lambda n, r: (n, r, 0)),
                  pl.BlockSpec((1, 1, lane), lambda n, r: (0, 0, 0)),
                  pl.BlockSpec((1, 1, lane), lambda n, r: (0, 0, 0))],
        out_specs=pl.BlockSpec((1, Rb, lane), lambda n, r: (n, r, 0)),
        compiler_params=pltpu.CompilerParams(
            dimension_semantics=("parallel", "parallel"),
            vmem_limit_bytes=_VMEM_LIMIT),
    )(yf, scale_l, shift_l)
    return out.reshape(N, H, W, C)


def _bn_fold_from_partials(s_part, q_part, cnt_blk, total, gamma, beta, eps=1e-5):
    """Combine per-strip (sum, centered sumsq) partials with Chan's parallel formula
    (equal-size blocks) and fold BatchNorm (biased batch stats) into scale/shift."""
    C = s_part.shape[-1]
    s2 = s_part.reshape(-1, C).astype(jnp.float32)
    q2 = q_part.reshape(-1, C).astype(jnp.float32)
    mean = jnp.sum(s2, axis=0) / total
    blk_mean = s2 / cnt_blk
    m2 = jnp.sum(q2, axis=0) + cnt_blk * jnp.sum((blk_mean - mean) ** 2, axis=0)
    var = m2 / total
    scale = gamma * jax.lax.rsqrt(var + eps)
    shift = beta - mean * scale
    return scale, shift


def upsample2x_bilinear_align_corners(x_nhwc):
    # TODO(synk): data-dependent gather -> kept in plain JAX; fuse into conv1 later.
    N, H, W, C = x_nhwc.shape
    Ho, Wo = 2 * H, 2 * W
    ys = jnp.arange(Ho, dtype=jnp.float32) * ((H - 1) / max(Ho - 1, 1))
    xs = jnp.arange(Wo, dtype=jnp.float32) * ((W - 1) / max(Wo - 1, 1))
    y0 = jnp.floor(ys).astype(jnp.int32)
    x0 = jnp.floor(xs).astype(jnp.int32)
    y1 = jnp.minimum(y0 + 1, H - 1)
    x1 = jnp.minimum(x0 + 1, W - 1)
    wy = (ys - y0.astype(jnp.float32))[None, :, None, None]
    wx = (xs - x0.astype(jnp.float32))[None, None, :, None]
    rows = x_nhwc[:, y0] * (1.0 - wy) + x_nhwc[:, y1] * wy          # (N,Ho,W,C)
    out = rows[:, :, x0] * (1.0 - wx) + rows[:, :, x1] * wx         # (N,Ho,Wo,C)
    return out


def init_up_params(key, in_channels, out_channels):
    k1, k2, k3, k4 = jax.random.split(key, 4)
    return {
        # conv weights stored as (kh, kw, Cin, Cout) (== torch (O,I,kh,kw).transpose(2,3,1,0))
        "conv1_w": 0.1 * jax.random.normal(k1, (3, 3, in_channels, out_channels), jnp.float32),
        "conv1_b": 0.1 * jax.random.normal(k2, (out_channels,), jnp.float32),
        "bn1_gamma": jnp.ones((out_channels,), jnp.float32),
        "bn1_beta": jnp.zeros((out_channels,), jnp.float32),
        "conv2_w": 0.1 * jax.random.normal(k3, (3, 3, out_channels, out_channels), jnp.float32),
        "conv2_b": 0.1 * jax.random.normal(k4, (out_channels,), jnp.float32),
        "bn2_gamma": jnp.ones((out_channels,), jnp.float32),
        "bn2_beta": jnp.zeros((out_channels,), jnp.float32),
    }


def up_forward(params, x1_nchw, x2_nchw, eps=1e-5):
    """Up.forward(x1, x2).  Inputs/outputs are NCHW like the PyTorch module."""
    x1 = jnp.transpose(x1_nchw, (0, 2, 3, 1)).astype(jnp.float32)   # -> NHWC
    x2 = jnp.transpose(x2_nchw, (0, 2, 3, 1)).astype(jnp.float32)

    x1 = upsample2x_bilinear_align_corners(x1)   # Upsample(2x, bilinear, align_corners=True)
    diffY = x2.shape[1] - x1.shape[1]
    diffX = x2.shape[2] - x1.shape[2]
    if diffY or diffX:                           # F.pad([l, r, t, b])
        x1 = jnp.pad(x1, ((0, 0),
                          (diffY // 2, diffY - diffY // 2),
                          (diffX // 2, diffX - diffX // 2),
                          (0, 0)))

    # bf16 activations into the conv kernels: the casts fuse with the transpose /
    # upsample that already write these tensors, halving their HBM footprint.
    x1 = x1.astype(jnp.bfloat16)
    x2 = x2.astype(jnp.bfloat16)

    N, H, W, _ = x2.shape
    total = N * H * W

    # Layer 1: conv (channel concat + halo built in VMEM) + BN1 partial stats.
    y1, s1, q1 = conv3x3_cat_bias_stats(x2, x1, params["conv1_w"], params["conv1_b"])
    cnt1 = (H // s1.shape[1]) * W
    scale1, shift1 = _bn_fold_from_partials(s1, q1, cnt1, total,
                                            params["bn1_gamma"], params["bn1_beta"], eps)

    # Layer 2: BN1+ReLU fused as conv2's prologue, + BN2 partial stats.
    y2, s2, q2 = affine_relu_conv3x3_bias_stats(y1, scale1, shift1,
                                                params["conv2_w"], params["conv2_b"])
    cnt2 = (H // s2.shape[1]) * W
    scale2, shift2 = _bn_fold_from_partials(s2, q2, cnt2, total,
                                            params["bn2_gamma"], params["bn2_beta"], eps)

    # Final BN2 + ReLU, lane-dense elementwise kernel.
    out = bn_relu_lane_dense(y2, scale2, shift2)

    return jnp.transpose(out, (0, 3, 1, 2))      # -> NCHW


if __name__ == "__main__":
    key = jax.random.PRNGKey(0)
    k_x1, k_x2, k_p = jax.random.split(key, 3)

    in_channels, out_channels = 8, 4
    # Typical UNet Up usage: x1 is the low-res feature map (in_channels//2 ch),
    # x2 is the skip connection at 2x the resolution (in_channels//2 ch).
    x1 = jax.random.normal(k_x1, (2, 4, 8, 8), jnp.float32)     # NCHW
    x2 = jax.random.normal(k_x2, (2, 4, 16, 16), jnp.float32)   # NCHW

    params = init_up_params(k_p, in_channels, out_channels)

    out = up_forward(params, x1, x2)
    out = jax.block_until_ready(out)
    assert out.shape == (2, out_channels, 16, 16), out.shape
    assert out.dtype == jnp.float32
    print("KERNEL_OK")
</pallas_src>

<mosaic_0001>
module attributes {stable_mosaic.version = 11 : i64} {
  func.func @_conv1_kernel(%arg0: i32, %arg1: i32, %arg2: memref<1x16x16x4xbf16, #tpu.memory_space<vmem>>, %arg3: memref<1x16x16x4xbf16, #tpu.memory_space<vmem>>, %arg4: memref<72x4xbf16, #tpu.memory_space<vmem>>, %arg5: memref<1x4xf32, #tpu.memory_space<vmem>>, %arg6: memref<1x8x16x4xbf16, #tpu.memory_space<vmem>>, %arg7: memref<1x1x1x4xf32, #tpu.memory_space<vmem>>, %arg8: memref<1x1x1x4xf32, #tpu.memory_space<vmem>>, %arg9: memref<10x18x8xbf16, #tpu.memory_space<vmem>>) attributes {dimension_semantics = [#tpu.dimension_semantics<parallel>, #tpu.dimension_semantics<parallel>], iteration_bounds = array<i64: 2, 2>, scalar_prefetch = 0 : i64, scratch_operands = 1 : i64, tpu.core_type = #tpu.core_type<tc>, window_params = [{transform_indices = @transform_0, window_bounds = array<i64: 1, 16, 16, 4>}, {transform_indices = @transform_1, window_bounds = array<i64: 1, 16, 16, 4>}, {pipeline_mode = #tpu.pipeline_mode<synchronous>, transform_indices = @transform_2, window_bounds = array<i64: 72, 4>}, {pipeline_mode = #tpu.pipeline_mode<synchronous>, transform_indices = @transform_3, window_bounds = array<i64: 1, 4>}, {transform_indices = @transform_4, window_bounds = array<i64: 1, 8, 16, 4>}, {transform_indices = @transform_5, window_bounds = array<i64: 1, 1, 1, 4>}, {transform_indices = @transform_6, window_bounds = array<i64: 1, 1, 1, 4>}]} {
    %c8_i32 = arith.constant 8 : i32
    %0 = arith.muli %arg1, %c8_i32 : i32
    %cst = arith.constant 0.000000e+00 : bf16
    %1 = vector.broadcast %cst : bf16 to vector<10x1x8xbf16>
    %c0 = arith.constant 0 : index
    %c0_0 = arith.constant 0 : index
    %c0_1 = arith.constant 0 : index
    %2 = vector.load %arg9[%c0, %c0_0, %c0_1] : memref<10x18x8xbf16, #tpu.memory_space<vmem>>, vector<10x1x8xbf16>
    tpu.vector_store %arg9[%c0, %c0_0, %c0_1], %1 {strides = array<i32>} : memref<10x18x8xbf16, #tpu.memory_space<vmem>>, vector<10x1x8xbf16>,
    %cst_2 = arith.constant 0.000000e+00 : bf16
    %3 = vector.broadcast %cst_2 : bf16 to vector<10x1x8xbf16>
    %c0_3 = arith.constant 0 : index
    %c17 = arith.constant 17 : index
    %c0_4 = arith.constant 0 : index
    %4 = vector.load %arg9[%c0_3, %c17, %c0_4] : memref<10x18x8xbf16, #tpu.memory_space<vmem>>, vector<10x1x8xbf16>
    tpu.vector_store %arg9[%c0_3, %c17, %c0_4], %3 {strides = array<i32>} : memref<10x18x8xbf16, #tpu.memory_space<vmem>>, vector<10x1x8xbf16>,
    %c0_i32 = arith.constant 0 : i32
    %5 = arith.cmpi sgt, %arg1, %c0_i32 : i32
    %cst_5 = arith.constant 1.000000e+00 : f32
    %cst_6 = arith.constant 0.000000e+00 : f32
    %6 = arith.select %5, %cst_5, %cst_6 : f32
    %7 = arith.truncf %6 : f32 to bf16
    %c1_i32 = arith.constant 1 : i32
    %8 = arith.cmpi slt, %arg1, %c1_i32 : i32
    %cst_7 = arith.constant 1.000000e+00 : f32
    %cst_8 = arith.constant 0.000000e+00 : f32
    %9 = arith.select %8, %cst_7, %cst_8 : f32
    %10 = arith.truncf %9 : f32 to bf16
    %c0_9 = arith.constant 0 : index
    %11 = arith.index_cast %0 : i32 to index
    %c0_10 = arith.constant 0 : index
    %c0_11 = arith.constant 0 : index
    %12 = vector.load %arg2[%c0_9, %11, %c0_10, %c0_11] : memref<1x16x16x4xbf16, #tpu.memory_space<vmem>>, vector<1x8x16x4xbf16>
    %13 = vector.shape_cast %12 : vector<1x8x16x4xbf16> to vector<8x16x4xbf16>
    %c1 = arith.constant 1 : index
    %c1_12 = arith.constant 1 : index
    %c0_13 = arith.constant 0 : index
    %14 = vector.load %arg9[%c1, %c1_12, %c0_13] : memref<10x18x8xbf16, #tpu.memory_space<vmem>>, vector<8x16x4xbf16>
    tpu.vector_store %arg9[%c1, %c1_12, %c0_13], %13 {strides = array<i32>} : memref<10x18x8xbf16, #tpu.memory_space<vmem>>, vector<8x16x4xbf16>,
    %c1_i32_14 = arith.constant 1 : i32
    %15 = arith.subi %0, %c1_i32_14 : i32
    %c0_i32_15 = arith.constant 0 : i32
    %16 = arith.maxsi %15, %c0_i32_15 : i32
    %c0_16 = arith.constant 0 : index
    %17 = arith.index_cast %16 : i32 to index
    %c0_17 = arith.constant 0 : index
    %c0_18 = arith.constant 0 : index
    %18 = vector.load %arg2[%c0_16, %17, %c0_17, %c0_18] : memref<1x16x16x4xbf16, #tpu.memory_space<vmem>>, vector<1x1x16x4xbf16>
    %19 = vector.shape_cast %18 : vector<1x1x16x4xbf16> to vector<1x16x4xbf16>
    %20 = vector.broadcast %7 : bf16 to vector<1x16x4xbf16>
    %21 = arith.mulf %19, %20 : vector<1x16x4xbf16>
    %c8_i32_19 = arith.constant 8 : i32
    %22 = arith.addi %0, %c8_i32_19 : i32
    %c15_i32 = arith.constant 15 : i32
    %23 = arith.minsi %22, %c15_i32 : i32
    %c0_20 = arith.constant 0 : index
    %24 = arith.index_cast %23 : i32 to index
    %c0_21 = arith.constant 0 : index
    %c0_22 = arith.constant 0 : index
    %25 = vector.load %arg2[%c0_20, %24, %c0_21, %c0_22] : memref<1x16x16x4xbf16, #tpu.memory_space<vmem>>, vector<1x1x16x4xbf16>
    %26 = vector.shape_cast %25 : vector<1x1x16x4xbf16> to vector<1x16x4xbf16>
    %27 = vector.broadcast %10 : bf16 to vector<1x16x4xbf16>
    %28 = arith.mulf %26, %27 : vector<1x16x4xbf16>
    %c0_23 = arith.constant 0 : index
    %c1_24 = arith.constant 1 : index
    %c0_25 = arith.constant 0 : index
    %29 = vector.load %arg9[%c0_23, %c1_24, %c0_25] : memref<10x18x8xbf16, #tpu.memory_space<vmem>>, vector<1x16x4xbf16>
    tpu.vector_store %arg9[%c0_23, %c1_24, %c0_25], %21 {strides = array<i32>} : memref<10x18x8xbf16, #tpu.memory_space<vmem>>, vector<1x16x4xbf16>,
    %c9 = arith.constant 9 : index
    %c1_26 = arith.constant 1 : index
    %c0_27 = arith.constant 0 : index
    %30 = vector.load %arg9[%c9, %c1_26, %c0_27] : memref<10x18x8xbf16, #tpu.memory_space<vmem>>, vector<1x16x4xbf16>
    tpu.vector_store %arg9[%c9, %c1_26, %c0_27], %28 {strides = array<i32>} : memref<10x18x8xbf16, #tpu.memory_space<vmem>>, vector<1x16x4xbf16>,
    %c0_28 = arith.constant 0 : index
    %31 = arith.index_cast %0 : i32 to index
    %c0_29 = arith.constant 0 : index
    %c0_30 = arith.constant 0 : index
    %32 = vector.load %arg3[%c0_28, %31, %c0_29, %c0_30] : memref<1x16x16x4xbf16, #tpu.memory_space<vmem>>, vector<1x8x16x4xbf16>
    %33 = vector.shape_cast %32 : vector<1x8x16x4xbf16> to vector<8x16x4xbf16>
    %c1_31 = arith.constant 1 : index
    %c1_32 = arith.constant 1 : index
    %c4 = arith.constant 4 : index
    %34 = vector.load %arg9[%c1_31, %c1_32, %c4] : memref<10x18x8xbf16, #tpu.memory_space<vmem>>, vector<8x16x4xbf16>
    tpu.vector_store %arg9[%c1_31, %c1_32, %c4], %33 {strides = array<i32>} : memref<10x18x8xbf16, #tpu.memory_space<vmem>>, vector<8x16x4xbf16>,
    %c1_i32_33 = arith.constant 1 : i32
    %35 = arith.subi %0, %c1_i32_33 : i32
    %c0_i32_34 = arith.constant 0 : i32
    %36 = arith.maxsi %35, %c0_i32_34 : i32
    %c0_35 = arith.constant 0 : index
    %37 = arith.index_cast %36 : i32 to index
    %c0_36 = arith.constant 0 : index
    %c0_37 = arith.constant 0 : index
    %38 = vector.load %arg3[%c0_35, %37, %c0_36, %c0_37] : memref<1x16x16x4xbf16, #tpu.memory_space<vmem>>, vector<1x1x16x4xbf16>
    %39 = vector.shape_cast %38 : vector<1x1x16x4xbf16> to vector<1x16x4xbf16>
    %40 = vector.broadcast %7 : bf16 to vector<1x16x4xbf16>
    %41 = arith.mulf %39, %40 : vector<1x16x4xbf16>
    %c8_i32_38 = arith.constant 8 : i32
    %42 = arith.addi %0, %c8_i32_38 : i32
    %c15_i32_39 = arith.constant 15 : i32
    %43 = arith.minsi %42, %c15_i32_39 : i32
    %c0_40 = arith.constant 0 : index
    %44 = arith.index_cast %43 : i32 to index
    %c0_41 = arith.constant 0 : index
    %c0_42 = arith.constant 0 : index
    %45 = vector.load %arg3[%c0_40, %44, %c0_41, %c0_42] : memref<1x16x16x4xbf16, #tpu.memory_space<vmem>>, vector<1x1x16x4xbf16>
    %46 = vector.shape_cast %45 : vector<1x1x16x4xbf16> to vector<1x16x4xbf16>
    %47 = vector.broadcast %10 : bf16 to vector<1x16x4xbf16>
    %48 = arith.mulf %46, %47 : vector<1x16x4xbf16>
    %c0_43 = arith.constant 0 : index
    %c1_44 = arith.constant 1 : index
    %c4_45 = arith.constant 4 : index
    %49 = vector.load %arg9[%c0_43, %c1_44, %c4_45] : memref<10x18x8xbf16, #tpu.memory_space<vmem>>, vector<1x16x4xbf16>
    tpu.vector_store %arg9[%c0_43, %c1_44, %c4_45], %41 {strides = array<i32>} : memref<10x18x8xbf16, #tpu.memory_space<vmem>>, vector<1x16x4xbf16>,
    %c9_46 = arith.constant 9 : index
    %c1_47 = arith.constant 1 : index
    %c4_48 = arith.constant 4 : index
    %50 = vector.load %arg9[%c9_46, %c1_47, %c4_48] : memref<10x18x8xbf16, #tpu.memory_space<vmem>>, vector<1x16x4xbf16>
    tpu.vector_store %arg9[%c9_46, %c1_47, %c4_48], %48 {strides = array<i32>} : memref<10x18x8xbf16, #tpu.memory_space<vmem>>, vector<1x16x4xbf16>,
    %cst_49 = arith.constant 0.000000e+00 : f32
    %51 = vector.broadcast %cst_49 : f32 to vector<128x4xf32>
    %c0_50 = arith.constant 0 : index
    %c0_51 = arith.constant 0 : index
    %52 = vector.load %arg5[%c0_50, %c0_51] : memref<1x4xf32, #tpu.memory_space<vmem>>, vector<1x4xf32>
    %53 = vector.broadcast %52 : vector<1x4xf32> to vector<128x4xf32>
    %54 = arith.addf %51, %53 : vector<128x4xf32>
    %c0_52 = arith.constant 0 : index
    %c0_53 = arith.constant 0 : index
    %c0_54 = arith.constant 0 : index
    %55 = vector.load %arg9[%c0_52, %c0_53, %c0_54] : memref<10x18x8xbf16, #tpu.memory_space<vmem>>, vector<8x16x8xbf16>
    %56 = vector.shape_cast %55 : vector<8x16x8xbf16> to vector<128x8xbf16>
    %c0_55 = arith.constant 0 : index
    %c0_56 = arith.constant 0 : index
    %57 = vector.load %arg4[%c0_55, %c0_56] : memref<72x4xbf16, #tpu.memory_space<vmem>>, vector<8x4xbf16>
    %cst_57 = arith.constant dense<0.000000e+00> : vector<128x4xf32>
    %58 = tpu.matmul %56, %57, %cst_57 {dimension_numbers = #tpu.dot_dimension_numbers<[1], [0], [0], [1], [0, 0, 1, 1], [], []>} : vector<128x8xbf16>, vector<8x4xbf16>, vector<128x4xf32> -> vector<128x4xf32>
    %59 = arith.addf %54, %58 : vector<128x4xf32>
    %c0_58 = arith.constant 0 : index
    %c1_59 = arith.constant 1 : index
    %c0_60 = arith.constant 0 : index
    %60 = vector.load %arg9[%c0_58, %c1_59, %c0_60] : memref<10x18x8xbf16, #tpu.memory_space<vmem>>, vector<8x16x8xbf16>
    %61 = vector.shape_cast %60 : vector<8x16x8xbf16> to vector<128x8xbf16>
    %c8 = arith.constant 8 : index
    %c0_61 = arith.constant 0 : index
    %62 = vector.load %arg4[%c8, %c0_61] : memref<72x4xbf16, #tpu.memory_space<vmem>>, vector<8x4xbf16>
    %cst_62 = arith.constant dense<0.000000e+00> : vector<128x4xf32>
    %63 = tpu.matmul %61, %62, %cst_62 {dimension_numbers = #tpu.dot_dimension_numbers<[1], [0], [0], [1], [0, 0, 1, 1], [], []>} : vector<128x8xbf16>, vector<8x4xbf16>, vector<128x4xf32> -> vector<128x4xf32>
    %64 = arith.addf %59, %63 : vector<128x4xf32>
    %c0_63 = arith.constant 0 : index
    %c2 = arith.constant 2 : index
    %c0_64 = arith.constant 0 : index
    %65 = vector.load %arg9[%c0_63, %c2, %c0_64] : memref<10x18x8xbf16, #tpu.memory_space<vmem>>, vector<8x16x8xbf16>
    %66 = vector.shape_cast %65 : vector<8x16x8xbf16> to vector<128x8xbf16>
    %c16 = arith.constant 16 : index
    %c0_65 = arith.constant 0 : index
    %67 = vector.load %arg4[%c16, %c0_65] : memref<72x4xbf16, #tpu.memory_space<vmem>>, vector<8x4xbf16>
    %cst_66 = arith.constant dense<0.000000e+00> : vector<128x4xf32>
    %68 = tpu.matmul %66, %67, %cst_66 {dimension_numbers = #tpu.dot_dimension_numbers<[1], [0], [0], [1], [0, 0, 1, 1], [], []>} : vector<128x8xbf16>, vector<8x4xbf16>, vector<128x4xf32> -> vector<128x4xf32>
    %69 = arith.addf %64, %68 : vector<128x4xf32>
    %c1_67 = arith.constant 1 : index
    %c0_68 = arith.constant 0 : index
    %c0_69 = arith.constant 0 : index
    %70 = vector.load %arg9[%c1_67, %c0_68, %c0_69] : memref<10x18x8xbf16, #tpu.memory_space<vmem>>, vector<8x16x8xbf16>
    %71 = vector.shape_cast %70 : vector<8x16x8xbf16> to vector<128x8xbf16>
    %c24 = arith.constant 24 : index
    %c0_70 = arith.constant 0 : index
    %72 = vector.load %arg4[%c24, %c0_70] : memref<72x4xbf16, #tpu.memory_space<vmem>>, vector<8x4xbf16>
    %cst_71 = arith.constant dense<0.000000e+00> : vector<128x4xf32>
    %73 = tpu.matmul %71, %72, %cst_71 {dimension_numbers = #tpu.dot_dimension_numbers<[1], [0], [0], [1], [0, 0, 1, 1], [], []>} : vector<128x8xbf16>, vector<8x4xbf16>, vector<128x4xf32> -> vector<128x4xf32>
    %74 = arith.addf %69, %73 : vector<128x4xf32>
    %c1_72 = arith.constant 1 : index
    %c1_73 = arith.constant 1 : index
    %c0_74 = arith.constant 0 : index
    %75 = vector.load %arg9[%c1_72, %c1_73, %c0_74] : memref<10x18x8xbf16, #tpu.memory_space<vmem>>, vector<8x16x8xbf16>
    %76 = vector.shape_cast %75 : vector<8x16x8xbf16> to vector<128x8xbf16>
    %c32 = arith.constant 32 : index
    %c0_75 = arith.constant 0 : index
    %77 = vector.load %arg4[%c32, %c0_75] : memref<72x4xbf16, #tpu.memory_space<vmem>>, vector<8x4xbf16>
    %cst_76 = arith.constant dense<0.000000e+00> : vector<128x4xf32>
    %78 = tpu.matmul %76, %77, %cst_76 {dimension_numbers = #tpu.dot_dimension_numbers<[1], [0], [0], [1], [0, 0, 1, 1], [], []>} : vector<128x8xbf16>, vector<8x4xbf16>, vector<128x4xf32> -> vector<128x4xf32>
    %79 = arith.addf %74, %78 : vector<128x4xf32>
    %c1_77 = arith.constant 1 : index
    %c2_78 = arith.constant 2 : index
    %c0_79 = arith.constant 0 : index
    %80 = vector.load %arg9[%c1_77, %c2_78, %c0_79] : memref<10x18x8xbf16, #tpu.memory_space<vmem>>, vector<8x16x8xbf16>
    %81 = vector.shape_cast %80 : vector<8x16x8xbf16> to vector<128x8xbf16>
    %c40 = arith.constant 40 : index
    %c0_80 = arith.constant 0 : index
    %82 = vector.load %arg4[%c40, %c0_80] : memref<72x4xbf16, #tpu.memory_space<vmem>>, vector<8x4xbf16>
    %cst_81 = arith.constant dense<0.000000e+00> : vector<128x4xf32>
    %83 = tpu.matmul %81, %82, %cst_81 {dimension_numbers = #tpu.dot_dimension_numbers<[1], [0], [0], [1], [0, 0, 1, 1], [], []>} : vector<128x8xbf16>, vector<8x4xbf16>, vector<128x4xf32> -> vector<128x4xf32>
    %84 = arith.addf %79, %83 : vector<128x4xf32>
    %c2_82 = arith.constant 2 : index
    %c0_83 = arith.constant 0 : index
    %c0_84 = arith.constant 0 : index
    %85 = vector.load %arg9[%c2_82, %c0_83, %c0_84] : memref<10x18x8xbf16, #tpu.memory_space<vmem>>, vector<8x16x8xbf16>
    %86 = vector.shape_cast %85 : vector<8x16x8xbf16> to vector<128x8xbf16>
    %c48 = arith.constant 48 : index
    %c0_85 = arith.constant 0 : index
    %87 = vector.load %arg4[%c48, %c0_85] : memref<72x4xbf16, #tpu.memory_space<vmem>>, vector<8x4xbf16>
    %cst_86 = arith.constant dense<0.000000e+00> : vector<128x4xf32>
    %88 = tpu.matmul %86, %87, %cst_86 {dimension_numbers = #tpu.dot_dimension_numbers<[1], [0], [0], [1], [0, 0, 1, 1], [], []>} : vector<128x8xbf16>, vector<8x4xbf16>, vector<128x4xf32> -> vector<128x4xf32>
    %89 = arith.addf %84, %88 : vector<128x4xf32>
    %c2_87 = arith.constant 2 : index
    %c1_88 = arith.constant 1 : index
    %c0_89 = arith.constant 0 : index
    %90 = vector.load %arg9[%c2_87, %c1_88, %c0_89] : memref<10x18x8xbf16, #tpu.memory_space<vmem>>, vector<8x16x8xbf16>
    %91 = vector.shape_cast %90 : vector<8x16x8xbf16> to vector<128x8xbf16>
    %c56 = arith.constant 56 : index
    %c0_90 = arith.constant 0 : index
    %92 = vector.load %arg4[%c56, %c0_90] : memref<72x4xbf16, #tpu.memory_space<vmem>>, vector<8x4xbf16>
    %cst_91 = arith.constant dense<0.000000e+00> : vector<128x4xf32>
    %93 = tpu.matmul %91, %92, %cst_91 {dimension_numbers = #tpu.dot_dimension_numbers<[1], [0], [0], [1], [0, 0, 1, 1], [], []>} : vector<128x8xbf16>, vector<8x4xbf16>, vector<128x4xf32> -> vector<128x4xf32>
    %94 = arith.addf %89, %93 : vector<128x4xf32>
    %c2_92 = arith.constant 2 : index
    %c2_93 = arith.constant 2 : index
    %c0_94 = arith.constant 0 : index
    %95 = vector.load %arg9[%c2_92, %c2_93, %c0_94] : memref<10x18x8xbf16, #tpu.memory_space<vmem>>, vector<8x16x8xbf16>
    %96 = vector.shape_cast %95 : vector<8x16x8xbf16> to vector<128x8xbf16>
    %c64 = arith.constant 64 : index
    %c0_95 = arith.constant 0 : index
    %97 = vector.load %arg4[%c64, %c0_95] : memref<72x4xbf16, #tpu.memory_space<vmem>>, vector<8x4xbf16>
    %cst_96 = arith.constant dense<0.000000e+00> : vector<128x4xf32>
    %98 = tpu.matmul %96, %97, %cst_96 {dimension_numbers = #tpu.dot_dimension_numbers<[1], [0], [0], [1], [0, 0, 1, 1], [], []>} : vector<128x8xbf16>, vector<8x4xbf16>, vector<128x4xf32> -> vector<128x4xf32>
    %99 = arith.addf %94, %98 : vector<128x4xf32>
    %100 = vector.shape_cast %99 : vector<128x4xf32> to vector<1x8x16x4xf32>
    %101 = arith.truncf %100 : vector<1x8x16x4xf32> to vector<1x8x16x4xbf16>
    %c0_97 = arith.constant 0 : index
    %c0_98 = arith.constant 0 : index
    %c0_99 = arith.constant 0 : index
    %c0_100 = arith.constant 0 : index
    %102 = vector.load %arg6[%c0_97, %c0_98, %c0_99, %c0_100] : memref<1x8x16x4xbf16, #tpu.memory_space<vmem>>, vector<1x8x16x4xbf16>
    tpu.vector_store %arg6[%c0_97, %c0_98, %c0_99, %c0_100], %101 {strides = array<i32>} : memref<1x8x16x4xbf16, #tpu.memory_space<vmem>>, vector<1x8x16x4xbf16>,
    %cst_101 = arith.constant dense<0.000000e+00> : vector<4xf32>
    %103 = vector.multi_reduction <add>, %99, %cst_101 [0] : vector<128x4xf32> to vector<4xf32>
    %104 = vector.shape_cast %103 : vector<4xf32> to vector<1x4xf32>
    %cst_102 = arith.constant 7.812500e-03 : f32
    %105 = vector.broadcast %cst_102 : f32 to vector<1x4xf32>
    %106 = arith.mulf %104, %105 : vector<1x4xf32>
    %107 = vector.broadcast %106 : vector<1x4xf32> to vector<128x4xf32>
    %108 = arith.subf %99, %107 : vector<128x4xf32>
    %109 = vector.shape_cast %104 : vector<1x4xf32> to vector<1x1x1x4xf32>
    %c0_103 = arith.constant 0 : index
    %c0_104 = arith.constant 0 : index
    %c0_105 = arith.constant 0 : index
    %c0_106 = arith.constant 0 : index
    %110 = vector.load %arg7[%c0_103, %c0_104, %c0_105, %c0_106] : memref<1x1x1x4xf32, #tpu.memory_space<vmem>>, vector<1x1x1x4xf32>
    tpu.vector_store %arg7[%c0_103, %c0_104, %c0_105, %c0_106], %109 {strides = array<i32>} : memref<1x1x1x4xf32, #tpu.memory_space<vmem>>, vector<1x1x1x4xf32>,
    %111 = arith.mulf %108, %108 : vector<128x4xf32>
    %cst_107 = arith.constant dense<0.000000e+00> : vector<4xf32>
    %112 = vector.multi_reduction <add>, %111, %cst_107 [0] : vector<128x4xf32> to vector<4xf32>
    %113 = vector.shape_cast %112 : vector<4xf32> to vector<1x4xf32>
    %114 = vector.shape_cast %113 : vector<1x4xf32> to vector<1x1x1x4xf32>
    %c0_108 = arith.constant 0 : index
    %c0_109 = arith.constant 0 : index
    %c0_110 = arith.constant 0 : index
    %c0_111 = arith.constant 0 : index
    %115 = vector.load %arg8[%c0_108, %c0_109, %c0_110, %c0_111] : memref<1x1x1x4xf32, #tpu.memory_space<vmem>>, vector<1x1x1x4xf32>
    tpu.vector_store %arg8[%c0_108, %c0_109, %c0_110, %c0_111], %114 {strides = array<i32>} : memref<1x1x1x4xf32, #tpu.memory_space<vmem>>, vector<1x1x1x4xf32>,
    return
  }
  func.func @transform_0(%arg0: i32, %arg1: i32) -> (i32, i32, i32, i32) {
    %c0_i32 = arith.constant 0 : i32
    %c0_i32_0 = arith.constant 0 : i32
    %c0_i32_1 = arith.constant 0 : i32
    %c0_i32_2 = arith.constant 0 : i32
    return %arg0, %c0_i32, %c0_i32_0, %c0_i32_1 : i32, i32, i32, i32
  }
  func.func @transform_1(%arg0: i32, %arg1: i32) -> (i32, i32, i32, i32) {
    %c0_i32 = arith.constant 0 : i32
    %c0_i32_0 = arith.constant 0 : i32
    %c0_i32_1 = arith.constant 0 : i32
    %c0_i32_2 = arith.constant 0 : i32
    return %arg0, %c0_i32, %c0_i32_0, %c0_i32_1 : i32, i32, i32, i32
  }
  func.func @transform_2(%arg0: i32, %arg1: i32) -> (i32, i32) {
    %c0_i32 = arith.constant 0 : i32
    %c0_i32_0 = arith.constant 0 : i32
    %c0_i32_1 = arith.constant 0 : i32
    return %c0_i32, %c0_i32_0 : i32, i32
  }
  func.func @transform_3(%arg0: i32, %arg1: i32) -> (i32, i32) {
    %c0_i32 = arith.constant 0 : i32
    %c0_i32_0 = arith.constant 0 : i32
    %c0_i32_1 = arith.constant 0 : i32
    return %c0_i32, %c0_i32_0 : i32, i32
  }
  func.func @transform_4(%arg0: i32, %arg1: i32) -> (i32, i32, i32, i32) {
    %c0_i32 = arith.constant 0 : i32
    %c0_i32_0 = arith.constant 0 : i32
    %c0_i32_1 = arith.constant 0 : i32
    return %arg0, %arg1, %c0_i32, %c0_i32_0 : i32, i32, i32, i32
  }
  func.func @transform_5(%arg0: i32, %arg1: i32) -> (i32, i32, i32, i32) {
    %c0_i32 = arith.constant 0 : i32
    %c0_i32_0 = arith.constant 0 : i32
    %c0_i32_1 = arith.constant 0 : i32
    return %arg0, %arg1, %c0_i32, %c0_i32_0 : i32, i32, i32, i32
  }
  func.func @transform_6(%arg0: i32, %arg1: i32) -> (i32, i32, i32, i32) {
    %c0_i32 = arith.constant 0 : i32
    %c0_i32_0 = arith.constant 0 : i32
    %c0_i32_1 = arith.constant 0 : i32
    return %arg0, %arg1, %c0_i32, %c0_i32_0 : i32, i32, i32, i32
  }
}

</mosaic_0001>

<bundles_post_ra>
// kernel: tpu_custom_call.1
= control target key start
LH: loop header
LB: loop body
LE: loop exit
PB: predicated region body
PF: predicated region fallthrough
CT: control target
= control target key end

     0   :  { %s7150_s0 = inlined_call_operand.hbm [shape: bf16[2,16,16,4], index: 0, kind: input, shape index: {}]   ;;  %s7151_s1 = inlined_call_operand.hbm [shape: bf16[2,16,16,4], index: 1, kind: input, shape index: {}]   ;;  %s7152_s2 = inlined_call_operand.hbm [shape: bf16[72,4], index: 2, kind: input, shape index: {}]   ;;  %s7153_s3 = inlined_call_operand.hbm [shape: f32[1,4], index: 3, kind: input, shape index: {}]   ;;  %s7154_s4 = inlined_call_operand.hbm [shape: bf16[2,16,16,4], index: 4, kind: output, shape index: {0}]   ;;  %s7155_s5 = inlined_call_operand.hbm [shape: f32[2,2,1,4], index: 5, kind: output, shape index: {1}]   ;;  %s7156_s6 = inlined_call_operand.hbm [shape: f32[2,2,1,4], index: 6, kind: output, shape index: {2}]  }
   0x1   :  { %7175 = sst [smem:[#allocation28_spill]] %s7150_s0 }
   0x2   :  { %7176 = sst [smem:[#allocation29_spill]] %s7152_s2 }
   0x3   :  { %7177 = sst [smem:[#allocation30_spill]] %s7153_s3 }
   0x4   :  { %7178 = sst [smem:[#allocation31_spill]] %s7154_s4 }
   0x5   :  { %7179 = sst [smem:[#allocation32_spill]] %s7155_s5 }
   0x6   :  { %7180 = sst [smem:[#allocation33_spill]] %s7156_s6 }
   0x7   :  { %12 = vsyncpa [#allocation4], 0 }
   0x8   :  { %14 = vsyncpa [#allocation4 + $0x1], 0 }
   0x9   :  { %15 = vsyncpa [#allocation7], 0 }
   0xa   :  { %17 = vsyncpa [#allocation7 + $0x1], 0 }
   0xb   :  { %18 = vsyncpa [#allocation10], 0 }
   0xc   :  { %19 = vsyncpa [#allocation5], 0 }
   0xd   :  { %21 = vsyncpa [#allocation5 + $0x1], 0 }
   0xe   :  { %22 = vsyncpa [#allocation13], 0 }
   0xf   :  { %24 = vsyncpa [#allocation13 + $0x1], 0  ;;  %s5289_s21 = smov 0   ;;  %s5291_s22 = smov 0  }
  0x10   :  { %s5293_s23 = smov 0   ;;  %s5295_s24 = smov 0  }
  0x11   :  { %s5297_s25 = smov 0   ;;  %s5299_s26 = smov 0  }
  0x12   :  { %s5301_s27 = smov 0   ;;  %s5303_s28 = smov 0  }
  0x13   :  { %s5305_s29 = smov 0   ;;  %s5307_s30 = smov 0  }
  0x14   :  { %s5309_s7 = smov 0  }
  0x15 LB: > { %7181 = sst [smem:[#allocation21_spill]] %s5201_s21  ;;  %s5343_s8 = sadd.s32 4294967295, %s5241_s7   ;;  %s5241_s7 = sphi %s5309_s7, %s30_s7   ;;  %s5237_s30 = sphi %s5307_s30, %s7239_s30   ;;  %s5233_s29 = sphi %s5305_s29, %s7238_s29   ;;  %s5229_s28 = sphi %s5303_s28, %s7237_s28   ;;  %s5225_s27 = sphi %s5301_s27, %s7236_s27   ;;  %s5221_s26 = sphi %s5299_s26, %s7245_s26   ;;  %s5217_s25 = sphi %s5297_s25, %s7244_s25   ;;  %s5213_s24 = sphi %s5295_s24, %s7243_s24   ;;  %s5209_s23 = sphi %s5293_s23, %s7242_s23   ;;  %s5205_s22 = sphi %s5291_s22, %s7241_s22   ;;  %s5201_s21 = sphi %s5289_s21, %s7240_s21  }
  0x16   : > { %7182 = sst [smem:[#allocation22_spill]] %s5233_s29  ;;  %s7157_s9 = sadd.s32 4294967294, %s5241_s7  }
  0x17   : > { %7183 = sst [smem:[#allocation23_spill]] %s5237_s30  ;;  %p62_p0 = scmp.ne.s32.totalorder %s5217_s25, %s5213_s24 }
  0x18   : > { %p7160_p1 = scmp.eq.s32.totalorder %s5343_s8, 0  ;;  %p155_p2 = scmp.ne.s32.totalorder %s5209_s23, %s5205_s22 }
  0x19   : > { %p156_p4 = scmp.eq.s32.totalorder %s5343_s8, 3  ;;  %p161_p5 = scmp.ne.s32.totalorder %s5205_s22, %s5201_s21 }
  0x1a   : > { %p5353_p3 = por %p7160_p1, %p62_p0  ;;  %p162_p6 = scmp.eq.s32.totalorder %s7157_s9, 3 }
  0x1b   : > { %p5362_p7 = por %p156_p4, %p155_p2  ;;  %p4110_p8 = scmp.ge.s32.totalorder %s5241_s7, 1 }
  0x1c   : > { %s7184_s11 = scalar_select %p5353_p3, 1, 0 }
  0x1d   : > { %s7185_s12 = scalar_select %p5362_p7, 1, 0 }
  0x1e   : > { %p5367_p9 = por %p162_p6, %p161_p5  ;;  %p225_p10 = scmp.lt.s32.totalorder %s5241_s7, 5 }
  0x1f   : > { %s5243_s15 = smov [#allocation8]   ;;  %s5244_s18 = smov [#allocation9]  }
  0x20   : > { %s7186_s13 = scalar_select %p5367_p9, 1, 0 }
  0x21   : > { %p5372_p11 = pnand %p4110_p8, %p225_p10  ;;  %s237_s16 = sshll.u32 %s5243_s15, 4  ;;  %s238_s16 = int_to_ptr.vmem [resolvable:$true] %s237_s16 }
  0x22   : > { %7187 = sst [smem:[#allocation24_spill]] %s7186_s13  ;;  %s251_s19 = sshll.u32 %s5244_s18, 4  ;;  %s5384_s19 = int_to_ptr.vmem [resolvable:$true] %s251_s19 }
  0x23   : > { %s7188_s14 = scalar_select %p5372_p11, 1, 0 }
  0x24   : > { %p4776_p12 = pneg %p5372_p11  ;;  %s7190_s2 = sld [smem:[#allocation29_spill]] }
  0x26   : > { %p5380_p13 = pnand %p4776_p12, %p7160_p1 }
  0x28   : > { %p4933_p2 = pneg %p5380_p13 }
  0x2a   : > { %s4931_s9 = scalar_lea.hbm %s7190_s2, 576 }
  0x2b   : > { %p4932_p0 = scmp.ne.s32.totalorder %s7190_s2, %s4931_s9  ;;  %p4938_p6 = scmp.lt.u32.totalorder %s4931_s9, %s7190_s2 }
  0x2d   : > { %p4934_p4 = pnand %p4933_p2, %p4932_p0 }
  0x2f   : > { %p4935_p5 = pneg %p4934_p4 }
  0x31   : > { %p4940_p8 = pnand %p4938_p6, %p4935_p5 }
  0x33   : > { %4943 = shalt.err (!%p4940_p8)
}
  0x34   : > { %s4944_s18 = scalar_lea.vmem %s238_s16, 576  ;;  %p4952_p9 = scmp.lt.s32.totalorder %s238_s16, %s238_s16 }
  0x35   : > { %p4945_p10 = scmp.ne.s32.totalorder %s238_s16, %s4944_s18  ;;  %p4953_p7 = scmp.lt.s32.totalorder %s4944_s18, %s4944_s18 }
  0x37   : > { %p4947_p12 = pnand %p4945_p10, %p4933_p2  ;;  %p4954_p3 = por %p4953_p7, %p4952_p9 }
  0x39   : > { %p4948_p1 = pneg %p4947_p12 }
  0x3b   : > { %p4955_p11 = pnand %p4954_p3, %p4948_p1 }
  0x3d   : > { %4958 = shalt.err (!%p4955_p11)
}
  0x3e   : > { %s7167_s10 = smov 64   ;;  %s7169_s20 = smov 4  }
  0x3f   : > { %4779 = dma.hbm_to_vmem [thread:$0]  (!%p5380_p13), %s7190_s2, 576, %s238_s16, [#allocation7], %s7167_s10, %s7167_s10, %s7169_s20  }
  0x40   : > { %s7191_s3 = sld [smem:[#allocation30_spill]] }
  0x46   : > { %s4959_s15 = scalar_lea.hbm %s7191_s3, 16 }
  0x47   : > { %p4960_p1 = scmp.ne.s32.totalorder %s7191_s3, %s4959_s15  ;;  %p4966_p9 = scmp.lt.u32.totalorder %s4959_s15, %s7191_s3 }
  0x49   : > { %p4962_p3 = pnand %p4960_p1, %p4933_p2 }
  0x4b   : > { %p4963_p7 = pneg %p4962_p3 }
  0x4d   : > { %p4968_p11 = pnand %p4966_p9, %p4963_p7 }
  0x4f   : > { %4971 = shalt.err (!%p4968_p11)
}
  0x50   : > { %s4972_s16 = scalar_lea.vmem %s5384_s19, 16  ;;  %s4979_s6 = scalar_lea.vmem %s5384_s19, 32 }
  0x51   : > { %p4973_p0 = scmp.ne.s32.totalorder %s5384_s19, %s4972_s16  ;;  %p4980_p6 = scmp.lt.s32.totalorder %s5384_s19, %s5384_s19 }
  0x52   : > { %p4981_p8 = scmp.lt.s32.totalorder %s4979_s6, %s4972_s16 }
  0x53   : > { %p4975_p4 = pnand %p4973_p0, %p4933_p2 }
  0x54   : > { %p4982_p10 = por %p4981_p8, %p4980_p6 }
  0x55   : > { %p4976_p5 = pneg %p4975_p4 }
  0x57   : > { %p4983_p12 = pnand %p4982_p10, %p4976_p5 }
  0x59   : > { %4986 = shalt.err (!%p4983_p12)
}
  0x5a   : > { %4782 = dma.hbm_to_vmem [thread:$0]  (!%p5380_p13), %s7191_s3, 16, %s5384_s19, [#allocation10]  }
  0x5b   : > { %s39_s21 = sadd.s32 1, %s5233_s29  ;;  %s42_s9 = sadd.s32 1, %s5237_s30 }
  0x5c   : > { %p40_p2 = scmp.ge.s32.totalorder %s39_s21, 2  ;;  %s49_s17 = sadd.s32 1, %s5221_s26 }
  0x5d   : > { %p56_p1 = scmp.ne.s32.totalorder %s5221_s26, %s5217_s25  ;;  %p57_p3 = scmp.eq.s32.totalorder %s5241_s7, 0 }
  0x5e   : > { %s7247_s21 = smov (%p40_p2, %s39_s21), 0  ;;  %s7249_s9 = smov (!%p40_p2, %s42_s9), %s5237_s30 }
  0x5f   : > { %7192 = sst [smem:[#allocation25_spill]] %s7247_s21  ;;  %p5446_p7 = por %p57_p3, %p56_p1 }
  0x60   : > { %s141_s24 = ssub.s32 %s5233_s29, %s7247_s21  ;;  %p44_p13 = scmp.ge.s32.totalorder %s7249_s9, 2 }
  0x61   : > { %p4802_p9 = scmp.lt.s32.totalorder %s5241_s7, 4  ;;  %s262_s19 = sand.u32 1, %s5221_s26  }
  0x62   : > { %s4333_s15 = sshll.u32 %s5237_s30, 11  ;;  %s7251_s9 = smov (%p44_p13, %s7249_s9), 0 }
  0x63   : > { %7194 = sst [smem:[#allocation26_spill]] %s7251_s9  ;;  %s5457_s18 = sshll.u32 %s262_s19, 7 }
  0x64   : > { %s46_s16 = ssub.s32 %s5237_s30, %s7251_s9  ;;  %s7195_s0 = sld [smem:[#allocation28_spill]] }
  0x65   : > { %p47_p11 = scmp.eq.s32.totalorder %s46_s16, 0  ;;  %s142_s6 = sor.u32 %s141_s24, %s46_s16 }
  0x66   : > { %p143_p0 = scmp.eq.s32.totalorder %s142_s6, 0  ;;  %s7197_s2 = sadd.s32 1, %s5209_s23 }
  0x67   : > { %s5467_s20 = scalar_select %p47_p11, %s5221_s26, %s49_s17  }
  0x68   : > { %s5472_s3 = scalar_select %p143_p0, %s5209_s23, %s7197_s2  }
  0x69   : > { %7196 = sst [smem:[#allocation27_spill]] %s5467_s20  ;;  %s266_s21 = scalar_lea.vmem [#allocation3], %s5457_s18 }
  0x6a   : > { %s5464_s10 = scalar_lea.hbm %s7195_s0, %s4333_s15  ;;  %s273_s29 = sshll.u32 %s266_s21, 4  ;;  %s5483_s29 = int_to_ptr.vmem [resolvable:$true] %s273_s29 }
  0x6b   : > { %p5479_p4 = pnand %p4802_p9, %p5446_p7  ;;  %s5488_s17 = scalar_lea.hbm %s7151_s1, %s4333_s15 }
  0x6c   : > { %s5490_s2 = scalar_lea.sflag [#allocation4], %s262_s19  ;;  %s4987_s4 = scalar_lea.hbm %s5464_s10, 2048 }
  0x6d   : > { %p4988_p5 = scmp.ne.s32.totalorder %s5464_s10, %s4987_s4  ;;  %p4989_p6 = pneg %p5479_p4 }
  0x6e   : > { %s4992_s5 = scalar_lea.hbm %s7195_s0, 4096  ;;  %p4993_p12 = scmp.lt.u32.totalorder %s5464_s10, %s7195_s0 }
  0x6f   : > { %p4990_p8 = pnand %p4989_p6, %p4988_p5  ;;  %p4994_p2 = scmp.lt.u32.totalorder %s4992_s5, %s4987_s4 }
  0x70   : > { %p4996_p3 = scmp.lt.u32.totalorder %s4987_s4, %s5464_s10 }
  0x71   : > { %p4991_p10 = pneg %p4990_p8  ;;  %p4995_p1 = por %p4994_p2, %p4993_p12 }
  0x73   : > { %p4997_p7 = por %p4996_p3, %p4995_p1 }
  0x75   : > { %p4998_p13 = pnand %p4997_p7, %p4991_p10 }
  0x77   : > { %5001 = shalt.err (!%p4998_p13)
}
  0x78   : > { %s5002_s19 = scalar_lea.vmem %s5483_s29, 2048  ;;  %s5247_s15 = smov [#allocation3]  }
  0x79   : > { %p5003_p9 = scmp.ne.s32.totalorder %s5483_s29, %s5002_s19  ;;  %s5007_s16 = sshll.u32 %s5247_s15, 4  ;;  %s5008_s16 = int_to_ptr.vmem [resolvable:$false] %s5007_s16 }
  0x7a   : > { %s5009_s30 = scalar_lea.vmem %s5008_s16, 4096  ;;  %p5010_p5 = scmp.lt.s32.totalorder %s5483_s29, %s5008_s16 }
  0x7b   : > { %p5005_p11 = pnand %p5003_p9, %p4989_p6  ;;  %p5011_p8 = scmp.lt.s32.totalorder %s5009_s30, %s5002_s19 }
  0x7d   : > { %p5006_p0 = pneg %p5005_p11  ;;  %p5012_p12 = por %p5011_p8, %p5010_p5 }
  0x7f   : > { %p5013_p2 = pnand %p5012_p12, %p5006_p0 }
  0x81   : > { %5016 = shalt.err (!%p5013_p2)
}
  0x82   : > { %s7199_s9 = smov 4   ;;  %s7200_s6 = smov 64  }
  0x83   : > { %4786 = dma.hbm_to_vmem [thread:$0]  (!%p5479_p4), %s5464_s10, 2048, %s5483_s29, %s5490_s2, %s7200_s6, %s7200_s6, %s7199_s9  }
  0x84   : > { %s287_s4 = scalar_lea.vmem [#allocation6], %s5457_s18  ;;  %s283_s13 = sand.u32 1, %s5241_s7  }
  0x85   : > { %s294_s21 = sshll.u32 %s287_s4, 4  ;;  %s5525_s5 = scalar_lea.sflag [#allocation7], %s283_s13  ;;  %s5523_s21 = int_to_ptr.vmem [resolvable:$true] %s294_s21 }
  0x86   : > { %s5017_s19 = scalar_lea.hbm %s5488_s17, 2048  ;;  %s5022_s30 = scalar_lea.hbm %s7151_s1, 4096 }
  0x87   : > { %p5018_p10 = scmp.ne.s32.totalorder %s5488_s17, %s5017_s19  ;;  %p5023_p7 = scmp.lt.u32.totalorder %s5488_s17, %s7151_s1 }
  0x88   : > { %p5024_p13 = scmp.lt.u32.totalorder %s5022_s30, %s5017_s19  ;;  %p5026_p11 = scmp.lt.u32.totalorder %s5017_s19, %s5488_s17 }
  0x89   : > { %p5020_p1 = pnand %p5018_p10, %p4989_p6 }
  0x8a   : > { %p5025_p9 = por %p5024_p13, %p5023_p7 }
  0x8b   : > { %p5021_p3 = pneg %p5020_p1 }
  0x8c   : > { %p5027_p0 = por %p5026_p11, %p5025_p9 }
  0x8e   : > { %p5028_p5 = pnand %p5027_p0, %p5021_p3 }
  0x90   : > { %5031 = shalt.err (!%p5028_p5)
}
  0x91   : > { %s5032_s29 = scalar_lea.vmem %s5523_s21, 2048  ;;  %s5248_s10 = smov [#allocation6]  }
  0x92   : > { %p5033_p8 = scmp.ne.s32.totalorder %s5523_s21, %s5032_s29  ;;  %s5037_s18 = sshll.u32 %s5248_s10, 4  ;;  %s5038_s18 = int_to_ptr.vmem [resolvable:$false] %s5037_s18 }
  0x93   : > { %s5039_s0 = scalar_lea.vmem %s5038_s18, 4096  ;;  %p5040_p10 = scmp.lt.s32.totalorder %s5523_s21, %s5038_s18 }
  0x94   : > { %p5035_p12 = pnand %p5033_p8, %p4989_p6  ;;  %p5041_p1 = scmp.lt.s32.totalorder %s5039_s0, %s5032_s29 }
  0x96   : > { %p5036_p2 = pneg %p5035_p12  ;;  %p5042_p7 = por %p5041_p1, %p5040_p10 }
  0x98   : > { %p5043_p13 = pnand %p5042_p7, %p5036_p2 }
  0x9a   : > { %5046 = shalt.err (!%p5043_p13)
}
  0x9b   : > { %4789 = dma.hbm_to_vmem [thread:$0]  (!%p5479_p4), %s5488_s17, 2048, %s5523_s21, %s5525_s5, %s7200_s6, %s7200_s6, %s7199_s9  }
  0x9c   : > { %p7201_p6 = scmp.ne.s32.totalorder %s7188_s14, 0 }
  0x9d   : > { %s308_s20 = sand.u32 (!%p7201_p6), 1, %s5217_s25   ;;  %p7202_p3 = scmp.ne.s32.totalorder (!%p7201_p6), %s7184_s11, 0 }
  0x9e   : > { %306 = sbr.rel (%p7201_p6) target bundleno = 793 (0x319), region = 36  ;;  %s4121_s2 = sshll.u32 (!%p7201_p6), %s308_s20, 7 }
  0x9f   : > { %s309_s4 = scalar_lea.sflag (!%p7201_p6), [#allocation4], %s308_s20  ;;  %s5557_s13 = scalar_lea.vmem (!%p7201_p6), [#allocation3], %s4121_s2 }
  0xa5   : > { %5176 = dma.done.wait (%p7202_p3), %s309_s4, 2048  }
  0xa6   : > { %5178 = vsyncadd (%p7202_p3), %s309_s4, 4294965248  ;;  %s317_s24 = sand.u32 1, %s5343_s8   ;;  %s5566_s14 = scalar_lea.vmem [#allocation6], %s4121_s2 }
  0xa7   : > { %s318_s17 = scalar_lea.sflag [#allocation7], %s317_s24 }
  0xa8   : > { %5180 = dma.done.wait (%p7202_p3), %s318_s17, 2048  }
  0xa9   : > { %5182 = vsyncadd (%p7202_p3), %s318_s17, 4294965248  ;;  %p7203_p4 = scmp.eq.s32.totalorder %s5343_s8, 0 }
  0xab   : > { %5184 = dma.done.wait (%p7203_p4), [#allocation7], 576   ;;  %p7204_p9 = pmov %p7203_p4 }
  0xac   : > { %p7205_p11 = pmov %p7203_p4 }
  0xad   : > { %5186 = vsyncadd (%p7204_p9), [#allocation7], 4294966720 }
  0xae   : > { %5188 = dma.done.wait (%p7205_p11), [#allocation10], 16   ;;  %p7206_p0 = pmov %p7203_p4 }
  0xaf   : > { %s4336_s11 = sshll.u32 %s5225_s27, 6  ;;  %p439_p5 = scmp.gt.s32.totalorder %s5225_s27, 0  ;;  %vm375_vm0 = vsmask.f32 256  ;;  %vm482_vm1 = vsmask.f32 4368 }
  0xb0   : > { %5190 = vsyncadd (%p7206_p0), [#allocation10], 4294967280  ;;  %s4126_s9 = sshll.u32 %s5225_s27, 3  ;;  %s5586_s6 = scalar_lea.vmem %s5566_s14, %s4336_s11 [#allocation6]  ;;  %vm374_vm3 = vcmask 57344   ;;  %vm407_vm4 = vsmask.f32 7938 }
  0xb1   : > { %s5588_s21 = scalar_select %p439_p5, 1.0, 0.0  ;;  %v793_v0 = vld [vmem:[%s5586_s6 + $0x8] sm:$0xf]  ;;  %v791_v1 = vld [vmem:[%s5586_s6] sm:$0xf]  ;;  %vm5629_vm2 = vmor %vm375_vm0, %vm482_vm1 }
  0xb2   : > { %s5592_s5 = sadd.s32 4294967295, %s4126_s9  ;;  %v794_v2 = vld [vmem:[%s5586_s6 + $0xc] sm:$0xf]  ;;  %v825_v3 = vshrl.u32 %v793_v0, 16  ;;  %v828_v4 = vshll.u32 %v793_v0, 16  ;;  %v808_v5 = vshrl.u32 %v791_v1, 16  ;;  %vm5747_vm6 = vmand %vm374_vm3, %vm375_vm0 }
  0xb3   : > { %v811_v6 = vshll.u32 %v791_v1, 16  ;;  %v792_v7 = vld [vmem:[%s5586_s6 + $0x4] sm:$0xf]  ;;  %v833_v8 = vshrl.u32 %v794_v2, 16  ;;  %v795_v10 = vld [vmem:[%s5586_s6 + $0x10] sm:$0xf]  ;;  %p442_p12 = scmp.ne.f32.partialorder %s5588_s21, %s5588_s21  ;;  %vm5784_vm7 = vmand %vm374_vm3, %vm407_vm4 }
  0xb4   : > { %v816_v9 = vshrl.u32 %v792_v7, 16  ;;  %s443_s19 = sshrl.u32 %s5588_s21, 16  ;;  %v5600_v11 = vrot.slane %v825_v3, 7  ;;  %v810_v12 = vrot.slane %v808_v5, 7  ;;  %v842_v13 = vshrl.u32 %v795_v10, 16  ;;  %p707_p8 = scmp.gt.s32.totalorder %s5592_s5, 0 }
  0xb5   : > { %v5603_v14 = vld [vmem:[%s5586_s6 + $0x18] sm:$0xf]  ;;  %v835_v15 = vrot.slane %v833_v8, 7  ;;  %v819_v17 = vshll.u32 %v792_v7, 16  ;;  %v5606_v18 = vld [vmem:[%s5586_s6 + $0x14] sm:$0xf] }
  0xb6   : > { %v818_v16 = vrot.slane %v816_v9, 7  ;;  %v830_v19 = vor.u32 %v828_v4, %v5600_v11  ;;  %v813_v20 = vor.u32 %v811_v6, %v810_v12  ;;  %s444_s15 = sand.u32 1, %s443_s19  ;;  %v845_v21 = vshll.u32 %v795_v10, 16  ;;  %v5614_v24 = vld [vmem:[%s5586_s6 + $0x1c] sm:$0xf]  ;;  %s5249_s30 = smov 4  }
  0xb7   : > { %v836_v22 = vshll.u32 %v794_v2, 16  ;;  %v859_v23 = vshrl.u32 %v5603_v14, 16  ;;  %s445_s16 = sadd.s32 32767, %s444_s15  ;;  %v840_v25 = vrot.slane %v835_v15, 4  ;;  %v5618_v27 = vrot.slane %v842_v13, 7  ;;  %p451_p2 = scmp.lt.s32.totalorder %s5225_s27, 1 }
  0xb8   : > { %949 = vrot.lane.b32.xlu1 %v830_v19, %s5249_s30  ;;  %943 = vrot.lane.b32.xlu0 %v813_v20, %s5249_s30  ;;  %v823_v26 = vrot.slane %v818_v16, 4  ;;  %v850_v28 = vshrl.u32 %v5606_v18, 16  ;;  %s446_s29 = sadd.s32 %s445_s16, %s5588_s21  ;;  %v814_v29 = vrot.slane %v810_v12, 4  ;;  %v821_v30 = vor.u32 %v819_v17, %v818_v16  ;;  %s5625_s18 = sadd.s32 8, %s4126_s9  ;;  %v5643_v36 = vld [vmem:[%s5586_s6 + $0x20] sm:$0xf] }
  0xb9   : > { %s447_s10 = sand.u32 4294901760, %s446_s29  ;;  %v862_v32 = vshll.u32 %v5603_v14, 16  ;;  %v867_v33 = vshrl.u32 %v5614_v24, 16  ;;  %v831_v34 = vrot.slane %v5600_v11, 4  ;;  %v838_v35 = vor.u32 %v836_v22, %v835_v15  ;;  %s7255_s5 = smov (!%p707_p8, %s5592_s5), 0 }
  0xba   : > { %s7253_s10 = smov (%p442_p12, %s447_s10), 2143289344  ;;  %v5646_v37 = vld [vmem:[%s5586_s6 + $0x24] sm:$0xf]  ;;  %v847_v38 = vor.u32 %v845_v21, %v5618_v27  ;;  %v5651_v39 = vrot.slane %v859_v23, 7  ;;  %v5653_v40 = vrot.slane %v850_v28, 7  ;;  %v853_v41 = vshll.u32 %v5606_v18, 16  ;;  %s5724_s16 = scalar_lea.vmem %s5557_s13, %s4336_s11 [#allocation3] }
  0xbb   : > { %s450_s0 = sshrl.u32 %s7253_s10, 16  ;;  %p721_p10 = scmp.lt.s32.totalorder %s5625_s18, 15  ;;  %v822_v42 = vsel %vm5629_vm2, %v814_v29, %v821_v30  ;;  %v5660_v43 = vrot.slane %v867_v33, 7  ;;  %v870_v44 = vshll.u32 %v5614_v24, 16  ;;  %v876_v45 = vshrl.u32 %v5643_v36, 16 }
  0xbc   : > { %953 = vrot.lane.b32.xlu1 %v840_v25, %s5249_s30  ;;  %947 = vrot.lane.b32.xlu0 %v823_v26, %s5249_s30  ;;  %s4337_s20 = sshll.u32 %s7255_s5, 3  ;;  %s714_s2 = sshll.u32 %s450_s0, 16  ;;  %v884_v46 = vshrl.u32 %v5646_v37, 16  ;;  %v5666_v47 = vld [vmem:[%s5586_s6 + $0x28] sm:$0xf]  ;;  %v848_v48 = vrot.slane %v5618_v27, 4  ;;  %v839_v53 = vsel %vm5629_vm2, %v831_v34, %v838_v35  ;;  %v864_v54 = vor.u32 %v862_v32, %v5651_v39 }
  0xbd   : > { %s711_s4 = scalar_lea.vmem %s5557_s13, %s4337_s20 [#allocation3]  ;;  %s715_s17 = sor.u32 %s714_s2, %s450_s0  ;;  %v865_v51 = vrot.slane %v5651_v39, 4  ;;  %v857_v52 = vrot.slane %v5653_v40, 4  ;;  %v855_v55 = vor.u32 %v853_v41, %v5653_v40  ;;  %v887_v58 = vshll.u32 %v5646_v37, 16  ;;  %v5687_v63 = vld [vmem:[%s5586_s6 + $0x2c] sm:$0xf] }
  0xbe   : > { %v716_v49 = vstv %s715_s17  ;;  %s1077_s9 = scalar_lea.vmem %s5566_s14, %s4337_s20 [#allocation6]  ;;  %v712_v50 = vld [vmem:[%s711_s4] sm:$0xf]  ;;  %s7257_s18 = smov (!%p721_p10, %s5625_s18), 15  ;;  %v713_v60 = vld [vmem:[%s711_s4 + $0x4] sm:$0xf]  ;;  %v893_v0 = vshrl.u32 %v5666_v47, 16  ;;  %v872_v1 = vor.u32 %v870_v44, %v5660_v43 }
  0xbf   : > { %v1078_v56 = vld [vmem:[%s1077_s9] sm:$0xf]  ;;  %v1079_v57 = vld [vmem:[%s1077_s9 + $0x4] sm:$0xf]  ;;  %v5684_v61 = vmul.bf16 %v716_v49, %v712_v50  ;;  %v878_v2 = vrot.slane %v876_v45, 7  ;;  %v5691_v3 = vrot.slane %v884_v46, 7  ;;  %v856_v10 = vsel %vm5629_vm2, %v848_v48, %v855_v55 }
  0xc0   : > { %955 = vrot.lane.b32.xlu1 %v847_v38, %s5249_s30  ;;  %945 = vrot.lane.b32.xlu0 %v822_v42, %s5249_s30  ;;  %v1080_v59 = vmul.bf16 %v1078_v56, %v716_v49  ;;  %v1081_v62 = vmul.bf16 %v1079_v57, %v716_v49  ;;  %v879_v4 = vshll.u32 %v5643_v36, 16  ;;  %s5696_s21 = scalar_select %p451_p2, 1.0, 0.0  ;;  %v5699_v9 = vld [vmem:[%s5586_s6 + $0x30] sm:$0xf]  ;;  %v5705_v11 = vmul.bf16 %v716_v49, %v713_v60 }
  0xc1   : > { %v874_v12 = vrot.slane %v5660_v43, 4  ;;  %v901_v13 = vshrl.u32 %v5687_v63, 16  ;;  %v5710_v14 = vld [vmem:[%s5586_s6 + $0x34] sm:$0xf]  ;;  %s4338_s19 = sshll.u32 %s7257_s18, 3  ;;  %v735_v16 = vshrl.u32 %v5684_v61, 16  ;;  %v889_v20 = vor.u32 %v887_v58, %v5691_v3 }
  0xc2   : > { %v1089_v5 = vshrl.u32 %v1080_v59, 16  ;;  %v1092_v6 = vshll.u32 %v1080_v59, 16  ;;  %v1097_v7 = vshrl.u32 %v1081_v62, 16  ;;  %v1100_v8 = vshll.u32 %v1081_v62, 16  ;;  %s455_s5 = sshrl.u32 %s5696_s21, 16  ;;  %p454_p1 = scmp.ne.f32.partialorder %s5696_s21, %s5696_s21 }
  0xc3   : > { %v5717_v18 = vrot.slane %v893_v0, 7  ;;  %s456_s15 = sand.u32 1, %s455_s5  ;;  %v882_v19 = vrot.slane %v878_v2, 4  ;;  %v904_v21 = vshll.u32 %v5687_v63, 16  ;;  %v910_v22 = vshrl.u32 %v5699_v9, 16  ;;  %s5743_s0 = scalar_lea.vmem %s5566_s14, %s4338_s19 [#allocation6] }
  0xc4   : > { %951 = vrot.lane.b32.xlu1 %v839_v53, %s5249_s30  ;;  %961 = vrot.lane.b32.xlu0 %v864_v54, %s5249_s30  ;;  %v1091_v15 = vrot.slane %v1089_v5, 7  ;;  %v5715_v17 = vrot.slane %v1097_v7, 7  ;;  %s457_s29 = sadd.s32 32767, %s456_s15  ;;  %vm645_vm5 = vcmask 27648   ;;  %v918_v26 = vshrl.u32 %v5710_v14, 16  ;;  %s725_s2 = scalar_lea.vmem %s5557_s13, %s4338_s19 [#allocation3] }
  0xc5   : > { %s458_s11 = sadd.s32 %s457_s29, %s5696_s21  ;;  %v738_v27 = vshll.u32 %v5684_v61, 16  ;;  %v743_v28 = vshrl.u32 %v5705_v11, 16  ;;  %v5735_v29 = vrot.slane %v901_v13, 7  ;;  %v5738_v30 = vld [vmem:[%s5586_s6 + $0x38] sm:$0xf]  ;;  %v5752_v34 = vrot.slane %v735_v16, 7  ;;  %vm5831_vm9 = vmand %vm645_vm5, %vm407_vm4 }
  0xc6   : > { %v1094_v23 = vor.u32 %v1092_v6, %v1091_v15  ;;  %v1095_v24 = vrot.slane %v1091_v15, 4  ;;  %v1102_v25 = vor.u32 %v1100_v8, %v5715_v17  ;;  %s459_s10 = sand.u32 4294901760, %s458_s11  ;;  %v383_v33 = vld [vmem:[#allocation2 + $0x18] sm:$0x1]  ;;  %v746_v35 = vshll.u32 %v5705_v11, 16  ;;  %s6826_s13 = sand.u32 1, %s5205_s22  }
  0xc7   : > { %v873_v36 = vsel %vm5629_vm2, %v865_v51, %v872_v1  ;;  %v899_v37 = vrot.slane %v5717_v18, 4  ;;  %s7259_s10 = smov (%p454_p1, %s459_s10), 2143289344  ;;  %v468_v38 = vld [vmem:[%s5724_s16 + $0x8] sm:$0xf]  ;;  %v5768_v42 = vor.u32 %v879_v4, %v878_v2  ;;  %v896_v44 = vshll.u32 %v5666_v47, 16  ;;  %s4125_s18 = sshll.u32 %s6826_s13, 6 }
  0xc8   : > { %957 = vrot.lane.b32.xlu1 %v856_v10, %s5249_s30  ;;  %1105 = vrot.lane.b32.xlu0 %v1094_v23, %s5249_s30  ;;  %v1103_v41 = vsel %vm5629_vm2, %v1095_v24, %v1102_v25  ;;  %v921_v39 = vshll.u32 %v5710_v14, 16  ;;  %v5773_v45 = vld [vmem:[%s5586_s6 + $0x3c] sm:$0xf]  ;;  %v380_v46 = vld [vmem:[#allocation2 + $0xc] sm:$0x1]  ;;  %v890_v49 = vsel %vm5629_vm2, %v882_v19, %v889_v20  ;;  %v912_v50 = vrot.slane %v910_v22, 7 }
  0xc9   : > { %v466_v48 = vld [vmem:[%s5724_s16] sm:$0xf]  ;;  %v5778_v51 = vrot.slane %v918_v26, 7  ;;  %s462_s14 = sshrl.u32 %s7259_s10, 16  ;;  %v384_v47 = vsel %vm5747_vm6, 0, %v383_v33  ;;  %v906_v55 = vor.u32 %v904_v21, %v5735_v29  ;;  %v502_v56 = vshrl.u32 %v468_v38, 16 }
  0xca   : > { %v1084_v53 = vld [vmem:[%s5743_s0] sm:$0xf]  ;;  %s728_s6 = sshll.u32 %s462_s14, 16  ;;  %385 = vst [vmem:[#allocation2 + $0x18] sm:$0x1] %v384_v47  ;;  %v505_v57 = vshll.u32 %v468_v38, 16  ;;  %v5795_v60 = vor.u32 %v738_v27, %v5752_v34  ;;  %v898_v19 = vor.u32 %v896_v44, %v5717_v18 }
  0xcb   : > { %v381_v58 = vsel %vm5747_vm6, 0, %v380_v46  ;;  %vm652_vm8 = vcmask 24576   ;;  %v415_v59 = vld [vmem:[#allocation2 + $0x20] sm:$0x1]  ;;  %v913_v61 = vshll.u32 %v5699_v9, 16  ;;  %v927_v62 = vshrl.u32 %v5738_v30, 16  ;;  %s729_s20 = sor.u32 %s728_s6, %s462_s14 }
  0xcc   : > { %963 = vrot.lane.b32.xlu1 %v873_v36, %s5249_s30  ;;  %1107 = vrot.lane.b32.xlu0 %v1103_v41, %s5249_s30  ;;  %382 = vst [vmem:[#allocation2 + $0xc] sm:$0x1] %v381_v58  ;;  %v485_v63 = vshrl.u32 %v466_v48, 16  ;;  %v891_v0 = vrot.slane %v5691_v3, 4  ;;  %v5801_v1 = vstv %s729_s20  ;;  %v5803_v2 = vrot.slane %v502_v56, 7  ;;  %vm5873_vm10 = vmand %vm652_vm8, %vm375_vm0  ;;  %s6847_s4 = scalar_lea.vmem [#allocation11], %s4125_s18 }
  0xcd   : > { %v416_v4 = vsel %vm5784_vm7, 0, %v415_v59  ;;  %v1104_v5 = vrot.slane %v5715_v17, 4  ;;  %v935_v6 = vshrl.u32 %v5773_v45, 16  ;;  %v1085_v7 = vld [vmem:[%s5743_s0 + $0x4] sm:$0xf]  ;;  %v5811_v8 = vmul.bf16 %v1084_v53, %v5801_v1  ;;  %s4358_s17 = sshll.u32 %s5225_s27, 4 }
  0xce   : > { %v488_v9 = vshll.u32 %v466_v48, 16  ;;  %417 = vst [vmem:[#allocation2 + $0x20] sm:$0x1] %v416_v4  ;;  %v916_v10 = vrot.slane %v912_v50, 4  ;;  %v923_v13 = vor.u32 %v921_v39, %v5778_v51  ;;  %v507_v14 = vor.u32 %v505_v57, %v5803_v2  ;;  %v469_v21 = vld [vmem:[%s5724_s16 + $0xc] sm:$0xf] }
  0xcf   : > { %v5818_v15 = vrot.slane %v485_v63, 7  ;;  %v907_v16 = vsel %vm5629_vm2, %v899_v37, %v906_v55  ;;  %v5826_v20 = vrot.slane %v927_v62, 7  ;;  %v930_v43 = vshll.u32 %v5738_v30, 16  ;;  %v412_v22 = vld [vmem:[#allocation2 + $0x14] sm:$0x1]  ;;  %s4325_s9 = sshll.u32 %s5229_s28, 5 }
  0xd0   : > { %965 = vrot.lane.b32.xlu1 %v874_v12, %s5249_s30  ;;  %959 = vrot.lane.b32.xlu0 %v857_v52, %s5249_s30  ;;  %v925_v40 = vrot.slane %v5778_v51, 4  ;;  %v908_v52 = vrot.slane %v5735_v29, 4  ;;  %v938_v23 = vshll.u32 %v5773_v45, 16  ;;  %v5840_v18 = vmul.bf16 %v1085_v7, %v5801_v1  ;;  %v467_v24 = vld [vmem:[%s5724_s16 + $0x4] sm:$0xf]  ;;  %s3877_s21 = sadd.s32 %s4358_s17, %s4325_s9  ;;  %s3880_s5 = sshll.u32 %s6847_s4, 4  ;;  %s6964_s5 = int_to_ptr.vmem [resolvable:$true] %s3880_s5 }
  0xd1   : > { %v5843_v25 = vor.u32 %v913_v61, %v912_v50  ;;  %v5845_v26 = vrot.slane %v935_v6, 7  ;;  %v1122_v27 = vshrl.u32 %v5811_v8, 16  ;;  %v657_v30 = vld [vmem:[#allocation2 + $0x18] sm:$0xf]  ;;  %v490_v33 = vor.u32 %v488_v9, %v5818_v15  ;;  %v386_v36 = vld [vmem:[#allocation2 + $0x24] sm:$0x1] }
  0xd2   : > { %v924_v37 = vsel %vm5629_vm2, %v916_v10, %v923_v13  ;;  %v658_v38 = vsel %vm5831_vm9, %v507_v14, %v657_v30  ;;  %v510_v44 = vshrl.u32 %v469_v21, 16  ;;  %v413_v39 = vsel %vm5784_vm7, 0, %v412_v22  ;;  %v470_v46 = vld [vmem:[%s5724_s16 + $0x10] sm:$0xf]  ;;  %v472_v58 = vld [vmem:[%s5724_s16 + $0x18] sm:$0xf] }
  0xd3   : > { %v647_v41 = vld [vmem:[#allocation2 + $0xc] sm:$0xf]  ;;  %v5860_v48 = vor.u32 %v930_v43, %v5826_v20  ;;  %v942_v50 = vrot.slane %v5845_v26, 4  ;;  %659 = vst [vmem:[#allocation2 + $0x18] sm:$0xf] %v658_v38  ;;  %v1125_v55 = vshll.u32 %v5811_v8, 16 }
  0xd4   : > { %969 = vrot.lane.b32.xlu1 %v890_v49, %s5249_s30  ;;  %967 = vrot.lane.b32.xlu0 %v5768_v42, %s5249_s30  ;;  %v933_v49 = vrot.slane %v5826_v20, 4  ;;  %v648_v53 = vsel %vm5831_vm9, %v490_v33, %v647_v41  ;;  %414 = vst [vmem:[#allocation2 + $0x14] sm:$0x1] %v413_v39  ;;  %v389_v47 = vld [vmem:[#allocation2 + $0x30] sm:$0x1]  ;;  %v1130_v56 = vshrl.u32 %v5840_v18, 16 }
  0xd5   : > { %649 = vst [vmem:[#allocation2 + $0xc] sm:$0xf] %v648_v53  ;;  %v512_v57 = vrot.slane %v510_v44, 7  ;;  %v493_v42 = vshrl.u32 %v467_v24, 16  ;;  %v5869_v59 = vrot.slane %v1122_v27, 7  ;;  %v387_v63 = vsel %vm5747_vm6, 0, %v386_v36 }
  0xd6   : > { %v661_v62 = vld [vmem:[#allocation2 + $0x20] sm:$0x1]  ;;  %v519_v4 = vshrl.u32 %v470_v46, 16  ;;  %v522_v6 = vshll.u32 %v470_v46, 16  ;;  %388 = vst [vmem:[#allocation2 + $0x24] sm:$0x1] %v387_v63 }
  0xd7   : > { %v517_v7 = vrot.slane %v512_v57, 4  ;;  %v495_v9 = vrot.slane %v493_v42, 7  ;;  %v491_v10 = vrot.slane %v5818_v15, 4  ;;  %v496_v13 = vshll.u32 %v467_v24, 16  ;;  %v471_v30 = vld [vmem:[%s5724_s16 + $0x14] sm:$0xf] }
  0xd8   : > { %975 = vrot.lane.b32.xlu1 %v907_v16, %s5249_s30  ;;  %973 = vrot.lane.b32.xlu0 %v898_v19, %s5249_s30  ;;  %v5882_v14 = vrot.slane %v519_v4, 7  ;;  %v508_v43 = vrot.slane %v5803_v2, 4  ;;  %v513_v22 = vshll.u32 %v469_v21, 16  ;;  %v390_v27 = vsel %vm5747_vm6, 0, %v389_v47  ;;  %v377_v24 = vld [vmem:[#allocation2] sm:$0x1] }
  0xd9   : > { %v662_v16 = vsel %vm5873_vm10, %v517_v7, %v661_v62  ;;  %v500_v33 = vrot.slane %v495_v9, 4  ;;  %v498_v36 = vor.u32 %v496_v13, %v495_v9  ;;  %391 = vst [vmem:[#allocation2 + $0x30] sm:$0x1] %v390_v27  ;;  %v536_v15 = vshrl.u32 %v472_v58, 16  ;;  %v473_v21 = vld [vmem:[%s5724_s16 + $0x1c] sm:$0xf] }
  0xda   : > { %v5890_v38 = vrot.slane %v1130_v56, 7  ;;  %v1133_v19 = vshll.u32 %v5840_v18, 16  ;;  %663 = vst [vmem:[#allocation2 + $0x20] sm:$0x1] %v662_v16  ;;  %v515_v41 = vor.u32 %v513_v22, %v512_v57  ;;  %v539_v2 = vshll.u32 %v472_v58, 16  ;;  %s4326_s19 = sshll.u32 %s3877_s21, 6 }
  0xdb   : > { %v654_v44 = vld [vmem:[#allocation2 + $0x14] sm:$0x1]  ;;  %v524_v39 = vor.u32 %v522_v6, %v5882_v14  ;;  %v499_v46 = vsel %vm5629_vm2, %v491_v10, %v498_v36  ;;  %v538_v53 = vrot.slane %v536_v15, 7  ;;  %v527_v47 = vshrl.u32 %v471_v30, 16  ;;  %v421_v42 = vld [vmem:[#allocation2 + $0x38] sm:$0x1] }
  0xdc   : > { %981 = vrot.lane.b32.xlu1 %v924_v37, %s5249_s30  ;;  %979 = vrot.lane.b32.xlu0 %v5843_v25, %s5249_s30  ;;  %v655_v56 = vsel %vm5873_vm10, %v500_v33, %v654_v44  ;;  %651 = vst.msk [vmem:[#allocation2 + $0x10] sm:$0xf] %vm645_vm5, %v499_v46  ;;  %v516_v37 = vsel %vm5629_vm2, %v508_v43, %v515_v41  ;;  %v530_v57 = vshll.u32 %v471_v30, 16  ;;  %v378_v58 = vsel %vm5747_vm6, 0, %v377_v24  ;;  %v418_v62 = vld [vmem:[#allocation2 + $0x2c] sm:$0x1] }
  0xdd   : > { %v1178_v63 = vld [vmem:[#allocation8] sm:$0xf]  ;;  %656 = vst [vmem:[#allocation2 + $0x14] sm:$0x1] %v655_v56  ;;  %660 = vst.msk [vmem:[#allocation2 + $0x1c] sm:$0xf] %vm645_vm5, %v516_v37  ;;  %v541_v4 = vor.u32 %v539_v2, %v538_v53  ;;  %v1127_v29 = vor.u32 %v1125_v55, %v5869_v59 }
  0xde   : > { %v525_v25 = vrot.slane %v5882_v14, 4  ;;  %v5909_v6 = vrot.slane %v527_v47, 7  ;;  %379 = vst [vmem:[#allocation2] sm:$0x1] %v378_v58  ;;  %v544_v7 = vshrl.u32 %v473_v21, 16  ;;  %v547_v13 = vshll.u32 %v473_v21, 16 }
  0xdf   : > { %v5911_v9 = vld [vmem:[#allocation8 + $0x10] sm:$0xf]  ;;  %v664_v10 = vld [vmem:[#allocation2 + $0x24] sm:$0xf]  ;;  %v741_v43 = vrot.slane %v5752_v34, 4  ;;  %v5916_v22 = vrot.slane %v743_v28, 7  ;;  %v940_v28 = vor.u32 %v938_v23, %v5845_v26 }
  0xe0   : > { %v422_v27 = vsel %vm5784_vm7, 0, %v421_v42  ;;  %971 = vrot.lane.b32.xlu1 %v891_v0, %s5249_s30  ;;  %v665_v14 = vsel %vm5831_vm9, %v524_v39, %v664_v10  ;;  %v532_v30 = vor.u32 %v530_v57, %v5909_v6  ;;  %v542_v16 = vrot.slane %v538_v53, 4  ;;  %v474_v34 = vld [vmem:[%s5724_s16 + $0x20] sm:$0xf]  ;;  %v475_v36 = vld [vmem:[%s5724_s16 + $0x24] sm:$0xf]  ;;  %1109 = vrot.lane.b32.xlu0 %v1104_v5, %s5249_s30 }
  0xe1   : > { %v546_v33 = vrot.slane %v544_v7, 7  ;;  %423 = vst [vmem:[#allocation2 + $0x38] sm:$0x1] %v422_v27  ;;  %666 = vst [vmem:[#allocation2 + $0x24] sm:$0xf] %v665_v14  ;;  %v748_v0 = vor.u32 %v746_v35, %v5916_v22  ;;  %v419_v15 = vsel %vm5784_vm7, 0, %v418_v62  ;;  %v941_v51 = vsel %vm5629_vm2, %v933_v49, %v940_v28 }
  0xe2   : > { %v671_v3 = vld [vmem:[#allocation2 + $0x30] sm:$0xf]  ;;  %vm1244_vm11 = vcmask 1043456   ;;  %v392_v24 = vld [vmem:[#allocation2 + $0x3c] sm:$0x1]  ;;  %v533_v17 = vsel %vm5629_vm2, %v525_v25, %v532_v30  ;;  %v553_v2 = vshrl.u32 %v474_v34, 16  ;;  %v1135_v62 = vor.u32 %v1133_v19, %v5890_v38 }
  0xe3   : > { %v672_v41 = vsel %vm5831_vm9, %v541_v4, %v671_v3  ;;  %v549_v5 = vor.u32 %v547_v13, %v546_v33  ;;  %v551_v45 = vrot.slane %v546_v33, 4  ;;  %420 = vst [vmem:[#allocation2 + $0x2c] sm:$0x1] %v419_v15  ;;  %4748 = vmatprep.subr.msk.bf16.mxu1 %vm1244_vm11, %v1178_v63  ;;  %4752 = vmatprep.subr.msk.bf16.mxu0 %vm1244_vm11, %v5911_v9  ;;  %v5946_v11 = vld [vmem:[#allocation8 + $0x4] sm:$0xf]  ;;  %v1246_v23 = vsel %vm1244_vm11, %v1178_v63, 0 }
  0xe4   : > { %673 = vst [vmem:[#allocation2 + $0x30] sm:$0xf] %v672_v41  ;;  %667 = vst.msk [vmem:[#allocation2 + $0x28] sm:$0xf] %vm645_vm5, %v533_v17  ;;  %v749_v35 = vsel %vm5629_vm2, %v741_v43, %v748_v0  ;;  %v556_v21 = vshll.u32 %v474_v34, 16  ;;  %983 = vrot.lane.b32.xlu1 %v925_v40, %s5249_s30  ;;  %4441 = vmatpush3.bf16.msra.mxu1 %v1246_v23  ;;  %v561_v39 = vshrl.u32 %v475_v36, 16 }
  0xe5   : > { %v550_v44 = vsel %vm5629_vm2, %v542_v16, %v549_v5  ;;  %757 = vst.msk [vmem:[#allocation2 + $0x4] sm:$0xf] %vm645_vm5, %v749_v35  ;;  %v564_v46 = vshll.u32 %v475_v36, 16  ;;  %v393_v53 = vsel %vm5747_vm6, 0, %v392_v24  ;;  %v5961_v47 = vld [vmem:[%s5724_s16 + $0x28] sm:$0xf]  ;;  %977 = vrot.lane.b32.xlu0 %v908_v52, %s5249_s30  ;;  %4749 = vmatprep.subr.msk.bf16.mxu1 %vm1244_vm11, %v5946_v11 }
  0xe6   : > { %v1128_v40 = vrot.slane %v5869_v59, 4  ;;  %v754_v42 = vld [vmem:[#allocation2] sm:$0xf]  ;;  %674 = vst.msk [vmem:[#allocation2 + $0x34] sm:$0xf] %vm645_vm5, %v550_v44  ;;  %v555_v56 = vrot.slane %v553_v2, 7 }
  0xe7   : > { %394 = vst [vmem:[#allocation2 + $0x3c] sm:$0x1] %v393_v53  ;;  %v477_v37 = vld [vmem:[%s5724_s16 + $0x2c] sm:$0xf]  ;;  %v534_v20 = vrot.slane %v5909_v6, 4  ;;  %v755_v52 = vsel %vm5831_vm9, %v5795_v60, %v754_v42  ;;  %v5982_v49 = vrot.slane %v561_v39, 7 }
  0xe8   : > { %v395_v57 = vld [vmem:[#allocation2 + $0x48] sm:$0x1]  ;;  %v5984_v58 = vld [vmem:[#allocation8 + $0x14] sm:$0xf]  ;;  %756 = vst [vmem:[#allocation2] sm:$0xf] %v755_v52  ;;  %985 = vrot.lane.b32.xlu1 %v5860_v48, %s5249_s30  ;;  %v558_v4 = vor.u32 %v556_v21, %v555_v56  ;;  %v1136_v3 = vsel %vm5629_vm2, %v1128_v40, %v1135_v62 }
  0xe9   : > { %v675_v8 = vld [vmem:[#allocation2 + $0x38] sm:$0x1]  ;;  %v559_v55 = vrot.slane %v555_v56, 4  ;;  %v5991_v59 = vsel %vm1244_vm11, %v5911_v9, 0  ;;  %v570_v63 = vshrl.u32 %v5961_v47, 16  ;;  %v566_v25 = vor.u32 %v564_v46, %v5982_v49  ;;  %987 = vrot.lane.b32.xlu0 %v941_v51, %s5249_s30  ;;  %s7225_s29 = sld [smem:[#allocation31_spill]] }
  0xea   : > { %v676_v60 = vsel %vm5873_vm10, %v551_v45, %v675_v8  ;;  %4513 = vmatpush3.bf16.msra.mxu0 %v5991_v59  ;;  %v478_v18 = vld [vmem:[%s5724_s16 + $0x30] sm:$0xf]  ;;  %v479_v19 = vld [vmem:[%s5724_s16 + $0x34] sm:$0xf]  ;;  %v668_v7 = vld [vmem:[#allocation2 + $0x2c] sm:$0x1] }
  0xeb   : > { %v398_v6 = vld [vmem:[#allocation2 + $0x54] sm:$0x1]  ;;  %677 = vst [vmem:[#allocation2 + $0x38] sm:$0x1] %v676_v60  ;;  %v572_v9 = vrot.slane %v570_v63, 7  ;;  %v578_v10 = vshrl.u32 %v477_v37, 16  ;;  %4754 = vmatprep.subr.msk.bf16.mxu0 %vm1244_vm11, %v5984_v58  ;;  %v669_v43 = vsel %vm5873_vm10, %v534_v20, %v668_v7  ;;  %v567_v27 = vsel %vm5629_vm2, %v559_v55, %v566_v25 }
  0xec   : > { %v581_v13 = vshll.u32 %v477_v37, 16  ;;  %v396_v48 = vsel %vm5747_vm6, 0, %v395_v57  ;;  %v573_v14 = vshll.u32 %v5961_v47, 16  ;;  %v424_v30 = vld [vmem:[#allocation2 + $0x44] sm:$0x1]  ;;  %v1137_v16 = vrot.slane %v5890_v38, 4  ;;  %1138 = vrot.lane.b32.xlu1 %v1127_v29, %s5249_s30 }
  0xed   : > { %397 = vst [vmem:[#allocation2 + $0x48] sm:$0x1] %v396_v48  ;;  %670 = vst [vmem:[#allocation2 + $0x2c] sm:$0x1] %v669_v43  ;;  %v576_v33 = vrot.slane %v572_v9, 4  ;;  %v6014_v34 = vrot.slane %v578_v10, 7  ;;  %989 = vrot.lane.b32.xlu0 %v942_v50, %s5249_s30 }
  0xee   : > { %681 = vst.msk [vmem:[#allocation2 + $0x40] sm:$0xf] %vm645_vm5, %v567_v27  ;;  %v587_v36 = vshrl.u32 %v478_v18, 16  ;;  %v409_v28 = vld [vmem:[#allocation2 + $0x8] sm:$0x1]  ;;  %v595_v15 = vshrl.u32 %v479_v19, 16  ;;  %v575_v2 = vor.u32 %v573_v14, %v572_v9 }
  0xef   : > { %v678_v0 = vld [vmem:[#allocation2 + $0x3c] sm:$0xf]  ;;  %v598_v24 = vshll.u32 %v479_v19, 16  ;;  %v399_v41 = vsel %vm5747_vm6, 0, %v398_v6  ;;  %v583_v17 = vor.u32 %v581_v13, %v6014_v34  ;;  %v590_v45 = vshll.u32 %v478_v18, 16  ;;  %s7226_s11 = smov %s7225_s29  ;;  %s6975_s10 = scalar_lea.hbm %s7225_s29, %s4326_s19 }
  0xf0   : > { %v679_v38 = vsel %vm5831_vm9, %v558_v4, %v678_v0  ;;  %v589_v5 = vrot.slane %v587_v36, 7  ;;  %400 = vst [vmem:[#allocation2 + $0x54] sm:$0x1] %v399_v41  ;;  %v430_v35 = vld [vmem:[#allocation2 + $0x5c] sm:$0x1]  ;;  %v597_v21 = vrot.slane %v595_v15, 7  ;;  %1142 = vrot.lane.b32.xlu1 %v1137_v16, %s5249_s30 }
  0xf1   : > { %v427_v23 = vld [vmem:[#allocation2 + $0x50] sm:$0x1]  ;;  %680 = vst [vmem:[#allocation2 + $0x3c] sm:$0xf] %v679_v38  ;;  %v425_v44 = vsel %vm5784_vm7, 0, %v424_v30  ;;  %v410_v26 = vsel %vm5784_vm7, 0, %v409_v28  ;;  %v584_v50 = vsel %vm5629_vm2, %v576_v33, %v583_v17  ;;  %1140 = vrot.lane.b32.xlu0 %v1136_v3, %s5249_s30 }
  0xf2   : > { %v593_v39 = vrot.slane %v589_v5, 4  ;;  %426 = vst [vmem:[#allocation2 + $0x44] sm:$0x1] %v425_v44  ;;  %411 = vst [vmem:[#allocation2 + $0x8] sm:$0x1] %v410_v26  ;;  %v600_v53 = vor.u32 %v598_v24, %v597_v21  ;;  %v431_v47 = vsel %vm5784_vm7, 0, %v430_v35  ;;  %v592_v42 = vor.u32 %v590_v45, %v589_v5 }
  0xf3   : > { %v401_v46 = vld [vmem:[#allocation2 + $0x60] sm:$0x1]  ;;  %688 = vst.msk [vmem:[#allocation2 + $0x4c] sm:$0xf] %vm645_vm5, %v584_v50  ;;  %v428_v51 = vsel %vm5784_vm7, 0, %v427_v23  ;;  %v750_v8 = vrot.slane %v5916_v22, 4 }
  0xf4   : > { %v685_v40 = vld [vmem:[#allocation2 + $0x48] sm:$0xf]  ;;  %432 = vst [vmem:[#allocation2 + $0x5c] sm:$0x1] %v431_v47  ;;  %429 = vst [vmem:[#allocation2 + $0x50] sm:$0x1] %v428_v51  ;;  %v601_v20 = vsel %vm5629_vm2, %v593_v39, %v600_v53 }
  0xf5   : > { %v402_v56 = vsel %vm5747_vm6, 0, %v401_v46  ;;  %v480_v37 = vld [vmem:[%s5724_s16 + $0x38] sm:$0xf]  ;;  %v686_v29 = vsel %vm5831_vm9, %v575_v2, %v685_v40  ;;  %v481_v62 = vld [vmem:[%s5724_s16 + $0x3c] sm:$0xf]  ;;  %v568_v55 = vrot.slane %v5982_v49, 4 }
  0xf6   : > { %403 = vst [vmem:[#allocation2 + $0x60] sm:$0x1] %v402_v56  ;;  %v604_v52 = vshrl.u32 %v480_v37, 16  ;;  %v607_v57 = vshll.u32 %v480_v37, 16  ;;  %687 = vst [vmem:[#allocation2 + $0x48] sm:$0xf] %v686_v29 }
  0xf7   : > { %695 = vst.msk [vmem:[#allocation2 + $0x58] sm:$0xf] %vm645_vm5, %v601_v20  ;;  %v612_v63 = vshrl.u32 %v481_v62, 16  ;;  %v615_v60 = vshll.u32 %v481_v62, 16  ;;  %v433_v4 = vld [vmem:[#allocation2 + $0x68] sm:$0x1] }
  0xf8   : > { %v692_v25 = vld [vmem:[#allocation2 + $0x54] sm:$0xf]  ;;  %v606_v18 = vrot.slane %v604_v52, 7  ;;  %v434_v19 = vsel %vm5784_vm7, 0, %v433_v4  ;;  %v585_v6 = vrot.slane %v6014_v34, 4  ;;  %v602_v7 = vrot.slane %v597_v21, 4 }
  0xf9   : > { %v693_v22 = vsel %vm5831_vm9, %v592_v42, %v692_v25  ;;  %v614_v49 = vrot.slane %v612_v63, 7  ;;  %435 = vst [vmem:[#allocation2 + $0x68] sm:$0x1] %v434_v19  ;;  %v682_v9 = vld [vmem:[#allocation2 + $0x44] sm:$0x1]  ;;  %vm1015_vm12 = vcmask 60448  }
  0xfa   : > { %694 = vst [vmem:[#allocation2 + $0x54] sm:$0xf] %v693_v22  ;;  %v758_v10 = vld [vmem:[#allocation2 + $0x8] sm:$0x1]  ;;  %v609_v13 = vor.u32 %v607_v57, %v606_v18  ;;  %v610_v48 = vrot.slane %v606_v18, 4  ;;  %v683_v43 = vsel %vm5873_vm10, %v568_v55, %v682_v9  ;;  %vm6089_vm13 = vmand %vm1015_vm12, %vm407_vm4  ;;  %vm1022_vm14 = vcmask 57376  }
  0xfb   : > { %v759_v27 = vsel %vm5873_vm10, %v750_v8, %v758_v10  ;;  %v617_v14 = vor.u32 %v615_v60, %v614_v49  ;;  %v726_v30 = vld [vmem:[%s725_s2] sm:$0xf]  ;;  %684 = vst [vmem:[#allocation2 + $0x44] sm:$0x1] %v683_v43  ;;  %v696_v16 = vld [vmem:[#allocation2 + $0x5c] sm:$0x1]  ;;  %vm6098_vm15 = vmand %vm1022_vm14, %vm375_vm0 }
  0xfc   : > { %760 = vst [vmem:[#allocation2 + $0x8] sm:$0x1] %v759_v27  ;;  %v689_v33 = vld [vmem:[#allocation2 + $0x50] sm:$0x1]  ;;  %v697_v34 = vsel %vm5873_vm10, %v602_v7, %v696_v16  ;;  %v619_v0 = vrot.slane %v614_v49, 4  ;;  %v732_v41 = vmul.bf16 %v5801_v1, %v726_v30  ;;  %v6114_v7 = vsel %vm1244_vm11, %v5946_v11, 0 }
  0xfd   : > { %v690_v36 = vsel %vm5873_vm10, %v585_v6, %v689_v33  ;;  %v699_v28 = vld [vmem:[#allocation2 + $0x60] sm:$0xf]  ;;  %v618_v3 = vsel %vm5629_vm2, %v610_v48, %v617_v14  ;;  %v727_v15 = vld [vmem:[%s725_s2 + $0x4] sm:$0xf]  ;;  %698 = vst [vmem:[#allocation2 + $0x5c] sm:$0x1] %v697_v34 }
  0xfe   : > { %691 = vst [vmem:[#allocation2 + $0x50] sm:$0x1] %v690_v36  ;;  %v700_v24 = vsel %vm5831_vm9, %v609_v13, %v699_v28  ;;  %702 = vst.msk [vmem:[#allocation2 + $0x64] sm:$0xf] %vm645_vm5, %v618_v3  ;;  %v733_v17 = vmul.bf16 %v5801_v1, %v727_v15  ;;  %v762_v45 = vshrl.u32 %v732_v41, 16  ;;  %v765_v39 = vshll.u32 %v732_v41, 16 }
  0xff   : > { %701 = vst [vmem:[#allocation2 + $0x60] sm:$0xf] %v700_v24  ;;  %v404_v21 = vld [vmem:[#allocation2 + $0x6c] sm:$0x1]  ;;  %v436_v46 = vld [vmem:[#allocation2 + $0x74] sm:$0x1] }
 0x100   : > { %v703_v38 = vld [vmem:[#allocation2 + $0x68] sm:$0x1]  ;;  %v770_v35 = vshrl.u32 %v733_v17, 16  ;;  %v764_v23 = vrot.slane %v762_v45, 7  ;;  %v773_v2 = vshll.u32 %v733_v17, 16  ;;  %v405_v44 = vsel %vm5747_vm6, 0, %v404_v21 }
 0x101   : > { %v704_v5 = vsel %vm5873_vm10, %v619_v0, %v703_v38  ;;  %406 = vst [vmem:[#allocation2 + $0x6c] sm:$0x1] %v405_v44  ;;  %v437_v1 = vsel %vm5784_vm7, 0, %v436_v46  ;;  %v1027_v54 = vld [vmem:[#allocation2 + $0x18] sm:$0xf]  ;;  %v6118_v10 = vsel %vm1244_vm11, %v5984_v58, 0 }
 0x102   : > { %705 = vst [vmem:[#allocation2 + $0x68] sm:$0x1] %v704_v5  ;;  %v768_v26 = vrot.slane %v764_v23, 4  ;;  %v772_v50 = vrot.slane %v770_v35, 7  ;;  %438 = vst [vmem:[#allocation2 + $0x74] sm:$0x1] %v437_v1  ;;  %v767_v51 = vor.u32 %v765_v39, %v764_v23 }
 0x103   : > { %v1017_v29 = vld [vmem:[#allocation2 + $0xc] sm:$0xf]  ;;  %v1031_v62 = vld [vmem:[#allocation2 + $0x20] sm:$0x1]  ;;  %v1024_v8 = vld [vmem:[#allocation2 + $0x14] sm:$0x1] }
 0x104   : > { %v775_v53 = vor.u32 %v773_v2, %v772_v50  ;;  %v777_v40 = vrot.slane %v772_v50, 4  ;;  %v6106_v25 = vld [vmem:[#allocation8 + $0x18] sm:$0xf]  ;;  %v6108_v18 = vld [vmem:[#allocation8 + $0x8] sm:$0xf]  ;;  %vm1778_vm3 = vcmask 1046532  }
 0x105   : > { %v6110_v19 = vld [vmem:[#allocation8 + $0x1c] sm:$0xf]  ;;  %v1034_v6 = vld [vmem:[#allocation2 + $0x24] sm:$0xf]  ;;  %v1041_v9 = vld [vmem:[#allocation2 + $0x30] sm:$0xf] }
 0x106   : > { %v776_v47 = vsel %vm5629_vm2, %v768_v26, %v775_v53  ;;  %v6122_v13 = vsel %vm1244_vm11, %v6106_v25, 0  ;;  %v6126_v48 = vsel %vm1244_vm11, %v6108_v18, 0  ;;  %v6130_v43 = vsel %vm1244_vm11, %v6110_v19, 0  ;;  %v6137_v36 = vld [vmem:[#allocation8 + $0xc] sm:$0xf]  ;;  %s3856_s0 = scalar_lea.sflag [#allocation5], %s6826_s13 }
 0x107   : > { %785 = vst.msk [vmem:[#allocation2 + $0x70] sm:$0xf] %vm645_vm5, %v776_v47  ;;  %vm1385_vm0 = vsmask.f32 3328  ;;  %vm1386_vm1 = vsmask.f32 7440 }
 0x108   : > { %v782_v42 = vld [vmem:[#allocation2 + $0x6c] sm:$0xf]  ;;  %v6139_v28 = vld [vmem:[#allocation8 + $0x20] sm:$0xf]  ;;  %v1114_v2 = vld [vmem:[#allocation2] sm:$0xf] }
 0x109   : > { %v783_v32 = vsel %vm5831_vm9, %v767_v51, %v782_v42  ;;  %v786_v56 = vld [vmem:[#allocation2 + $0x74] sm:$0x1]  ;;  %v6155_v26 = vsel %vm1244_vm11, %v6137_v36, 0  ;;  %v6159_v50 = vsel %vm1244_vm11, %v6139_v28, 0  ;;  %vm1777_vm2 = vcmask 1042432   ;;  %vm6184_vm6 = vmor %vm1385_vm0, %vm1386_vm1  ;;  %s5047_s14 = scalar_lea.vmem %s6964_s5, 1024 }
 0x10a   : > { %784 = vst [vmem:[#allocation2 + $0x6c] sm:$0xf] %v783_v32  ;;  %v787_v37 = vsel %vm5873_vm10, %v777_v40, %v786_v56  ;;  %vm1219_vm4 = vcmask 64512   ;;  %vm6207_vm7 = vmor %vm1777_vm2, %vm1778_vm3  ;;  %vm3744_vm9 = vcmask 31744   ;;  %p5048_p7 = scmp.ne.s32.totalorder %s6964_s5, %s5047_s14  ;;  %p7227_p13 = scmp.ne.s32.totalorder %s7185_s12, 0 }
 0x10b   : > { %788 = vst [vmem:[#allocation2 + $0x74] sm:$0x1] %v787_v37  ;;  %s5250_s6 = smov [#allocation11]  }
 0x10c   : > { %p5049_p6 = pnand %p5048_p7, %p7227_p13  ;;  %s5051_s20 = sshll.u32 %s5250_s6, 4  ;;  %s5052_s20 = int_to_ptr.vmem [resolvable:$false] %s5051_s20 }
 0x10d   : > { %s5053_s2 = scalar_lea.vmem %s5052_s20, 2048  ;;  %p5054_p4 = scmp.lt.s32.totalorder %s6964_s5, %s5052_s20 }
 0x10e   : > { %p5050_p3 = pneg %p5049_p6  ;;  %p5055_p9 = scmp.lt.s32.totalorder %s5053_s2, %s5047_s14 }
 0x110   : > { %p5056_p11 = por %p5055_p9, %p5054_p4 }
 0x112   : > { %p5057_p0 = pnand %p5056_p11, %p5050_p3 }
 0x12a   : > { %v950_v20 = vpop.permute.xlu1 %949  ;;  %v944_v52 = vpop.permute.xlu0 %943 }
 0x12b   : > { %v1028_v12 = vsel %vm6089_vm13, %v950_v20, %v1027_v54  ;;  %v1018_v61 = vsel %vm6089_vm13, %v944_v52, %v1017_v29 }
 0x12c   : > { %1029 = vst [vmem:[#allocation2 + $0x18] sm:$0xf] %v1028_v12  ;;  %1019 = vst [vmem:[#allocation2 + $0xc] sm:$0xf] %v1018_v61 }
 0x12e   : > { %v954_v55 = vpop.permute.xlu1 %953  ;;  %v948_v63 = vpop.permute.xlu0 %947 }
 0x12f   : > { %v1032_v60 = vsel %vm6098_vm15, %v954_v55, %v1031_v62  ;;  %v1025_v4 = vsel %vm6098_vm15, %v948_v63, %v1024_v8 }
 0x130   : > { %1033 = vst [vmem:[#allocation2 + $0x20] sm:$0x1] %v1032_v60  ;;  %1026 = vst [vmem:[#allocation2 + $0x14] sm:$0x1] %v1025_v4 }
 0x132   : > { %v956_v22 = vpop.permute.xlu1 %955  ;;  %v946_v49 = vpop.permute.xlu0 %945 }
 0x133   : > { %v1035_v11 = vsel %vm6089_vm13, %v956_v22, %v1034_v6  ;;  %1021 = vst.msk [vmem:[#allocation2 + $0x10] sm:$0xf] %vm1015_vm12, %v946_v49  ;;  %v2198_v27 = vld [vmem:[#allocation2 + $0xc] sm:$0xf]  ;;  %v2201_v58 = vld [vmem:[#allocation2 + $0x18] sm:$0xf] }
 0x134   : > { %1036 = vst [vmem:[#allocation2 + $0x24] sm:$0xf] %v1035_v11  ;;  %v2223_v14 = vshrl.u32 %v2198_v27, 16  ;;  %v2226_v30 = vshll.u32 %v2198_v27, 16  ;;  %v2247_v16 = vshrl.u32 %v2201_v58, 16  ;;  %v2250_v33 = vshll.u32 %v2201_v58, 16 }
 0x135   : > { %v6135_v34 = vld [vmem:[#allocation2 + $0xc] sm:$0xe]  ;;  %v6141_v17 = vld [vmem:[#allocation2 + $0x18] sm:$0xe] }
 0x136   : > { %v952_v3 = vpop.permute.xlu1 %951  ;;  %v962_v0 = vpop.permute.xlu0 %961  ;;  %v2225_v15 = vrot.slane %v2223_v14, 4  ;;  %v2228_v24 = vrot.slane %v2226_v30, 5  ;;  %v2249_v41 = vrot.slane %v2247_v16, 4  ;;  %v2252_v38 = vrot.slane %v2250_v33, 5  ;;  %v6150_v23 = vld [vmem:[#allocation2 + $0xc] sm:$0xf] }
 0x137   : > { %1030 = vst.msk [vmem:[#allocation2 + $0x1c] sm:$0xf] %vm1015_vm12, %v952_v3  ;;  %v1042_v5 = vsel %vm6089_vm13, %v962_v0, %v1041_v9  ;;  %v6146_v45 = vld [vmem:[#allocation2 + $0x14] sm:$0x1]  ;;  %v6148_v35 = vld [vmem:[#allocation2 + $0x20] sm:$0x1] }
 0x138   : > { %1043 = vst [vmem:[#allocation2 + $0x30] sm:$0xf] %v1042_v5  ;;  %v2229_v21 = vor.u32 %v2228_v24, %v2225_v15  ;;  %v2242_v44 = vshll.u32 %v6146_v45, 16  ;;  %v2616_v39 = vrot.slane %v6146_v45, 5  ;;  %v2266_v46 = vshll.u32 %v6148_v35, 16 }
 0x139   : > { %v4226_v53 = vrot.slane %v6135_v34, 9  ;;  %v4227_v1 = vrot.slane %v6141_v17, 9  ;;  %v2253_v40 = vor.u32 %v2252_v38, %v2249_v41  ;;  %v2623_v42 = vrot.slane %v6148_v35, 5  ;;  %v1045_v30 = vld [vmem:[#allocation2 + $0x38] sm:$0x1] }
 0x13a   : > { %v958_v47 = vpop.permute.xlu1 %957  ;;  %v6165_v51 = vld [vmem:[#allocation2 + $0x10] sm:$0xf]  ;;  %v1413_v32 = vshrl.u32 %v6150_v23, 16  ;;  %v1106_v56 = vpop.permute.xlu0 %1105  ;;  %v2230_v37 = vrot.slane %v2229_v21, 4  ;;  %v1416_v20 = vshll.u32 %v6150_v23, 16  ;;  %v2244_v12 = vrot.slane %v2242_v44, 5 }
 0x13b   : > { %1037 = vst.msk [vmem:[#allocation2 + $0x28] sm:$0xf] %vm1015_vm12, %v958_v47  ;;  %v2232_v54 = vshll.u32 %v6165_v51, 16  ;;  %v2236_v29 = vshrl.u32 %v6165_v51, 16  ;;  %v1115_v52 = vsel %vm6089_vm13, %v1106_v56, %v1114_v2  ;;  %v2613_v61 = vrot.slane %v6165_v51, 5 }
 0x13c   : > { %v2204_v62 = vld [vmem:[#allocation2 + $0x24] sm:$0xf]  ;;  %1116 = vst [vmem:[#allocation2] sm:$0xf] %v1115_v52  ;;  %v2254_v22 = vrot.slane %v2253_v40, 4  ;;  %v2268_v49 = vrot.slane %v2266_v46, 5 }
 0x13d   : > { %v2234_v8 = vrot.slane %v2232_v54, 5  ;;  %v2238_v55 = vrot.slane %v2236_v29, 4  ;;  %v2271_v63 = vshrl.u32 %v2204_v62, 16  ;;  %v2274_v60 = vshll.u32 %v2204_v62, 16  ;;  %v1038_v24 = vld [vmem:[#allocation2 + $0x2c] sm:$0x1] }
 0x13e   : > { %v964_v4 = vpop.permute.xlu1 %963  ;;  %v6176_v6 = vld [vmem:[#allocation2 + $0x1c] sm:$0xf]  ;;  %v1108_v9 = vpop.permute.xlu0 %1107  ;;  %v6188_v15 = vrot.slane %v1413_v32, 4  ;;  %v2615_v47 = vrot.slane %v2613_v61, 4  ;;  %v1069_v23 = vld [vmem:[#allocation2 + $0x60] sm:$0xf] }
 0x13f   : > { %1044 = vst.msk [vmem:[#allocation2 + $0x34] sm:$0xf] %vm1015_vm12, %v964_v4  ;;  %v2239_v11 = vor.u32 %v2238_v55, %v2234_v8  ;;  %v2256_v27 = vshll.u32 %v6176_v6, 16  ;;  %v2260_v58 = vshrl.u32 %v6176_v6, 16  ;;  %v2207_v14 = vld [vmem:[#allocation2 + $0x30] sm:$0xf]  ;;  %v2235_v32 = vsel %vm6184_vm6, %v2230_v37, %v2234_v8 }
 0x140   : > { %1117 = vst.msk [vmem:[#allocation2 + $0x4] sm:$0xf] %vm1015_vm12, %v1108_v9  ;;  %v2273_v33 = vrot.slane %v2271_v63, 4  ;;  %v2276_v3 = vrot.slane %v2274_v60, 5  ;;  %v2295_v0 = vshrl.u32 %v2207_v14, 16  ;;  %v2298_v2 = vshll.u32 %v2207_v14, 16 }
 0x141   : > { %v2240_v41 = vrot.slane %v2239_v11, 4  ;;  %v2258_v38 = vrot.slane %v2256_v27, 5  ;;  %v2262_v5 = vrot.slane %v2260_v58, 4  ;;  %v2620_v44 = vrot.slane %v6176_v6, 5  ;;  %v1048_v62 = vld [vmem:[#allocation2 + $0x3c] sm:$0xf] }
 0x142   : > { %v966_v21 = vpop.permute.xlu1 %965  ;;  %v6191_v46 = vld [vmem:[#allocation2 + $0x28] sm:$0xf]  ;;  %v960_v56 = vpop.permute.xlu0 %959  ;;  %v2277_v63 = vor.u32 %v2276_v3, %v2273_v33  ;;  %v2297_v9 = vrot.slane %v2295_v0, 4  ;;  %v2300_v11 = vrot.slane %v2298_v2, 5 }
 0x143   : > { %v1046_v40 = vsel %vm6098_vm15, %v966_v21, %v1045_v30  ;;  %v2245_v54 = vsel %vm6184_vm6, %v2240_v41, %v2244_v12  ;;  %v2263_v29 = vor.u32 %v2262_v5, %v2258_v38  ;;  %v1039_v52 = vsel %vm6098_vm15, %v960_v56, %v1038_v24  ;;  %v6211_v12 = vld [vmem:[#allocation2] sm:$0xf]  ;;  %v1055_v0 = vld [vmem:[#allocation2 + $0x48] sm:$0xf] }
 0x144   : > { %1047 = vst [vmem:[#allocation2 + $0x38] sm:$0x1] %v1046_v40  ;;  %v4210_v55 = vcombine.low %v2235_v32, %v2245_v54  ;;  %v2280_v60 = vshll.u32 %v6191_v46, 16  ;;  %1040 = vst [vmem:[#allocation2 + $0x2c] sm:$0x1] %v1039_v52  ;;  %v2284_v6 = vshrl.u32 %v6191_v46, 16  ;;  %v2259_v27 = vsel %vm6184_vm6, %v2254_v22, %v2258_v38 }
 0x145   : > { %v2264_v4 = vrot.slane %v2263_v29, 4  ;;  %v2622_v58 = vrot.slane %v2620_v44, 4  ;;  %v2301_v5 = vor.u32 %v2300_v11, %v2297_v9  ;;  %v4901_v38 = vld [vmem:[#allocation2 + $0xc] sm:$0xff]   ;;  %v4902_v40 = vld [vmem:[#allocation2 + $0x18] sm:$0xff]   ;;  %v6233_v32 = vsel %vm6207_vm7, %v4226_v53, %v2613_v61 }
 0x146   : > { %v970_v8 = vpop.permute.xlu1 %969  ;;  %4514 = vmatprep.mubr.msk.bf16.mxu0 %vm1219_vm4, %v4210_v55  ;;  %v6216_v14 = vrot.slane %v2280_v60, 5  ;;  %v6218_v30 = vld [vmem:[#allocation2 + $0x34] sm:$0xf]  ;;  %v968_v33 = vpop.permute.xlu0 %967  ;;  %v2286_v41 = vrot.slane %v2284_v6, 4  ;;  %v6238_v54 = vrot.slane %v2277_v63, 4  ;;  %v6244_v52 = vsel %vm6207_vm7, %v2615_v47, %v2616_v39 }
 0x147   : > { %1051 = vst.msk [vmem:[#allocation2 + $0x40] sm:$0xf] %vm1015_vm12, %v970_v8  ;;  %v4900_v3 = vld [vmem:[#allocation2] sm:$0xff]   ;;  %v2269_v24 = vsel %vm6184_vm6, %v2264_v4, %v2268_v49  ;;  %v2304_v2 = vshll.u32 %v6218_v30, 16  ;;  %v1049_v22 = vsel %vm6089_vm13, %v968_v33, %v1048_v62  ;;  %v2308_v56 = vshrl.u32 %v6218_v30, 16 }
 0x148   : > { %v4211_v21 = vcombine.low %v2259_v27, %v2269_v24  ;;  %v6235_v49 = vld [vmem:[#allocation2 + $0x4] sm:$0xf]  ;;  %1050 = vst [vmem:[#allocation2 + $0x3c] sm:$0xf] %v1049_v22  ;;  %4442 = vmatprep.mubr.msk.bf16.mxu1 %vm1219_vm4, %v4900_v3  ;;  %v6250_v34 = vsel %vm6207_vm7, %v4227_v1, %v2620_v44  ;;  %v2287_v51 = vor.u32 %v2286_v41, %v6216_v14  ;;  %v1389_v17 = vshrl.u32 %v6211_v12, 16 }
 0x149   : > { %v2306_v29 = vrot.slane %v2304_v2, 5  ;;  %4443 = vmatmul.mubr.msk.bf16.vlgmr.msra.gmra.mrb[0].mxu1 %vm1219_vm4, %v4901_v38  ;;  %v2310_v61 = vrot.slane %v2308_v56, 4  ;;  %v6259_v45 = vsel %vm6207_vm7, %v2622_v58, %v2623_v42  ;;  %v6261_v39 = vld [vmem:[#allocation2 + $0x24] sm:$0xe]  ;;  %v2283_v35 = vsel %vm6184_vm6, %v6238_v54, %v6216_v14  ;;  %v1062_v6 = vld [vmem:[#allocation2 + $0x54] sm:$0xf] }
 0x14a   : > { %v976_v53 = vpop.permute.xlu1 %975  ;;  %4515 = vmatmul.mubr.msk.bf16.vlgmr.msra.gmra.mrb[0].mxu0 %vm1219_vm4, %v4211_v21  ;;  %v974_v1 = vpop.permute.xlu0 %973  ;;  %4459 = vmatpush3.bf16.msra.mxu1 %v6114_v7  ;;  %v2302_v42 = vrot.slane %v2301_v5, 4  ;;  %v2627_v47 = vrot.slane %v6191_v46, 5  ;;  %v1392_v62 = vshll.u32 %v6211_v12, 16  ;;  %v1398_v4 = vshll.u32 %v6235_v49, 16  ;;  %v1052_v3 = vld [vmem:[#allocation2 + $0x44] sm:$0x1] }
 0x14b   : > { %1058 = vst.msk [vmem:[#allocation2 + $0x4c] sm:$0xf] %vm1015_vm12, %v976_v53  ;;  %4446 = vmatprep.mubr.msk.bf16.mxu1 %vm1219_vm4, %v4902_v40  ;;  %v6271_v44 = vld [vmem:[#allocation2 + $0x38] sm:$0x1]  ;;  %v1056_v55 = vsel %vm6089_vm13, %v974_v1, %v1055_v0  ;;  %4531 = vmatpush3.bf16.msra.mxu0 %v6118_v10  ;;  %v2206_v7 = vld [vmem:[#allocation2 + $0x2c] sm:$0x1]  ;;  %v2311_v63 = vor.u32 %v2310_v61, %v2306_v29 }
 0x14c   : > { %v2314_v60 = vshll.u32 %v6271_v44, 16  ;;  %4750 = vmatprep.subr.msk.bf16.mxu1 %vm1244_vm11, %v6108_v18  ;;  %1057 = vst [vmem:[#allocation2 + $0x48] sm:$0xf] %v1056_v55  ;;  %v2290_v9 = vshll.u32 %v2206_v7, 16  ;;  %4755 = vmatprep.subr.msk.bf16.mxu0 %vm1244_vm11, %v6106_v25  ;;  %v4228_v46 = vrot.slane %v6261_v39, 9  ;;  %v2630_v11 = vrot.slane %v2206_v7, 5 }
 0x14d   : > { %v1391_v12 = vrot.slane %v1389_v17, 4  ;;  %v2288_v8 = vrot.slane %v2287_v51, 4  ;;  %v2312_v27 = vrot.slane %v2311_v63, 4  ;;  %v1394_v14 = vrot.slane %v1392_v62, 5  ;;  %v4903_v5 = vld [vmem:[#allocation2 + $0x24] sm:$0xff]   ;;  %v4904_v56 = vld [vmem:[#allocation2 + $0x30] sm:$0xff]  }
 0x14e   : > { %v982_v10 = vpop.permute.xlu1 %981  ;;  %v2316_v58 = vrot.slane %v2314_v60, 5  ;;  %v980_v33 = vpop.permute.xlu0 %979  ;;  %v2292_v18 = vrot.slane %v2290_v9, 5  ;;  %v2307_v0 = vsel %vm6184_vm6, %v2302_v42, %v2306_v29  ;;  %v2629_v24 = vrot.slane %v2627_v47, 4  ;;  %v2582_v21 = vld [vmem:[#allocation2 + $0x30] sm:$0xe] }
 0x14f   : > { %1065 = vst.msk [vmem:[#allocation2 + $0x58] sm:$0xf] %vm1015_vm12, %v982_v10  ;;  %v1402_v25 = vshrl.u32 %v6235_v49, 16  ;;  %v1063_v41 = vsel %vm6089_vm13, %v980_v33, %v1062_v6  ;;  %v1395_v22 = vor.u32 %v1394_v14, %v1391_v12  ;;  %v6293_v38 = vrot.slane %v1398_v4, 5  ;;  %v1118_v40 = vld [vmem:[#allocation2 + $0x8] sm:$0x1] }
 0x150   : > { %v2317_v2 = vsel %vm6184_vm6, %v2312_v27, %v2316_v58  ;;  %1064 = vst [vmem:[#allocation2 + $0x54] sm:$0xf] %v1063_v41  ;;  %v2293_v54 = vsel %vm6184_vm6, %v2288_v8, %v2292_v18  ;;  %v6299_v53 = vsel %vm6207_vm7, %v2629_v24, %v2630_v11  ;;  %v6303_v61 = vld [vmem:[#allocation2 + $0x10] sm:$0xf]  ;;  %v4234_v1 = vcombine.low %v6233_v32, %v6244_v52  ;;  %v1066_v42 = vld [vmem:[#allocation2 + $0x5c] sm:$0x1] }
 0x151   : > { %v4213_v29 = vcombine.low %v2307_v0, %v2317_v2  ;;  %v6301_v51 = vrot.slane %v1402_v25, 4  ;;  %4447 = vmatmul.mubr.msk.bf16.gmra.mrb[4].mxu1 %vm1219_vm4, %v4903_v5  ;;  %v4212_v17 = vcombine.low %v2283_v35, %v2293_v54  ;;  %v6308_v62 = vrot.slane %v1395_v22, 4  ;;  %v6311_v7 = vld [vmem:[#allocation2 + $0x3c] sm:$0xe]  ;;  %v1059_v4 = vld [vmem:[#allocation2 + $0x50] sm:$0x1] }
 0x152   : > { %v972_v39 = vpop.permute.xlu1 %971  ;;  %v2634_v55 = vrot.slane %v6218_v30, 5  ;;  %v1110_v60 = vpop.permute.xlu0 %1109  ;;  %4450 = vmatprep.mubr.msk.bf16.mxu1 %vm1219_vm4, %v4904_v56  ;;  %v4235_v35 = vcombine.low %v6250_v34, %v6259_v45  ;;  %v6320_v32 = vsel %vm6207_vm7, %v4228_v46, %v2627_v47  ;;  %v4229_v52 = vrot.slane %v2582_v21, 9  ;;  %v6322_v6 = vld [vmem:[#allocation2 + $0x40] sm:$0xf]  ;;  %v1367_v10 = vld [vmem:[#allocation2 + $0x18] sm:$0xf] }
 0x153   : > { %v1053_v63 = vsel %vm6098_vm15, %v972_v39, %v1052_v3  ;;  %v1119_v30 = vsel %vm6098_vm15, %v1110_v60, %v1118_v40  ;;  %4518 = vmatprep.mubr.msk.bf16.mxu0 %vm1219_vm4, %v4212_v17  ;;  %v4236_v9 = vcombine.low %v6320_v32, %v6299_v53  ;;  %v2637_v11 = vrot.slane %v6271_v44, 5  ;;  %v6336_v8 = vld [vmem:[#allocation2 + $0x14] sm:$0x1]  ;;  %v6350_v18 = vld [vmem:[#allocation2 + $0x1c] sm:$0xf]  ;;  %v4906_v25 = vld [vmem:[#allocation2 + $0x48] sm:$0xff]  }
 0x154   : > { %1054 = vst [vmem:[#allocation2 + $0x44] sm:$0x1] %v1053_v63  ;;  %v1418_v12 = vrot.slane %v1416_v20, 5  ;;  %1120 = vst [vmem:[#allocation2 + $0x8] sm:$0x1] %v1119_v30  ;;  %4519 = vmatmul.mubr.msk.bf16.gmra.mrb[4].mxu0 %vm1219_vm4, %v4213_v29  ;;  %v1405_v47 = vor.u32 %v6301_v51, %v6293_v38  ;;  %v4230_v46 = vrot.slane %v6311_v7, 9  ;;  %v1401_v20 = vsel %vm6184_vm6, %v6308_v62, %v6293_v38 }
 0x155   : > { %v1422_v27 = vshll.u32 %v6303_v61, 16  ;;  %v1426_v58 = vshrl.u32 %v6303_v61, 16  ;;  %4532 = vmatprep.mubr.msk.bf16.mxu0 %vm1219_vm4, %v4234_v1  ;;  %v6347_v14 = vsel %vm6207_vm7, %v4229_v52, %v2634_v55  ;;  %v2636_v33 = vrot.slane %v2634_v55, 4  ;;  %v6357_v22 = vld [vmem:[#allocation2 + $0x20] sm:$0x1] }
 0x156   : > { %v984_v44 = vpop.permute.xlu1 %983  ;;  %v2641_v3 = vrot.slane %v6322_v6, 5  ;;  %v1419_v41 = vor.u32 %v1418_v12, %v6188_v15  ;;  %v4905_v40 = vld [vmem:[#allocation2 + $0x3c] sm:$0xff]   ;;  %v1432_v56 = vshll.u32 %v6336_v8, 16  ;;  %v1437_v54 = vshrl.u32 %v1367_v10, 16  ;;  %v1073_v52 = vld [vmem:[#allocation2 + $0x68] sm:$0x1] }
 0x157   : > { %v1067_v0 = vsel %vm6098_vm15, %v984_v44, %v1066_v42  ;;  %v978_v24 = vpop.permute.xlu0 %977  ;;  %v6355_v5 = vrot.slane %v1422_v27, 5  ;;  %v1428_v2 = vrot.slane %v1426_v58, 4  ;;  %v1440_v29 = vshll.u32 %v1367_v10, 16  ;;  %v6374_v10 = vld [vmem:[#allocation2 + $0x4c] sm:$0xf] }
 0x158   : > { %1068 = vst [vmem:[#allocation2 + $0x5c] sm:$0x1] %v1067_v0  ;;  %v1060_v21 = vsel %vm6098_vm15, %v978_v24, %v1059_v4  ;;  %v6364_v51 = vsel %vm6207_vm7, %v2636_v33, %v2637_v11  ;;  %v1446_v39 = vshll.u32 %v6350_v18, 16  ;;  %v1450_v17 = vshrl.u32 %v6350_v18, 16  ;;  %v2585_v32 = vld [vmem:[#allocation2 + $0x54] sm:$0xe] }
 0x159   : > { %1061 = vst [vmem:[#allocation2 + $0x50] sm:$0x1] %v1060_v21  ;;  %v1429_v15 = vor.u32 %v1428_v2, %v6355_v5  ;;  %4451 = vmatmul.mubr.msk.bf16.gmra.mrb[8].mxu1 %vm1219_vm4, %v4905_v40  ;;  %v2643_v42 = vrot.slane %v2641_v3, 4  ;;  %v1439_v55 = vrot.slane %v1437_v54, 4  ;;  %v1442_v7 = vrot.slane %v1440_v29, 5 }
 0x15a   : > { %v986_v1 = vpop.permute.xlu1 %985  ;;  %v1456_v63 = vshll.u32 %v6357_v22, 16  ;;  %4454 = vmatprep.mubr.msk.bf16.mxu1 %vm1219_vm4, %v4906_v25  ;;  %v1448_v11 = vrot.slane %v1446_v39, 5  ;;  %v1452_v12 = vrot.slane %v1450_v17, 4  ;;  %v1420_v44 = vrot.slane %v1419_v41, 4  ;;  %v2584_v21 = vld [vmem:[#allocation2 + $0x48] sm:$0xe] }
 0x15b   : > { %v1070_v60 = vsel %vm6089_vm13, %v986_v1, %v1069_v23  ;;  %v988_v4 = vpop.permute.xlu0 %987  ;;  %v2212_v6 = vld [vmem:[#allocation2 + $0x44] sm:$0x1]  ;;  %v1430_v30 = vrot.slane %v1429_v15, 4  ;;  %v6377_v27 = vld [vmem:[#allocation2 + $0x8] sm:$0x1]  ;;  %v1434_v33 = vrot.slane %v1432_v56, 5  ;;  %v1443_v0 = vor.u32 %v1442_v7, %v1439_v55 }
 0x15c   : > { %1071 = vst [vmem:[#allocation2 + $0x60] sm:$0xf] %v1070_v60  ;;  %1072 = vst.msk [vmem:[#allocation2 + $0x64] sm:$0xf] %vm1015_vm12, %v988_v4  ;;  %v2644_v58 = vrot.slane %v2212_v6, 5  ;;  %4533 = vmatmul.mubr.msk.bf16.vlgmr.msra.gmra.mrb[0].mxu0 %vm1219_vm4, %v4235_v35  ;;  %v1406_v23 = vrot.slane %v1405_v47, 4  ;;  %v4237_v25 = vcombine.low %v6347_v14, %v6364_v51  ;;  %v1453_v2 = vor.u32 %v1452_v12, %v1448_v11 }
 0x15d   : > { %v1408_v24 = vshll.u32 %v6377_v27, 16  ;;  %4549 = vmatpush3.bf16.msra.mxu0 %v6122_v13  ;;  %4536 = vmatprep.mubr.msk.bf16.mxu0 %vm1219_vm4, %v4236_v9  ;;  %v2642_v34 = vsel %vm6207_vm7, %v4230_v46, %v2641_v3  ;;  %v1425_v45 = vsel %vm6184_vm6, %v1420_v44, %v6355_v5  ;;  %v1435_v35 = vsel %vm6184_vm6, %v1430_v30, %v1434_v33  ;;  %v1370_v9 = vld [vmem:[#allocation2 + $0x24] sm:$0xf]  ;;  %v4907_v3 = vld [vmem:[#allocation2 + $0x54] sm:$0xff]   ;;  %v6408_v51 = vld [vmem:[#allocation2 + $0x28] sm:$0xf] }
 0x15e   : > { %v1458_v47 = vrot.slane %v1456_v63, 5  ;;  %v2645_v13 = vsel %vm6207_vm7, %v2643_v42, %v2644_v58  ;;  %v1454_v40 = vrot.slane %v1453_v2, 4  ;;  %v2352_v53 = vshll.u32 %v6374_v10, 16  ;;  %4756 = vmatprep.subr.msk.bf16.mxu0 %vm1244_vm11, %v6110_v19  ;;  %v6410_v15 = vld [vmem:[#allocation2 + $0x2c] sm:$0x1] }
 0x15f   : > { %v990_v14 = vpop.permute.xlu0 %989  ;;  %v1410_v41 = vrot.slane %v1408_v24, 5  ;;  %v1444_v5 = vrot.slane %v1443_v0, 4  ;;  %v4231_v54 = vrot.slane %v2584_v21, 9  ;;  %v2648_v29 = vrot.slane %v6374_v10, 5  ;;  %v2217_v42 = vld [vmem:[#allocation2 + $0x58] sm:$0xf] }
 0x160   : > { %v1074_v46 = vsel %vm6098_vm15, %v990_v14, %v1073_v52  ;;  %v6405_v56 = vld [vmem:[#allocation2 + $0x50] sm:$0x1]  ;;  %v4155_v17 = vcombine.low %v1425_v45, %v1435_v35  ;;  %v1459_v19 = vsel %vm6184_vm6, %v1454_v40, %v1458_v47  ;;  %v2356_v1 = vshrl.u32 %v6374_v10, 16  ;;  %v2218_v55 = vld [vmem:[#allocation2 + $0x5c] sm:$0x1] }
 0x161   : > { %1075 = vst [vmem:[#allocation2 + $0x68] sm:$0x1] %v1074_v46  ;;  %v1411_v39 = vsel %vm6184_vm6, %v1406_v23, %v1410_v41  ;;  %4455 = vmatmul.mubr.msk.bf16.gmra.mrb[12].mxu1 %vm1219_vm4, %v4907_v3  ;;  %v4238_v63 = vcombine.low %v2642_v34, %v2645_v13  ;;  %v1449_v60 = vsel %vm6184_vm6, %v1444_v5, %v1448_v11  ;;  %v2650_v4 = vrot.slane %v2648_v29, 4  ;;  %v1373_v58 = vld [vmem:[#allocation2 + $0x30] sm:$0xf] }
 0x162   : > { %v4154_v7 = vcombine.low %v1401_v20, %v1411_v39  ;;  %v4156_v52 = vcombine.low %v1449_v60, %v1459_v19  ;;  %v2649_v6 = vsel %vm6207_vm7, %v4231_v54, %v2648_v29  ;;  %v2651_v30 = vrot.slane %v6405_v56, 5  ;;  %v6429_v20 = vld [vmem:[#allocation2 + $0x34] sm:$0xf]  ;;  %v6441_v47 = vld [vmem:[#allocation2 + $0x38] sm:$0x1] }
 0x163   : > { %v4232_v12 = vrot.slane %v2585_v32, 9  ;;  %v1141_v44 = vpop.permute.xlu0 %1140  ;;  %v2655_v33 = vrot.slane %v2217_v42, 5  ;;  %v2658_v0 = vrot.slane %v2218_v55, 5  ;;  %v1461_v38 = vshrl.u32 %v1370_v9, 16  ;;  %v2586_v40 = vld [vmem:[#allocation2 + $0x60] sm:$0xe] }
 0x164   : > { %4460 = vmatprep.mubr.msk.bf16.mxu1 %vm1219_vm4, %v4154_v7  ;;  %v1464_v62 = vshll.u32 %v1370_v9, 16  ;;  %1150 = vst.msk [vmem:[#allocation2 + $0x70] sm:$0xf] %vm1015_vm12, %v1141_v44  ;;  %4537 = vmatmul.mubr.msk.bf16.gmra.mrb[4].mxu0 %vm1219_vm4, %v4237_v25  ;;  %v2652_v11 = vsel %vm6207_vm7, %v2650_v4, %v2651_v30  ;;  %v1470_v23 = vshll.u32 %v6408_v51, 16  ;;  %v1474_v24 = vshrl.u32 %v6408_v51, 16 }
 0x165   : > { %v1480_v2 = vshll.u32 %v6410_v15, 16  ;;  %4540 = vmatprep.mubr.msk.bf16.mxu0 %vm1219_vm4, %v4238_v63  ;;  %v4239_v21 = vcombine.low %v2649_v6, %v2652_v11  ;;  %v2656_v34 = vsel %vm6207_vm7, %v4232_v12, %v2655_v33  ;;  %v2657_v45 = vrot.slane %v2655_v33, 4  ;;  %v1376_v54 = vld [vmem:[#allocation2 + $0x3c] sm:$0xf]  ;;  %v6447_v55 = vld [vmem:[#allocation2 + $0x64] sm:$0xf] }
 0x166   : > { %v1463_v35 = vrot.slane %v1461_v38, 4  ;;  %v1466_v25 = vrot.slane %v1464_v62, 5  ;;  %v1472_v14 = vrot.slane %v1470_v23, 5  ;;  %v1476_v41 = vrot.slane %v1474_v24, 4  ;;  %v6461_v62 = vld [vmem:[#allocation2 + $0x44] sm:$0x1] }
 0x167   : > { %v1482_v13 = vrot.slane %v1480_v2, 5  ;;  %v2659_v32 = vsel %vm6207_vm7, %v2657_v45, %v2658_v0  ;;  %v1485_v9 = vshrl.u32 %v1373_v58, 16  ;;  %v1488_v46 = vshll.u32 %v1373_v58, 16 }
 0x168   : > { %v1494_v3 = vshll.u32 %v6429_v20, 16  ;;  %v2221_v5 = vld [vmem:[#allocation2 + $0x68] sm:$0x1]  ;;  %v4240_v29 = vcombine.low %v2656_v34, %v2659_v32  ;;  %v1467_v39 = vor.u32 %v1466_v25, %v1463_v35  ;;  %v1477_v19 = vor.u32 %v1476_v41, %v1472_v14  ;;  %v6466_v34 = vld [vmem:[#allocation2 + $0x40] sm:$0xf] }
 0x169   : > { %v1498_v42 = vshrl.u32 %v6429_v20, 16  ;;  %4461 = vmatmul.mubr.msk.bf16.vlgmr.msra.gmra.mrb[0].mxu1 %vm1219_vm4, %v4155_v17  ;;  %v1487_v7 = vrot.slane %v1485_v9, 4  ;;  %v1490_v63 = vrot.slane %v1488_v46, 5  ;;  %v1504_v4 = vshll.u32 %v6441_v47, 16 }
 0x16a   : > { %v1496_v60 = vrot.slane %v1494_v3, 5  ;;  %4477 = vmatpush3.bf16.msra.mxu1 %v6126_v48  ;;  %4464 = vmatprep.mubr.msk.bf16.mxu1 %vm1219_vm4, %v4156_v52  ;;  %v1468_v6 = vrot.slane %v1467_v39, 4  ;;  %v1478_v30 = vrot.slane %v1477_v19, 4  ;;  %v4233_v58 = vrot.slane %v2586_v40, 9 }
 0x16b   : > { %v1500_v12 = vrot.slane %v1498_v42, 4  ;;  %v1491_v44 = vor.u32 %v1490_v63, %v1487_v7  ;;  %v1506_v33 = vrot.slane %v1504_v4, 5  ;;  %v2662_v0 = vrot.slane %v6447_v55, 5  ;;  %4751 = vmatprep.subr.msk.bf16.mxu1 %vm1244_vm11, %v6137_v36  ;;  %v6480_v7 = vld [vmem:[#allocation2 + $0x4c] sm:$0xf] }
 0x16c   : > { %v2665_v38 = vrot.slane %v2221_v5, 5  ;;  %4541 = vmatmul.mubr.msk.bf16.gmra.mrb[8].mxu0 %vm1219_vm4, %v4239_v21  ;;  %v1473_v17 = vsel %vm6184_vm6, %v1468_v6, %v1472_v14  ;;  %v1483_v48 = vsel %vm6184_vm6, %v1478_v30, %v1482_v13  ;;  %v1509_v11 = vshrl.u32 %v1376_v54, 16  ;;  %v1379_v14 = vld [vmem:[#allocation2 + $0x48] sm:$0xf] }
 0x16d   : > { %v1501_v52 = vor.u32 %v1500_v12, %v1496_v60  ;;  %4544 = vmatprep.mubr.msk.bf16.mxu0 %vm1219_vm4, %v4240_v29  ;;  %v4157_v23 = vcombine.low %v1473_v17, %v1483_v48  ;;  %v1492_v24 = vrot.slane %v1491_v44, 4  ;;  %v2663_v2 = vsel %vm6207_vm7, %v4233_v58, %v2662_v0  ;;  %v1382_v29 = vld [vmem:[#allocation2 + $0x54] sm:$0xf]  ;;  %v4908_v12 = vld [vmem:[#allocation2 + $0x18] sm:$0xff]   ;;  %v1139_v17 = vpop.permute.xlu1 %1138 }
 0x16e   : > { %v2664_v36 = vrot.slane %v2662_v0, 4  ;;  %v1511_v45 = vrot.slane %v1509_v11, 4  ;;  %v1512_v35 = vshll.u32 %v1376_v54, 16  ;;  %v1518_v25 = vshll.u32 %v6466_v34, 16  ;;  %v6477_v54 = vld [vmem:[#allocation2 + $0x50] sm:$0x1] }
 0x16f   : > { %v1502_v21 = vrot.slane %v1501_v52, 4  ;;  %v1497_v41 = vsel %vm6184_vm6, %v1492_v24, %v1496_v60  ;;  %v1522_v40 = vshrl.u32 %v6466_v34, 16  ;;  %v1528_v32 = vshll.u32 %v6461_v62, 16  ;;  %v6486_v0 = vld [vmem:[#allocation2 + $0x58] sm:$0xf] }
 0x170   : > { %v2666_v13 = vsel %vm6207_vm7, %v2664_v36, %v2665_v38  ;;  %v1514_v3 = vrot.slane %v1512_v35, 5  ;;  %v1520_v5 = vrot.slane %v1518_v25, 5  ;;  %v1533_v63 = vshrl.u32 %v1379_v14, 16  ;;  %v6489_v24 = vld [vmem:[#allocation2 + $0x5c] sm:$0x1] }
 0x171   : > { %v1507_v9 = vsel %vm6184_vm6, %v1502_v21, %v1506_v33  ;;  %v4241_v46 = vcombine.low %v2663_v2, %v2666_v13  ;;  %4465 = vmatmul.mubr.msk.bf16.gmra.mrb[4].mxu1 %vm1219_vm4, %v4157_v23  ;;  %v1524_v19 = vrot.slane %v1522_v40, 4  ;;  %v1530_v42 = vrot.slane %v1528_v32, 5  ;;  %v1745_v35 = vld [vmem:[#allocation2] sm:$0xe] }
 0x172   : > { %v4158_v39 = vcombine.low %v1497_v41, %v1507_v9  ;;  %v1515_v60 = vor.u32 %v1514_v3, %v1511_v45  ;;  %v1536_v4 = vshll.u32 %v1379_v14, 16  ;;  %v1542_v6 = vshll.u32 %v6480_v7, 16  ;;  %v1147_v3 = vld [vmem:[#allocation2 + $0x6c] sm:$0xf] }
 0x173   : > { %v1546_v30 = vshrl.u32 %v6480_v7, 16  ;;  %v1525_v58 = vor.u32 %v1524_v19, %v1520_v5  ;;  %v1535_v44 = vrot.slane %v1533_v63, 4  ;;  %v1552_v33 = vshll.u32 %v6477_v54, 16 }
 0x174   : > { %4468 = vmatprep.mubr.msk.bf16.mxu1 %vm1219_vm4, %v4158_v39  ;;  %v1557_v38 = vshrl.u32 %v1382_v29, 16  ;;  %4545 = vmatmul.mubr.msk.bf16.gmra.mrb[12].mxu0 %vm1219_vm4, %v4241_v46  ;;  %v1516_v48 = vrot.slane %v1515_v60, 4  ;;  %v1538_v52 = vrot.slane %v1536_v4, 5  ;;  %v1544_v11 = vrot.slane %v1542_v6, 5  ;;  %v1151_v60 = vld [vmem:[#allocation2 + $0x74] sm:$0x1] }
 0x175   : > { %v1548_v23 = vrot.slane %v1546_v30, 4  ;;  %4550 = vmatprep.mubr.msk.bf16.mxu0 %vm1219_vm4, %v4908_v12  ;;  %v1526_v2 = vrot.slane %v1525_v58, 4  ;;  %v1554_v36 = vrot.slane %v1552_v33, 5  ;;  %v1560_v45 = vshll.u32 %v1382_v29, 16  ;;  %v1143_v12 = vpop.permute.xlu1 %1142  ;;  %v1746_v58 = vld [vmem:[#allocation2 + $0xc] sm:$0xe] }
 0x176   : > { %v1559_v21 = vrot.slane %v1557_v38, 4  ;;  %v1521_v25 = vsel %vm6184_vm6, %v1516_v48, %v1520_v5  ;;  %v1539_v14 = vor.u32 %v1538_v52, %v1535_v44  ;;  %v1566_v13 = vshll.u32 %v6486_v0, 16  ;;  %v4909_v33 = vld [vmem:[#allocation2 + $0x24] sm:$0xff]   ;;  %v1747_v52 = vld [vmem:[#allocation2 + $0x18] sm:$0xe] }
 0x177   : > { %v1549_v41 = vor.u32 %v1548_v23, %v1544_v11  ;;  %v1531_v40 = vsel %vm6184_vm6, %v1526_v2, %v1530_v42  ;;  %v1562_v32 = vrot.slane %v1560_v45, 5  ;;  %v1570_v9 = vshrl.u32 %v6486_v0, 16  ;;  %v4910_v2 = vld [vmem:[#allocation2 + $0x30] sm:$0xff]  }
 0x178   : > { %v1576_v46 = vshll.u32 %v6489_v24, 16  ;;  %v4159_v39 = vcombine.low %v1521_v25, %v1531_v40  ;;  %v1540_v19 = vrot.slane %v1539_v14, 4  ;;  %v1568_v63 = vrot.slane %v1566_v13, 5  ;;  %v1748_v25 = vld [vmem:[#allocation2 + $0x24] sm:$0xe] }
 0x179   : > { %v1550_v29 = vrot.slane %v1549_v41, 4  ;;  %v1563_v4 = vor.u32 %v1562_v32, %v1559_v21  ;;  %v1572_v5 = vrot.slane %v1570_v9, 4  ;;  %v4170_v30 = vrot.slane %v1745_v35, 9 }
 0x17a   : > { %v1578_v6 = vrot.slane %v1576_v46, 5  ;;  %4469 = vmatmul.mubr.msk.bf16.gmra.mrb[8].mxu1 %vm1219_vm4, %v4159_v39  ;;  %v1545_v42 = vsel %vm6184_vm6, %v1540_v19, %v1544_v11  ;;  %v1782_v38 = vrot.slane %v6235_v49, 5  ;;  %v1785_v48 = vrot.slane %v6377_v27, 5  ;;  %v4911_v39 = vld [vmem:[#allocation2 + $0x3c] sm:$0xff]  }
 0x17b   : > { %v1555_v44 = vsel %vm6184_vm6, %v1550_v29, %v1554_v36  ;;  %v1564_v21 = vrot.slane %v1563_v4, 4  ;;  %v1573_v45 = vor.u32 %v1572_v5, %v1568_v63  ;;  %v1148_v35 = vsel %vm6089_vm13, %v1139_v17, %v1147_v3 }
 0x17c   : > { %v4160_v23 = vcombine.low %v1545_v42, %v1555_v44  ;;  %4551 = vmatmul.mubr.msk.bf16.vlgmr.msra.gmra.mrb[0].mxu0 %vm1219_vm4, %v4909_v33  ;;  %v1783_v11 = vsel %vm6207_vm7, %v4170_v30, %v1782_v38  ;;  %v1784_v36 = vrot.slane %v1782_v38, 4  ;;  %1149 = vst [vmem:[#allocation2 + $0x6c] sm:$0xf] %v1148_v35  ;;  %v1152_v49 = vsel %vm6098_vm15, %v1143_v12, %v1151_v60  ;;  %v4912_v60 = vld [vmem:[#allocation2 + $0x48] sm:$0xff]   ;;  %v6538_v30 = vld [vmem:[#allocation2 + $0x20] sm:$0x1] }
 0x17d   : > { %v4171_v27 = vrot.slane %v1746_v58, 9  ;;  %4567 = vmatpush3.bf16.msra.mxu0 %v6130_v43  ;;  %v1569_v31 = vsel %vm6184_vm6, %v1564_v21, %v1568_v63  ;;  %v1574_v17 = vrot.slane %v1573_v45, 4  ;;  %1153 = vst [vmem:[#allocation2 + $0x74] sm:$0x1] %v1152_v49  ;;  %v1789_v14 = vrot.slane %v6303_v61, 5  ;;  %4554 = vmatprep.mubr.msk.bf16.mxu0 %vm1219_vm4, %v4910_v2 }
 0x17e   : > { %4472 = vmatprep.mubr.msk.bf16.mxu1 %vm1219_vm4, %v4160_v23  ;;  %v1792_v41 = vrot.slane %v6336_v8, 5  ;;  %v1786_v57 = vsel %vm6207_vm7, %v1784_v36, %v1785_v48  ;;  %v4172_v13 = vrot.slane %v1747_v52, 9  ;;  %v1796_v40 = vrot.slane %v6350_v18, 5  ;;  %v1749_v43 = vld [vmem:[#allocation2 + $0x30] sm:$0xe]  ;;  %4757 = vmatprep.subr.msk.bf16.mxu0 %vm1244_vm11, %v6139_v28 }
 0x17f   : > { %v1799_v32 = vrot.slane %v6357_v22, 5  ;;  %v1579_v9 = vsel %vm6184_vm6, %v1574_v17, %v1578_v6  ;;  %v4178_v61 = vcombine.low %v1783_v11, %v1786_v57  ;;  %v1790_v8 = vsel %vm6207_vm7, %v4171_v27, %v1789_v14  ;;  %v3030_v22 = vld [vmem:[#allocation2 + $0x18] sm:$0xf]  ;;  %v6532_v63 = vld [vmem:[#allocation2 + $0x1c] sm:$0xf] }
 0x180   : > { %v1791_v46 = vrot.slane %v1789_v14, 4  ;;  %v4161_v3 = vcombine.low %v1569_v31, %v1579_v9  ;;  %v1797_v19 = vsel %vm6207_vm7, %v4172_v13, %v1796_v40  ;;  %v1798_v18 = vrot.slane %v1796_v40, 4  ;;  %v1750_v33 = vld [vmem:[#allocation2 + $0x3c] sm:$0xe]  ;;  %v1751_v52 = vld [vmem:[#allocation2 + $0x48] sm:$0xe] }
 0x181   : > { %v4173_v29 = vrot.slane %v1748_v25, 9  ;;  %v1803_v4 = vrot.slane %v6408_v51, 5  ;;  %v1806_v5 = vrot.slane %v6410_v15, 5  ;;  %v4174_v6 = vrot.slane %v1749_v43, 9  ;;  %v3033_v31 = vld [vmem:[#allocation2 + $0x24] sm:$0xf] }
 0x182   : > { %v1793_v28 = vsel %vm6207_vm7, %v1791_v46, %v1792_v41  ;;  %4473 = vmatmul.mubr.msk.bf16.gmra.mrb[12].mxu1 %vm1219_vm4, %v4161_v3  ;;  %v1800_v58 = vsel %vm6207_vm7, %v1798_v18, %v1799_v32  ;;  %v1810_v42 = vrot.slane %v6429_v20, 5  ;;  %v1813_v44 = vrot.slane %v6441_v47, 5  ;;  %v6573_v9 = vld [vmem:[#allocation2 + $0x28] sm:$0xf] }
 0x183   : > { %v4179_v12 = vcombine.low %v1790_v8, %v1793_v28  ;;  %4478 = vmatprep.mubr.msk.bf16.mxu1 %vm1219_vm4, %v4178_v61  ;;  %v4180_v38 = vcombine.low %v1797_v19, %v1800_v58  ;;  %v6548_v51 = vsel %vm6207_vm7, %v4173_v29, %v1803_v4  ;;  %v1805_v15 = vrot.slane %v1803_v4, 4  ;;  %v6582_v29 = vld [vmem:[#allocation2 + $0x2c] sm:$0x1]  ;;  %v6598_v58 = vld [vmem:[#allocation2 + $0x34] sm:$0xf] }
 0x184   : > { %v3055_v48 = vshrl.u32 %v3030_v22, 16  ;;  %4555 = vmatmul.mubr.msk.bf16.gmra.mrb[4].mxu0 %vm1219_vm4, %v4911_v39  ;;  %v6553_v23 = vsel %vm6207_vm7, %v4174_v6, %v1810_v42  ;;  %v1812_v20 = vrot.slane %v1810_v42, 4  ;;  %v3058_v2 = vshll.u32 %v3030_v22, 16  ;;  %v4913_v39 = vld [vmem:[#allocation2 + $0x54] sm:$0xff]   ;;  %v3036_v22 = vld [vmem:[#allocation2 + $0x30] sm:$0xf] }
 0x185   : > { %v3064_v47 = vshll.u32 %v6532_v63, 16  ;;  %4558 = vmatprep.mubr.msk.bf16.mxu0 %vm1219_vm4, %v4912_v60  ;;  %v6559_v21 = vsel %vm6207_vm7, %v1805_v15, %v1806_v5  ;;  %v3068_v35 = vshrl.u32 %v6532_v63, 16  ;;  %v3074_v25 = vshll.u32 %v6538_v30, 16  ;;  %v4924_v42 = vld [vmem:[#allocation8 + $0x10] sm:$0xf] }
 0x186   : > { %v3057_v45 = vrot.slane %v3055_v48, 4  ;;  %v4181_v11 = vcombine.low %v6548_v51, %v6559_v21  ;;  %v6567_v36 = vsel %vm6207_vm7, %v1812_v20, %v1813_v44  ;;  %v3060_v49 = vrot.slane %v3058_v2, 5  ;;  %v6611_v48 = vld [vmem:[#allocation2 + $0x38] sm:$0x1] }
 0x187   : > { %v3066_v27 = vrot.slane %v3064_v47, 5  ;;  %v4182_v17 = vcombine.low %v6553_v23, %v6567_v36  ;;  %v3070_v14 = vrot.slane %v3068_v35, 4  ;;  %v3076_v41 = vrot.slane %v3074_v25, 5 }
 0x188   : > { %v4175_v57 = vrot.slane %v1750_v33, 9  ;;  %v3061_v13 = vor.u32 %v3060_v49, %v3057_v45  ;;  %v1817_v40 = vrot.slane %v6466_v34, 5  ;;  %v1820_v32 = vrot.slane %v6461_v62, 5 }
 0x189   : > { %v4176_v43 = vrot.slane %v1751_v52, 9  ;;  %v3071_v61 = vor.u32 %v3070_v14, %v3066_v27  ;;  %v1824_v8 = vrot.slane %v6480_v7, 5  ;;  %v1827_v46 = vrot.slane %v6477_v54, 5  ;;  %v4914_v7 = vld [vmem:[#allocation2 + $0x60] sm:$0xff]  }
 0x18a   : > { %v3079_v3 = vshrl.u32 %v3033_v31, 16  ;;  %4479 = vmatmul.mubr.msk.bf16.vlgmr.msra.gmra.mrb[0].mxu1 %vm1219_vm4, %v4179_v12  ;;  %v3062_v19 = vrot.slane %v3061_v13, 4  ;;  %v6580_v18 = vsel %vm6207_vm7, %v4175_v57, %v1817_v40  ;;  %v1819_v34 = vrot.slane %v1817_v40, 4 }
 0x18b   : > { %v3082_v62 = vshll.u32 %v3033_v31, 16  ;;  %4495 = vmatpush3.bf16.msra.mxu1 %v6155_v26  ;;  %4482 = vmatprep.mubr.msk.bf16.mxu1 %vm1219_vm4, %v4180_v38  ;;  %v3072_v54 = vrot.slane %v3071_v61, 4  ;;  %v6588_v60 = vsel %vm6207_vm7, %v4176_v43, %v1824_v8  ;;  %v1826_v28 = vrot.slane %v1824_v8, 4  ;;  %v4915_v31 = vld [vmem:[#allocation2 + $0x6c] sm:$0xff]   ;;  %v3039_v8 = vld [vmem:[#allocation2 + $0x3c] sm:$0xf] }
 0x18c   : > { %v3081_v4 = vrot.slane %v3079_v3, 4  ;;  %4559 = vmatmul.mubr.msk.bf16.gmra.mrb[8].mxu0 %vm1219_vm4, %v4913_v39  ;;  %v3067_v5 = vsel %vm6184_vm6, %v3062_v19, %v3066_v27  ;;  %v6595_v6 = vsel %vm6207_vm7, %v1819_v34, %v1820_v32  ;;  %v3088_v12 = vshll.u32 %v6573_v9, 16  ;;  %4753 = vmatprep.subr.msk.bf16.mxu1 %vm1244_vm11, %v4924_v42  ;;  %v1752_v27 = vld [vmem:[#allocation2 + $0x54] sm:$0xe]  ;;  %v3042_v42 = vld [vmem:[#allocation2 + $0x48] sm:$0xf] }
 0x18d   : > { %v3084_v26 = vrot.slane %v3082_v62, 5  ;;  %4562 = vmatprep.mubr.msk.bf16.mxu0 %vm1219_vm4, %v4914_v7  ;;  %v3077_v44 = vsel %vm6184_vm6, %v3072_v54, %v3076_v41  ;;  %v4183_v33 = vcombine.low %v6580_v18, %v6595_v6  ;;  %v6608_v38 = vsel %vm6207_vm7, %v1826_v28, %v1827_v46 }
 0x18e   : > { %v3092_v15 = vshrl.u32 %v6573_v9, 16  ;;  %v4266_v52 = vcombine.low %v3067_v5, %v3077_v44  ;;  %v4184_v20 = vcombine.low %v6588_v60, %v6608_v38  ;;  %v3090_v47 = vrot.slane %v3088_v12, 5 }
 0x18f   : > { %v3085_v2 = vor.u32 %v3084_v26, %v3081_v4  ;;  %v3098_v35 = vshll.u32 %v6582_v29, 16  ;;  %v3103_v25 = vshrl.u32 %v3036_v22, 16  ;;  %v3106_v49 = vshll.u32 %v3036_v22, 16  ;;  %v6639_v4 = vld [vmem:[#allocation2 + $0x40] sm:$0xf] }
 0x190   : > { %v3094_v45 = vrot.slane %v3092_v15, 4  ;;  %v3112_v41 = vshll.u32 %v6598_v58, 16  ;;  %v3116_v57 = vshrl.u32 %v6598_v58, 16  ;;  %v3122_v13 = vshll.u32 %v6611_v48, 16 }
 0x191   : > { %v3086_v14 = vrot.slane %v3085_v2, 4  ;;  %v3100_v32 = vrot.slane %v3098_v35, 5  ;;  %v3105_v43 = vrot.slane %v3103_v25, 4  ;;  %v3108_v61 = vrot.slane %v3106_v49, 5  ;;  %v6653_v49 = vld [vmem:[#allocation2 + $0x4c] sm:$0xf] }
 0x192   : > { %v3095_v40 = vor.u32 %v3094_v45, %v3090_v47  ;;  %4483 = vmatmul.mubr.msk.bf16.gmra.mrb[4].mxu1 %vm1219_vm4, %v4181_v11  ;;  %v3114_v3 = vrot.slane %v3112_v41, 5  ;;  %v3118_v39 = vrot.slane %v3116_v57, 4  ;;  %v3124_v19 = vrot.slane %v3122_v13, 5  ;;  %v3045_v13 = vld [vmem:[#allocation2 + $0x54] sm:$0xf] }
 0x193   : > { %v3091_v46 = vsel %vm6184_vm6, %v3086_v14, %v3090_v47  ;;  %4486 = vmatprep.mubr.msk.bf16.mxu1 %vm1219_vm4, %v4182_v17  ;;  %v3109_v62 = vor.u32 %v3108_v61, %v3105_v43  ;;  %v4177_v22 = vrot.slane %v1752_v27, 9  ;;  %v1831_v7 = vrot.slane %v6486_v0, 5  ;;  %v6641_v0 = vld [vmem:[#allocation2 + $0x44] sm:$0x1]  ;;  %v6655_v27 = vld [vmem:[#allocation2 + $0x50] sm:$0x1] }
 0x194   : > { %v3096_v34 = vrot.slane %v3095_v40, 4  ;;  %4563 = vmatmul.mubr.msk.bf16.gmra.mrb[12].mxu0 %vm1219_vm4, %v4915_v31  ;;  %v3119_v51 = vor.u32 %v3118_v39, %v3114_v3  ;;  %v1834_v21 = vrot.slane %v6489_v24, 5  ;;  %v3127_v11 = vshrl.u32 %v3039_v8, 16 }
 0x195   : > { %v3130_v54 = vshll.u32 %v3039_v8, 16  ;;  %4568 = vmatprep.mubr.msk.bf16.mxu0 %vm1219_vm4, %v4266_v52  ;;  %v3110_v23 = vrot.slane %v3109_v62, 4  ;;  %v6637_v36 = vsel %vm6207_vm7, %v4177_v22, %v1831_v7  ;;  %v1833_v17 = vrot.slane %v1831_v7, 4 }
 0x196   : > { %v3101_v28 = vsel %vm6184_vm6, %v3096_v34, %v3100_v32  ;;  %v3120_v26 = vrot.slane %v3119_v51, 4  ;;  %v3129_v24 = vrot.slane %v3127_v11, 4  ;;  %v3136_v52 = vshll.u32 %v6639_v4, 16  ;;  %v6673_v34 = vld [vmem:[#allocation2 + $0x5c] sm:$0x1] }
 0x197   : > { %v4267_v5 = vcombine.low %v3091_v46, %v3101_v28  ;;  %v3132_v12 = vrot.slane %v3130_v54, 5  ;;  %v3115_v44 = vsel %vm6184_vm6, %v3110_v23, %v3114_v3  ;;  %v1835_v15 = vsel %vm6207_vm7, %v1833_v17, %v1834_v21  ;;  %v3048_v54 = vld [vmem:[#allocation2 + $0x60] sm:$0xf]  ;;  %v6682_v17 = vld [vmem:[#allocation2 + $0x64] sm:$0xf] }
 0x198   : > { %v3140_v2 = vshrl.u32 %v6639_v4, 16  ;;  %v3125_v47 = vsel %vm6184_vm6, %v3120_v26, %v3124_v19  ;;  %v4185_v45 = vcombine.low %v6637_v36, %v1835_v15  ;;  %v3146_v25 = vshll.u32 %v6641_v0, 16  ;;  %v6668_v19 = vld [vmem:[#allocation2 + $0x58] sm:$0xf] }
 0x199   : > { %v3133_v35 = vor.u32 %v3132_v12, %v3129_v24  ;;  %v4268_v31 = vcombine.low %v3115_v44, %v3125_v47  ;;  %v3138_v14 = vrot.slane %v3136_v52, 5  ;;  %v3151_v57 = vshrl.u32 %v3042_v42, 16 }
 0x19a   : > { %v3142_v41 = vrot.slane %v3140_v2, 4  ;;  %4487 = vmatmul.mubr.msk.bf16.gmra.mrb[8].mxu1 %vm1219_vm4, %v4183_v33  ;;  %v3148_v32 = vrot.slane %v3146_v25, 5  ;;  %v3154_v43 = vshll.u32 %v3042_v42, 16  ;;  %v3160_v61 = vshll.u32 %v6653_v49, 16  ;;  %v4916_v42 = vld [vmem:[#allocation2 + $0xc] sm:$0xff]  }
 0x19b   : > { %v3134_v40 = vrot.slane %v3133_v35, 4  ;;  %4490 = vmatprep.mubr.msk.bf16.mxu1 %vm1219_vm4, %v4184_v20  ;;  %v3153_v46 = vrot.slane %v3151_v57, 4  ;;  %v3164_v3 = vshrl.u32 %v6653_v49, 16  ;;  %v3170_v39 = vshll.u32 %v6655_v27, 16  ;;  %v6687_v25 = vld [vmem:[#allocation2 + $0x68] sm:$0x1] }
 0x19c   : > { %v3143_v8 = vor.u32 %v3142_v41, %v3138_v14  ;;  %4569 = vmatmul.mubr.msk.bf16.vlgmr.msra.gmra.mrb[0].mxu0 %vm1219_vm4, %v4267_v5  ;;  %v3156_v6 = vrot.slane %v3154_v43, 5  ;;  %v3162_v33 = vrot.slane %v3160_v61, 5  ;;  %v3175_v60 = vshrl.u32 %v3045_v13, 16  ;;  %v3051_v41 = vld [vmem:[#allocation2 + $0x6c] sm:$0xf] }
 0x19d   : > { %v3139_v18 = vsel %vm6184_vm6, %v3134_v40, %v3138_v14  ;;  %4585 = vmatpush3.bf16.msra.mxu0 %v6159_v50  ;;  %4572 = vmatprep.mubr.msk.bf16.mxu0 %vm1219_vm4, %v4268_v31  ;;  %v3166_v20 = vrot.slane %v3164_v3, 4  ;;  %v3172_v62 = vrot.slane %v3170_v39, 5  ;;  %v3178_v22 = vshll.u32 %v3045_v13, 16 }
 0x19e   : > { %v3144_v38 = vrot.slane %v3143_v8, 4  ;;  %v3157_v7 = vor.u32 %v3156_v6, %v3153_v46  ;;  %v3177_v51 = vrot.slane %v3175_v60, 4  ;;  %v3184_v21 = vshll.u32 %v6668_v19, 16 }
 0x19f   : > { %v3188_v11 = vshrl.u32 %v6668_v19, 16  ;;  %v3167_v23 = vor.u32 %v3166_v20, %v3162_v33  ;;  %v3180_v36 = vrot.slane %v3178_v22, 5  ;;  %v3194_v50 = vshll.u32 %v6673_v34, 16 }
 0x1a0   : > { %v3149_v28 = vsel %vm6184_vm6, %v3144_v38, %v3148_v32  ;;  %v3158_v26 = vrot.slane %v3157_v7, 4  ;;  %v3186_v24 = vrot.slane %v3184_v21, 5  ;;  %v3199_v2 = vshrl.u32 %v3048_v54, 16  ;;  %v6705_v38 = vld [vmem:[#allocation2 + $0x74] sm:$0x1]  ;;  %v4917_v21 = vld [vmem:[#allocation2 + $0x18] sm:$0xff]  }
 0x1a1   : > { %v4269_v5 = vcombine.low %v3139_v18, %v3149_v28  ;;  %v3190_v12 = vrot.slane %v3188_v11, 4  ;;  %v3168_v44 = vrot.slane %v3167_v23, 4  ;;  %v3181_v15 = vor.u32 %v3180_v36, %v3177_v51 }
 0x1a2   : > { %v3196_v52 = vrot.slane %v3194_v50, 5  ;;  %4491 = vmatmul.mubr.msk.bf16.gmra.mrb[12].mxu1 %vm1219_vm4, %v4185_v45  ;;  %v3163_v47 = vsel %vm6184_vm6, %v3158_v26, %v3162_v33  ;;  %v3202_v31 = vshll.u32 %v3048_v54, 16  ;;  %v3208_v14 = vshll.u32 %v6682_v17, 16  ;;  %v6694_v45 = vld [vmem:[#allocation2 + $0x70] sm:$0xf]  ;;  %v4918_v50 = vld [vmem:[#allocation2 + $0x24] sm:$0xff]  }
 0x1a3   : > { %v3191_v35 = vor.u32 %v3190_v12, %v3186_v24  ;;  %4496 = vmatprep.mubr.msk.bf16.mxu1 %vm1219_vm4, %v4916_v42  ;;  %v3173_v57 = vsel %vm6184_vm6, %v3168_v44, %v3172_v62  ;;  %v3182_v13 = vrot.slane %v3181_v15, 4  ;;  %v3201_v40 = vrot.slane %v3199_v2, 4 }
 0x1a4   : > { %v3212_v32 = vshrl.u32 %v6682_v17, 16  ;;  %4573 = vmatmul.mubr.msk.bf16.gmra.mrb[4].mxu0 %vm1219_vm4, %v4269_v5  ;;  %v4270_v43 = vcombine.low %v3163_v47, %v3173_v57  ;;  %v3204_v8 = vrot.slane %v3202_v31, 5  ;;  %v3210_v46 = vrot.slane %v3208_v14, 5  ;;  %v2210_v31 = vld [vmem:[#allocation2 + $0x3c] sm:$0xf] }
 0x1a5   : > { %v3192_v61 = vrot.slane %v3191_v35, 4  ;;  %v6699_v3 = vrot.slane %v2352_v53, 5  ;;  %v3218_v18 = vshll.u32 %v6687_v25, 16  ;;  %v3223_v6 = vshrl.u32 %v3051_v41, 16  ;;  %v3412_v57 = vld [vmem:[#allocation2 + $0x24] sm:$0xe] }
 0x1a6   : > { %v3214_v39 = vrot.slane %v3212_v32, 4  ;;  %4576 = vmatprep.mubr.msk.bf16.mxu0 %vm1219_vm4, %v4270_v43  ;;  %v3187_v33 = vsel %vm6184_vm6, %v3182_v13, %v3186_v24  ;;  %v3205_v60 = vor.u32 %v3204_v8, %v3201_v40  ;;  %v3226_v20 = vshll.u32 %v3051_v41, 16 }
 0x1a7   : > { %v3232_v62 = vshll.u32 %v6694_v45, 16  ;;  %v3197_v22 = vsel %vm6184_vm6, %v3192_v61, %v3196_v52  ;;  %v3220_v7 = vrot.slane %v3218_v18, 5  ;;  %v3225_v51 = vrot.slane %v3223_v6, 4  ;;  %v3413_v61 = vld [vmem:[#allocation2 + $0x30] sm:$0xe] }
 0x1a8   : > { %v3215_v53 = vor.u32 %v3214_v39, %v3210_v46  ;;  %v3206_v11 = vrot.slane %v3205_v60, 4  ;;  %v3228_v54 = vrot.slane %v3226_v20, 5  ;;  %v3236_v23 = vshrl.u32 %v6694_v45, 16  ;;  %v4919_v18 = vld [vmem:[#allocation2 + $0x30] sm:$0xff]   ;;  %v4920_v60 = vld [vmem:[#allocation2 + $0x3c] sm:$0xff]  }
 0x1a9   : > { %v3234_v28 = vrot.slane %v3232_v62, 5  ;;  %v2358_v36 = vrot.slane %v2356_v1, 4  ;;  %v3242_v26 = vshll.u32 %v6705_v38, 16  ;;  %v3445_v24 = vrot.slane %v6532_v63, 5  ;;  %v3411_v1 = vld [vmem:[#allocation2 + $0x18] sm:$0xe] }
 0x1aa   : > { %v3216_v5 = vrot.slane %v3215_v53, 4  ;;  %4497 = vmatmul.mubr.msk.bf16.vlgmr.msra.gmra.mrb[0].mxu1 %vm1219_vm4, %v4917_v21  ;;  %v4271_v12 = vcombine.low %v3187_v33, %v3197_v22  ;;  %v3211_v42 = vsel %vm6184_vm6, %v3206_v11, %v3210_v46  ;;  %v3229_v44 = vor.u32 %v3228_v54, %v3225_v51  ;;  %v4925_v22 = vld [vmem:[#allocation2 + $0x40] sm:$0xf] }
 0x1ab   : > { %v3238_v15 = vrot.slane %v3236_v23, 4  ;;  %4603 = vmatpush3.bf16.msra.mxu1 %v5991_v59  ;;  %4500 = vmatprep.mubr.msk.bf16.mxu1 %vm1219_vm4, %v4918_v50  ;;  %v3447_v52 = vrot.slane %v3445_v24, 4  ;;  %v3244_v35 = vrot.slane %v3242_v26, 5  ;;  %v2359_v14 = vor.u32 %v2358_v36, %v6699_v3  ;;  %v3414_v36 = vld [vmem:[#allocation2 + $0x3c] sm:$0xe] }
 0x1ac   : > { %v3221_v10 = vsel %vm6184_vm6, %v3216_v5, %v3220_v7  ;;  %4577 = vmatmul.mubr.msk.bf16.gmra.mrb[8].mxu0 %vm1219_vm4, %v4271_v12  ;;  %v3230_v2 = vrot.slane %v3229_v44, 4  ;;  %v2362_v41 = vshll.u32 %v6405_v56, 16  ;;  %v3448_v59 = vrot.slane %v6538_v30, 5 }
 0x1ad   : > { %v4272_v63 = vcombine.low %v3211_v42, %v3221_v10  ;;  %v3239_v47 = vor.u32 %v3238_v15, %v3234_v28  ;;  %v3452_v13 = vrot.slane %v6573_v9, 5  ;;  %v4282_v32 = vrot.slane %v3411_v1, 9  ;;  %v2213_v42 = vld [vmem:[#allocation2 + $0x48] sm:$0xf] }
 0x1ae   : > { %v3455_v43 = vrot.slane %v6582_v29, 5  ;;  %v3459_v8 = vrot.slane %v6598_v58, 5  ;;  %v3235_v46 = vsel %vm6184_vm6, %v3230_v2, %v3234_v28  ;;  %v3449_v56 = vsel %vm6207_vm7, %v3447_v52, %v3448_v59 }
 0x1af   : > { %4580 = vmatprep.mubr.msk.bf16.mxu0 %vm1219_vm4, %v4272_v63  ;;  %v3240_v40 = vrot.slane %v3239_v47, 4  ;;  %v3462_v30 = vrot.slane %v6611_v48, 5  ;;  %v2319_v39 = vshrl.u32 %v2210_v31, 16  ;;  %v3446_v6 = vsel %vm6207_vm7, %v4282_v32, %v3445_v24  ;;  %v4926_v24 = vld [vmem:[#allocation2 + $0x44] sm:$0x1] }
 0x1b0   : > { %v3454_v29 = vrot.slane %v3452_v13, 4  ;;  %v2322_v33 = vshll.u32 %v2210_v31, 16  ;;  %v4283_v58 = vrot.slane %v3412_v57, 9  ;;  %v4284_v20 = vrot.slane %v3413_v61, 9 }
 0x1b1   : > { %v3245_v9 = vsel %vm6184_vm6, %v3240_v40, %v3244_v35  ;;  %v3461_v62 = vrot.slane %v3459_v8, 4  ;;  %v2328_v53 = vshll.u32 %v4925_v22, 16  ;;  %v4290_v48 = vcombine.low %v3446_v6, %v3449_v56  ;;  %v3415_v40 = vld [vmem:[#allocation2 + $0x48] sm:$0xe] }
 0x1b2   : > { %4501 = vmatmul.mubr.msk.bf16.gmra.mrb[4].mxu1 %vm1219_vm4, %v4919_v18  ;;  %v4273_v7 = vcombine.low %v3235_v46, %v3245_v9  ;;  %v3456_v51 = vsel %vm6207_vm7, %v3454_v29, %v3455_v43  ;;  %v2332_v21 = vshrl.u32 %v4925_v22, 16  ;;  %v2321_v54 = vrot.slane %v2319_v39, 4  ;;  %v4922_v43 = vld [vmem:[#allocation2 + $0x54] sm:$0xff]  }
 0x1b3   : > { %4504 = vmatprep.mubr.msk.bf16.mxu1 %vm1219_vm4, %v4920_v60  ;;  %v3463_v11 = vsel %vm6207_vm7, %v3461_v62, %v3462_v30  ;;  %v2324_v28 = vrot.slane %v2322_v33, 5  ;;  %v6745_v23 = vrot.slane %v2328_v53, 5  ;;  %v6747_v50 = vrot.slane %v2359_v14, 4  ;;  %v2216_v14 = vld [vmem:[#allocation2 + $0x54] sm:$0xf] }
 0x1b4   : > { %v6749_v5 = vrot.slane %v2362_v41, 5  ;;  %4581 = vmatmul.mubr.msk.bf16.gmra.mrb[12].mxu0 %vm1219_vm4, %v4273_v7  ;;  %v2334_v26 = vrot.slane %v2332_v21, 4  ;;  %v2338_v12 = vshll.u32 %v4926_v24, 16  ;;  %v3453_v44 = vsel %vm6207_vm7, %v4283_v58, %v3452_v13  ;;  %v4921_v41 = vld [vmem:[#allocation2 + $0x48] sm:$0xff]   ;;  %v4927_v9 = vld [vmem:[#allocation2 + $0x58] sm:$0xf] }
 0x1b5   : > { %4586 = vmatprep.mubr.msk.bf16.mxu0 %vm1219_vm4, %v4290_v48  ;;  %v3460_v15 = vsel %vm6207_vm7, %v4284_v20, %v3459_v8  ;;  %v4291_v10 = vcombine.low %v3453_v44, %v3456_v51  ;;  %v4285_v63 = vrot.slane %v3414_v36, 9  ;;  %v2325_v2 = vor.u32 %v2324_v28, %v2321_v54  ;;  %v4928_v21 = vld [vmem:[#allocation2 + $0x5c] sm:$0x1]  ;;  %v2219_v54 = vld [vmem:[#allocation2 + $0x60] sm:$0xf] }
 0x1b6   : > { %v4292_v1 = vcombine.low %v3460_v15, %v3463_v11  ;;  %v2335_v52 = vor.u32 %v2334_v26, %v6745_v23  ;;  %v3466_v47 = vrot.slane %v6639_v4, 5  ;;  %v2343_v35 = vshrl.u32 %v2213_v42, 16  ;;  %v4923_v26 = vld [vmem:[#allocation2 + $0x60] sm:$0xff]  }
 0x1b7   : > { %v2346_v31 = vshll.u32 %v2213_v42, 16  ;;  %v2340_v59 = vrot.slane %v2338_v12, 5  ;;  %v3469_v57 = vrot.slane %v6641_v0, 5  ;;  %v3473_v13 = vrot.slane %v6653_v49, 5 }
 0x1b8   : > { %v2365_v32 = vsel %vm6184_vm6, %v6747_v50, %v6749_v5  ;;  %v3468_v61 = vrot.slane %v3466_v47, 4  ;;  %v3476_v8 = vrot.slane %v6655_v27, 5  ;;  %v2345_v4 = vrot.slane %v2343_v35, 4 }
 0x1b9   : > { %v2348_v46 = vrot.slane %v2346_v31, 5  ;;  %v2336_v56 = vrot.slane %v2335_v52, 4  ;;  %v3475_v30 = vrot.slane %v3473_v13, 4  ;;  %v2367_v39 = vshrl.u32 %v2216_v14, 16 }
 0x1ba   : > { %4505 = vmatmul.mubr.msk.bf16.gmra.mrb[8].mxu1 %vm1219_vm4, %v4921_v41  ;;  %v2370_v0 = vshll.u32 %v2216_v14, 16  ;;  %v4286_v49 = vrot.slane %v3415_v40, 9  ;;  %v2376_v6 = vshll.u32 %v4927_v9, 16  ;;  %v2380_v29 = vshrl.u32 %v4927_v9, 16  ;;  %v4929_v40 = vld [vmem:[#allocation2 + $0x64] sm:$0xf] }
 0x1bb   : > { %4508 = vmatprep.mubr.msk.bf16.mxu1 %vm1219_vm4, %v4922_v43  ;;  %v2349_v18 = vor.u32 %v2348_v46, %v2345_v4  ;;  %v2326_v33 = vrot.slane %v2325_v2, 4  ;;  %v3467_v27 = vsel %vm6207_vm7, %v4285_v63, %v3466_v47  ;;  %v2369_v60 = vrot.slane %v2367_v39, 4 }
 0x1bc   : > { %4587 = vmatmul.mubr.msk.bf16.vlgmr.msra.gmra.mrb[0].mxu0 %vm1219_vm4, %v4291_v10  ;;  %v2372_v58 = vrot.slane %v2370_v0, 5  ;;  %v3470_v20 = vsel %vm6207_vm7, %v3468_v61, %v3469_v57  ;;  %v2378_v22 = vrot.slane %v2376_v6, 5  ;;  %v2382_v53 = vrot.slane %v2380_v29, 4  ;;  %v4930_v61 = vld [vmem:[#allocation2 + $0x68] sm:$0x1] }
 0x1bd   : > { %4590 = vmatprep.mubr.msk.bf16.mxu0 %vm1219_vm4, %v4292_v1  ;;  %v2350_v62 = vrot.slane %v2349_v18, 4  ;;  %v2341_v7 = vsel %vm6184_vm6, %v2336_v56, %v2340_v59  ;;  %v3477_v48 = vsel %vm6207_vm7, %v3475_v30, %v3476_v8  ;;  %v2386_v11 = vshll.u32 %v4928_v21, 16  ;;  %v3417_v1 = vld [vmem:[#allocation2 + $0x60] sm:$0xe] }
 0x1be   : > { %v2373_v51 = vor.u32 %v2372_v58, %v2369_v60  ;;  %v3474_v28 = vsel %vm6207_vm7, %v4286_v49, %v3473_v13  ;;  %v2383_v50 = vor.u32 %v2382_v53, %v2378_v22  ;;  %v3480_v5 = vrot.slane %v6668_v19, 5  ;;  %v3416_v19 = vld [vmem:[#allocation2 + $0x54] sm:$0xe]  ;;  %v3418_v49 = vld [vmem:[#allocation2 + $0x6c] sm:$0xe] }
 0x1bf   : > { %v2355_v36 = vsel %vm6184_vm6, %v2350_v62, %v6699_v3  ;;  %v2331_v24 = vsel %vm6184_vm6, %v2326_v33, %v6745_v23  ;;  %v4293_v12 = vcombine.low %v3467_v27, %v3470_v20  ;;  %v3487_v44 = vrot.slane %v6682_v17, 5 }
 0x1c0   : > { %v4215_v42 = vcombine.low %v2355_v36, %v2365_v32  ;;  %v4214_v15 = vcombine.low %v2331_v24, %v2341_v7  ;;  %v4294_v10 = vcombine.low %v3474_v28, %v3477_v48  ;;  %v2391_v52 = vshrl.u32 %v2219_v54, 16 }
 0x1c1   : > { %v2394_v63 = vshll.u32 %v2219_v54, 16  ;;  %v2374_v3 = vrot.slane %v2373_v51, 4  ;;  %v2384_v2 = vrot.slane %v2383_v50, 4  ;;  %v2388_v47 = vrot.slane %v2386_v11, 5 }
 0x1c2   : > { %4509 = vmatmul.mubr.msk.bf16.gmra.mrb[12].mxu1 %vm1219_vm4, %v4923_v26  ;;  %v3483_v35 = vrot.slane %v6673_v34, 5  ;;  %v3482_v23 = vrot.slane %v3480_v5, 4  ;;  %v2393_v31 = vrot.slane %v2391_v52, 4  ;;  %v2400_v17 = vshll.u32 %v6447_v55, 16 }
 0x1c3   : > { %4522 = vmatprep.mubr.msk.bf16.mxu1 %vm1219_vm4, %v4214_v15  ;;  %v2396_v14 = vrot.slane %v2394_v63, 5  ;;  %v4288_v41 = vrot.slane %v3417_v1, 9  ;;  %v3489_v59 = vrot.slane %v3487_v44, 4  ;;  %v3490_v57 = vrot.slane %v6687_v25, 5 }
 0x1c4   : > { %4591 = vmatmul.mubr.msk.bf16.gmra.mrb[4].mxu0 %vm1219_vm4, %v4293_v12  ;;  %v2404_v13 = vshrl.u32 %v4929_v40, 16  ;;  %v4287_v32 = vrot.slane %v3416_v19, 9  ;;  %v2402_v34 = vrot.slane %v2400_v17, 5  ;;  %v2410_v8 = vshll.u32 %v4930_v61, 16 }
 0x1c5   : > { %4594 = vmatprep.mubr.msk.bf16.mxu0 %vm1219_vm4, %v4294_v10  ;;  %v2397_v43 = vor.u32 %v2396_v14, %v2393_v31  ;;  %v2379_v4 = vsel %vm6184_vm6, %v2374_v3, %v2378_v22  ;;  %v2389_v55 = vsel %vm6184_vm6, %v2384_v2, %v2388_v47  ;;  %v3484_v56 = vsel %vm6207_vm7, %v3482_v23, %v3483_v35 }
 0x1c6   : > { %v2406_v46 = vrot.slane %v2404_v13, 4  ;;  %v3494_v25 = vrot.slane %v6694_v45, 5  ;;  %v3488_v30 = vsel %vm6207_vm7, %v4288_v41, %v3487_v44  ;;  %v3491_v39 = vsel %vm6207_vm7, %v3489_v59, %v3490_v57 }
 0x1c7   : > { %v4216_v18 = vcombine.low %v2379_v4, %v2389_v55  ;;  %v3481_v9 = vsel %vm6207_vm7, %v4287_v32, %v3480_v5  ;;  %v2398_v6 = vrot.slane %v2397_v43, 4  ;;  %v2412_v29 = vrot.slane %v2410_v8, 5  ;;  %v6823_v5 = vld [vmem:[#allocation9] ss:$0 sm:$0xff] }
 0x1c8   : > { %v2407_v0 = vor.u32 %v2406_v46, %v2402_v34  ;;  %v4295_v33 = vcombine.low %v3481_v9, %v3484_v56  ;;  %v4296_v45 = vcombine.low %v3488_v30, %v3491_v39  ;;  %v4289_v60 = vrot.slane %v3418_v49, 9 }
 0x1c9   : > { %v3496_v58 = vrot.slane %v3494_v25, 4  ;;  %v3497_v20 = vrot.slane %v6705_v38, 5  ;;  %v2403_v62 = vsel %vm6184_vm6, %v2398_v6, %v2402_v34 }
 0x1ca   : > { %4523 = vmatmul.mubr.msk.bf16.vlgmr.msra.gmra.mrb[8].mxu1 %vm1219_vm4, %v4215_v42  ;;  %v2408_v27 = vrot.slane %v2407_v0, 4  ;;  %v3495_v53 = vsel %vm6207_vm7, %v4289_v60, %v3494_v25 }
 0x1cb   : > { %4526 = vmatprep.mubr.msk.bf16.mxu1 %vm1219_vm4, %v4216_v18  ;;  %v3498_v7 = vsel %vm6207_vm7, %v3496_v58, %v3497_v20 }
 0x1cc   : > { %4595 = vmatmul.mubr.msk.bf16.gmra.mrb[8].mxu0 %vm1219_vm4, %v4295_v33  ;;  %v2413_v22 = vsel %vm6184_vm6, %v2408_v27, %v2412_v29  ;;  %v4297_v38 = vcombine.low %v3495_v53, %v3498_v7 }
 0x1cd   : > { %4598 = vmatprep.mubr.msk.bf16.mxu0 %vm1219_vm4, %v4296_v45  ;;  %v4217_v48 = vcombine.low %v2403_v62, %v2413_v22 }
 0x1d2   : > { %4527 = vmatmul.mubr.msk.bf16.gmra.mrb[12].mxu1 %vm1219_vm4, %v4217_v48 }
 0x1d4   : > { %4599 = vmatmul.mubr.msk.bf16.gmra.mrb[12].mxu0 %vm1219_vm4, %v4297_v38 }
 0x27d   : > { %v4498_v51 = vpop.f32.mrb[0].mxu1 }
 0x27e   : > { %v2119_v21 = vpop.f32.mrb[1].mxu1  ;;  %v4604_v37 = vadd.f32 %v4498_v51, %v6823_v5 }
 0x27f   : > { %v4499_v11 = vpop.f32.mrb[2].mxu1  ;;  %v4606_v26 = vadd.f32 %v6823_v5, %v2119_v21 }
 0x280   : > { %v2122_v54 = vpop.f32.mrb[3].mxu1  ;;  %v4608_v12 = vadd.f32 %v4499_v11, %v6823_v5 }
 0x281   : > { %v4610_v15 = vadd.f32 %v6823_v5, %v2122_v54 }
 0x285   : > { %v4502_v28 = vpop.f32.mrb[4].mxu1 }
 0x286   : > { %v2135_v16 = vpop.f32.mrb[5].mxu1  ;;  %v4612_v14 = vadd.f32 %v4502_v28, %v6823_v5 }
 0x287   : > { %v4503_v36 = vpop.f32.mrb[6].mxu1  ;;  %v4614_v41 = vadd.f32 %v6823_v5, %v2135_v16 }
 0x288   : > { %v2138_v50 = vpop.f32.mrb[7].mxu1  ;;  %v4616_v40 = vadd.f32 %v4503_v36, %v6823_v5 }
 0x289   : > { %v4618_v34 = vadd.f32 %v6823_v5, %v2138_v50 }
 0x28f   : > { %v4588_v24 = vpop.f32.mrb[0].mxu0 }
 0x290   : > { %v6832_v42 = vadd.f32 %v4604_v37, %v4588_v24  ;;  %v3585_v44 = vpop.f32.mrb[1].mxu0 }
 0x291   : > { %v6835_v10 = vadd.f32 %v4606_v26, %v3585_v44  ;;  %v4589_v1 = vpop.f32.mrb[2].mxu0 }
 0x292   : > { %v4344_v52 = vpack.c.bf16 %v6832_v42, %v6832_v42  ;;  %v6839_v63 = vadd.f32 %v4608_v12, %v4589_v1  ;;  %v3588_v3 = vpop.f32.mrb[3].mxu0  ;;  %v3748_v59 = vsel %vm3744_vm9, %v6832_v42, 0.0 }
 0x293   : > { %v4342_v2 = vpack.c.bf16 %v6835_v10, %v6835_v10  ;;  %v6843_v47 = vadd.f32 %v4610_v15, %v3588_v3  ;;  %v3745_v35 = vsel %vm3744_vm9, %v6835_v10, 0.0 }
 0x294   : > { %v4345_v19 = vpack.c.bf16 %v6839_v63, %v6839_v63  ;;  %3730 = vst.msk [vmem:[%s6847_s4 + $0x8] sm:$0xf] %vm645_vm5, %v4344_v52  ;;  %v3750_v61 = vsel %vm3744_vm9, %v6839_v63, 0.0 }
 0x295   : > { %v4343_v23 = vpack.c.bf16 %v6843_v47, %v6843_v47  ;;  %v3746_v31 = vsel %vm3744_vm9, %v6843_v47, 0.0  ;;  %3728 = vst.msk [vmem:[%s6847_s4] sm:$0xf] %vm645_vm5, %v4342_v2 }
 0x296   : > { %v3747_v17 = vadd.f32 %v3746_v31, %v3745_v35  ;;  %3731 = vst.msk [vmem:[%s6847_s4 + $0xc] sm:$0xf] %vm645_vm5, %v4345_v19 }
 0x297   : > { %v4592_v57 = vpop.f32.mrb[4].mxu0  ;;  %3729 = vst.msk [vmem:[%s6847_s4 + $0x4] sm:$0xf] %vm645_vm5, %v4343_v23 }
 0x298   : > { %v3749_v13 = vadd.f32 %v3748_v59, %v3747_v17  ;;  %v6868_v32 = vadd.f32 %v4612_v14, %v4592_v57  ;;  %v3601_v43 = vpop.f32.mrb[5].mxu0 }
 0x299   : > { %v6873_v8 = vadd.f32 %v4614_v41, %v3601_v43  ;;  %v4593_v4 = vpop.f32.mrb[6].mxu0 }
 0x29a   : > { %v4348_v55 = vpack.c.bf16 %v6868_v32, %v6868_v32  ;;  %v3751_v46 = vadd.f32 %v3750_v61, %v3749_v13  ;;  %v6877_v56 = vadd.f32 %v4616_v40, %v4593_v4  ;;  %v3604_v25 = vpop.f32.mrb[7].mxu0  ;;  %v3756_v60 = vsel %vm3744_vm9, %v6868_v32, 0.0 }
 0x29b   : > { %v4346_v30 = vpack.c.bf16 %v6873_v8, %v6873_v8  ;;  %v3752_v39 = vsel %vm3744_vm9, %v6873_v8, 0.0  ;;  %v6883_v0 = vadd.f32 %v4618_v34, %v3604_v25 }
 0x29c   : > { %v3753_v49 = vadd.f32 %v3752_v39, %v3751_v46  ;;  %v4349_v18 = vpack.c.bf16 %v6877_v56, %v6877_v56  ;;  %3734 = vst.msk [vmem:[%s6847_s4 + $0x18] sm:$0xf] %vm645_vm5, %v4348_v55  ;;  %v3758_v51 = vsel %vm3744_vm9, %v6877_v56, 0.0 }
 0x29d   : > { %v4347_v9 = vpack.c.bf16 %v6883_v0, %v6883_v0  ;;  %v3754_v6 = vsel %vm3744_vm9, %v6883_v0, 0.0  ;;  %v4524_v29 = vpop.f32.mrb[8].mxu1  ;;  %3732 = vst.msk [vmem:[%s6847_s4 + $0x10] sm:$0xf] %vm645_vm5, %v4346_v30 }
 0x29e   : > { %v3755_v33 = vadd.f32 %v3754_v6, %v3753_v49  ;;  %v4620_v27 = vadd.f32 %v4524_v29, %v6823_v5  ;;  %v2532_v45 = vpop.f32.mrb[9].mxu1  ;;  %3735 = vst.msk [vmem:[%s6847_s4 + $0x1c] sm:$0xf] %vm645_vm5, %v4349_v18 }
 0x29f   : > { %v4622_v58 = vadd.f32 %v6823_v5, %v2532_v45  ;;  %v4525_v20 = vpop.f32.mrb[10].mxu1  ;;  %v4596_v62 = vpop.f32.mrb[8].mxu0  ;;  %3733 = vst.msk [vmem:[%s6847_s4 + $0x14] sm:$0xf] %vm645_vm5, %v4347_v9 }
 0x2a0   : > { %v3757_v22 = vadd.f32 %v3756_v60, %v3755_v33  ;;  %v4624_v53 = vadd.f32 %v4525_v20, %v6823_v5  ;;  %v6904_v7 = vadd.f32 %v4620_v27, %v4596_v62  ;;  %v2535_v48 = vpop.f32.mrb[11].mxu1  ;;  %v3617_v38 = vpop.f32.mrb[9].mxu0 }
 0x2a1   : > { %v4626_v21 = vadd.f32 %v6823_v5, %v2535_v48  ;;  %v6909_v11 = vadd.f32 %v4622_v58, %v3617_v38  ;;  %v4597_v54 = vpop.f32.mrb[10].mxu0 }
 0x2a2   : > { %v4352_v28 = vpack.c.bf16 %v6904_v7, %v6904_v7  ;;  %v3759_v16 = vadd.f32 %v3758_v51, %v3757_v22  ;;  %v6913_v36 = vadd.f32 %v4624_v53, %v4597_v54  ;;  %v3620_v50 = vpop.f32.mrb[11].mxu0  ;;  %v3764_v35 = vsel %vm3744_vm9, %v6904_v7, 0.0 }
 0x2a3   : > { %v4350_v37 = vpack.c.bf16 %v6909_v11, %v6909_v11  ;;  %v3760_v26 = vsel %vm3744_vm9, %v6909_v11, 0.0  ;;  %v6919_v24 = vadd.f32 %v4626_v21, %v3620_v50 }
 0x2a4   : > { %v3761_v12 = vadd.f32 %v3760_v26, %v3759_v16  ;;  %v4353_v44 = vpack.c.bf16 %v6913_v36, %v6913_v36  ;;  %3738 = vst.msk [vmem:[%s6847_s4 + $0x28] sm:$0xf] %vm645_vm5, %v4352_v28  ;;  %v3766_v13 = vsel %vm3744_vm9, %v6913_v36, 0.0 }
 0x2a5   : > { %v4351_v15 = vpack.c.bf16 %v6919_v24, %v6919_v24  ;;  %v3762_v1 = vsel %vm3744_vm9, %v6919_v24, 0.0  ;;  %v4528_v52 = vpop.f32.mrb[12].mxu1  ;;  %3736 = vst.msk [vmem:[%s6847_s4 + $0x20] sm:$0xf] %vm645_vm5, %v4350_v37 }
 0x2a6   : > { %v3763_v3 = vadd.f32 %v3762_v1, %v3761_v12  ;;  %v4628_v2 = vadd.f32 %v4528_v52, %v6823_v5  ;;  %v2548_v19 = vpop.f32.mrb[13].mxu1  ;;  %3739 = vst.msk [vmem:[%s6847_s4 + $0x2c] sm:$0xf] %vm645_vm5, %v4353_v44 }
 0x2a7   : > { %v4630_v23 = vadd.f32 %v6823_v5, %v2548_v19  ;;  %v4529_v31 = vpop.f32.mrb[14].mxu1  ;;  %v4600_v14 = vpop.f32.mrb[12].mxu0  ;;  %3737 = vst.msk [vmem:[%s6847_s4 + $0x24] sm:$0xf] %vm645_vm5, %v4351_v15 }
 0x2a8   : > { %v3765_v17 = vadd.f32 %v3764_v35, %v3763_v3  ;;  %v4632_v41 = vadd.f32 %v4529_v31, %v6823_v5  ;;  %v6942_v59 = vadd.f32 %v4628_v2, %v4600_v14  ;;  %v2551_v57 = vpop.f32.mrb[15].mxu1  ;;  %v3633_v40 = vpop.f32.mrb[13].mxu0 }
 0x2a9   : > { %v4634_v43 = vadd.f32 %v6823_v5, %v2551_v57  ;;  %v6947_v34 = vadd.f32 %v4630_v23, %v3633_v40  ;;  %v4601_v61 = vpop.f32.mrb[14].mxu0 }
 0x2aa   : > { %v4356_v4 = vpack.c.bf16 %v6942_v59, %v6942_v59  ;;  %v3767_v55 = vadd.f32 %v3766_v13, %v3765_v17  ;;  %v6952_v46 = vadd.f32 %v4632_v41, %v4601_v61  ;;  %v3636_v25 = vpop.f32.mrb[15].mxu0  ;;  %v3772_v33 = vsel %vm3744_vm9, %v6942_v59, 0.0 }
 0x2ab   : > { %v4354_v30 = vpack.c.bf16 %v6947_v34, %v6947_v34  ;;  %v3768_v5 = vsel %vm3744_vm9, %v6947_v34, 0.0  ;;  %v6958_v39 = vadd.f32 %v4634_v43, %v3636_v25 }
 0x2ac   : > { %v3769_v49 = vadd.f32 %v3768_v5, %v3767_v55  ;;  %v4357_v18 = vpack.c.bf16 %v6952_v46, %v6952_v46  ;;  %3742 = vst.msk [vmem:[%s6847_s4 + $0x38] sm:$0xf] %vm645_vm5, %v4356_v4 }
 0x2ad   : > { %v4355_v9 = vpack.c.bf16 %v6958_v39, %v6958_v39  ;;  %v3770_v6 = vsel %vm3744_vm9, %v6958_v39, 0.0  ;;  %3740 = vst.msk [vmem:[%s6847_s4 + $0x30] sm:$0xf] %vm645_vm5, %v4354_v30 }
 0x2ae   : > { %v3771_v29 = vadd.f32 %v3770_v6, %v3769_v49  ;;  %3743 = vst.msk [vmem:[%s6847_s4 + $0x3c] sm:$0xf] %vm645_vm5, %v4357_v18 }
 0x2af   : > { %3741 = vst.msk [vmem:[%s6847_s4 + $0x34] sm:$0xf] %vm645_vm5, %v4355_v9 }
 0x2b0   : > { %v3773_v27 = vadd.f32 %v3772_v33, %v3771_v29 }
 0x2b1   : > { %5060 = shalt.err (!%p5057_p0)
}
 0x2b2   : > { %s5061_s18 = scalar_lea.hbm %s6975_s10, 1024  ;;  %s5065_s9 = scalar_lea.hbm %s7226_s11, 4096 }
 0x2b3   : > { %p5062_p5 = scmp.ne.s32.totalorder %s6975_s10, %s5061_s18  ;;  %p5066_p2 = scmp.lt.u32.totalorder %s6975_s10, %s7226_s11 }
 0x2b4   : > { %p5067_p10 = scmp.lt.u32.totalorder %s5065_s9, %s5061_s18  ;;  %p5069_p7 = scmp.lt.u32.totalorder %s5061_s18, %s6975_s10 }
 0x2b5   : > { %p5063_p8 = pnand %p5062_p5, %p7227_p13 }
 0x2b6   : > { %p5068_p1 = por %p5067_p10, %p5066_p2 }
 0x2b7   : > { %p5064_p12 = pneg %p5063_p8 }
 0x2b8   : > { %p5070_p6 = por %p5069_p7, %p5068_p1 }
 0x2ba   : > { %p5071_p3 = pnand %p5070_p6, %p5064_p12 }
 0x2bc   : > { %5074 = shalt.err (!%p5071_p3)
}
 0x2bd   : > { %s5251_s15 = smov 64   ;;  %v3774_v45 = vsel %vm3744_vm9, %v6952_v46, 0.0  ;;  %s4327_s16 = sshll.u32 %s5229_s28, 1 }
 0x2be   : > { %4770 = dma.vmem_to_hbm [thread:$0]  (%p7227_p13), %s6964_s5, 1024, %s6975_s10, %s3856_s0, %s5251_s15, %s5251_s15, %s5249_s30   ;;  %v3775_v60 = vadd.f32 %v3774_v45, %v3773_v27 }
 0x2bf   : > { %s7012_s29 = sadd.s32 %s5225_s27, %s4327_s16  ;;  %s364_s6 = scalar_lea.vmem [#allocation12], %s6826_s13 }
 0x2c0   : > { %v3776_v58 = vrot.slane %v3775_v60, 4  ;;  %s4328_s14 = sshll.u32 %s7012_s29, 4  ;;  %s3898_s20 = sshll.u32 %s364_s6, 4  ;;  %s7023_s20 = int_to_ptr.vmem [resolvable:$true] %s3898_s20 }
 0x2c1   : > { %s7228_s10 = sld [smem:[#allocation32_spill]]  ;;  %s7028_s27 = scalar_lea.sflag [#allocation13], %s317_s24 }
 0x2c2   : > { %v3777_v20 = vadd.f32 %v3776_v58, %v3775_v60  ;;  %s5075_s28 = scalar_lea.vmem %s7023_s20, 16  ;;  %s5252_s2 = smov [#allocation12]  }
 0x2c3   : > { %p5076_p4 = scmp.ne.s32.totalorder %s7023_s20, %s5075_s28  ;;  %s5079_s18 = sshll.u32 %s5252_s2, 4  ;;  %s5080_s18 = int_to_ptr.vmem [resolvable:$false] %s5079_s18 }
 0x2c4   : > { %v3778_v62 = vrot.slane %v3777_v20, 2  ;;  %s5081_s4 = scalar_lea.vmem %s5080_s18, 32  ;;  %p5082_p0 = scmp.lt.s32.totalorder %s7023_s20, %s5080_s18 }
 0x2c5   : > { %p5077_p9 = pnand %p5076_p4, %p7227_p13  ;;  %p5083_p5 = scmp.lt.s32.totalorder %s5081_s4, %s5075_s28 }
 0x2c6   : > { %v3779_v22 = vadd.f32 %v3778_v62, %v3777_v20 }
 0x2c7   : > { %s7021_s0 = scalar_lea.hbm %s7228_s10, %s4328_s14  ;;  %p5078_p11 = pneg %p5077_p9 }
 0x2c8   : > { %v3780_v53 = vrot.slane %v3779_v22, 1  ;;  %p5084_p8 = por %p5083_p5, %p5082_p0 }
 0x2ca   : > { %v3781_v48 = vadd.f32 %v3780_v53, %v3779_v22  ;;  %p5085_p12 = pnand %p5084_p8, %p5078_p11 }
 0x2cc   : > { %v3782_v38 = vmul.f32 0.0078125, %v3781_v48  ;;  %3800 = vst.msk [vmem:[%s364_s6] sm:$0x1] %vm652_vm8, %v3781_v48 }
 0x2cd   : > { %5088 = shalt.err (!%p5085_p12)
}
 0x2ce   : > { %s5089_s8 = scalar_lea.hbm %s7021_s0, 16  ;;  %s5093_s9 = scalar_lea.hbm %s7228_s10, 64 }
 0x2cf   : > { %p5090_p2 = scmp.ne.s32.totalorder %s7021_s0, %s5089_s8  ;;  %p5094_p7 = scmp.lt.u32.totalorder %s7021_s0, %s7228_s10 }
 0x2d0   : > { %p5095_p6 = scmp.lt.u32.totalorder %s5093_s9, %s5089_s8  ;;  %p5097_p4 = scmp.lt.u32.totalorder %s5089_s8, %s7021_s0 }
 0x2d1   : > { %p5091_p10 = pnand %p5090_p2, %p7227_p13 }
 0x2d2   : > { %p5096_p3 = por %p5095_p6, %p5094_p7 }
 0x2d3   : > { %p5092_p1 = pneg %p5091_p10 }
 0x2d4   : > { %p5098_p9 = por %p5097_p4, %p5096_p3 }
 0x2d6   : > { %p5099_p11 = pnand %p5098_p9, %p5092_p1 }
 0x2d8   : > { %5102 = shalt.err (!%p5099_p11)
}
 0x2d9   : > { %4771 = dma.vmem_to_hbm [thread:$0]  (%p7227_p13), %s7023_s20, 16, %s7021_s0, %s7028_s27   ;;  %v3783_v51 = vsub.f32 %v6835_v10, %v3782_v38  ;;  %v3784_v21 = vsub.f32 %v6843_v47, %v3782_v38  ;;  %v3785_v54 = vsub.f32 %v6832_v42, %v3782_v38  ;;  %v3786_v28 = vsub.f32 %v6839_v63, %v3782_v38 }
 0x2da   : > { %v3787_v16 = vsub.f32 %v6873_v8, %v3782_v38  ;;  %v3788_v50 = vsub.f32 %v6883_v0, %v3782_v38  ;;  %v3789_v37 = vsub.f32 %v6868_v32, %v3782_v38  ;;  %v3790_v26 = vsub.f32 %v6877_v56, %v3782_v38  ;;  %s370_s15 = scalar_lea.vmem [#allocation14], %s6826_s13  ;;  %s7229_s30 = sld [smem:[#allocation33_spill]] }
 0x2db   : > { %v3791_v12 = vsub.f32 %v6909_v11, %v3782_v38  ;;  %v3792_v44 = vsub.f32 %v6919_v24, %v3782_v38  ;;  %v3793_v10 = vsub.f32 %v6904_v7, %v3782_v38  ;;  %v3794_v47 = vsub.f32 %v6913_v36, %v3782_v38  ;;  %s3913_s16 = sshll.u32 %s370_s15, 4  ;;  %s5253_s2 = smov [#allocation14]   ;;  %s3914_s16 = int_to_ptr.vmem [resolvable:$true] %s3913_s16 }
 0x2dc   : > { %v3795_v42 = vsub.f32 %v6947_v34, %v3782_v38  ;;  %v3796_v63 = vsub.f32 %v6958_v39, %v3782_v38  ;;  %v3797_v8 = vsub.f32 %v6942_v59, %v3782_v38  ;;  %v3798_v0 = vsub.f32 %v6952_v46, %v3782_v38  ;;  %s5103_s28 = scalar_lea.vmem %s3914_s16, 16  ;;  %s5107_s18 = sshll.u32 %s5253_s2, 4  ;;  %s5108_s18 = int_to_ptr.vmem [resolvable:$false] %s5107_s18 }
 0x2dd   : > { %v3801_v15 = vmul.f32 %v3783_v51, %v3783_v51  ;;  %v3802_v32 = vmul.f32 %v3784_v21, %v3784_v21  ;;  %v3803_v1 = vmul.f32 %v3785_v54, %v3785_v54  ;;  %v3808_v56 = vmul.f32 %v3790_v26, %v3790_v26  ;;  %p5104_p0 = scmp.ne.s32.totalorder %s3914_s16, %s5103_s28  ;;  %s5109_s13 = scalar_lea.vmem %s5108_s18, 32 }
 0x2de   : > { %v3809_v52 = vmul.f32 %v3791_v12, %v3791_v12  ;;  %v3810_v11 = vmul.f32 %v3792_v44, %v3792_v44  ;;  %v3811_v3 = vmul.f32 %v3793_v10, %v3793_v10  ;;  %v3804_v24 = vmul.f32 %v3786_v28, %v3786_v28  ;;  %p5110_p12 = scmp.lt.s32.totalorder %s3914_s16, %s5108_s18  ;;  %p5111_p2 = scmp.lt.s32.totalorder %s5109_s13, %s5103_s28 }
 0x2df   : > { %v3812_v2 = vmul.f32 %v3794_v47, %v3794_v47  ;;  %v3813_v7 = vmul.f32 %v3795_v42, %v3795_v42  ;;  %v3814_v19 = vmul.f32 %v3796_v63, %v3796_v63  ;;  %v3815_v36 = vmul.f32 %v3797_v8, %v3797_v8  ;;  %p5105_p5 = pnand %p5104_p0, %p7227_p13 }
 0x2e0   : > { %v3816_v35 = vmul.f32 %v3798_v0, %v3798_v0  ;;  %v3817_v23 = vsel %vm3744_vm9, %v3801_v15, 0.0  ;;  %v3818_v31 = vsel %vm3744_vm9, %v3802_v32, 0.0  ;;  %v3805_v14 = vmul.f32 %v3787_v16, %v3787_v16  ;;  %s7230_s5 = smov %s7229_s30  ;;  %s7090_s0 = scalar_lea.hbm %s7229_s30, %s4328_s14 }
 0x2e1   : > { %v3819_v17 = vadd.f32 %v3818_v31, %v3817_v23  ;;  %v3820_v41 = vsel %vm3744_vm9, %v3803_v1, 0.0  ;;  %v3830_v59 = vsel %vm3744_vm9, %v3808_v56, 0.0  ;;  %v3832_v57 = vsel %vm3744_vm9, %v3809_v52, 0.0  ;;  %p5106_p8 = pneg %p5105_p5  ;;  %p5112_p10 = por %p5111_p2, %p5110_p12 }
 0x2e2   : > { %v3834_v40 = vsel %vm3744_vm9, %v3810_v11, 0.0  ;;  %v3836_v13 = vsel %vm3744_vm9, %v3811_v3, 0.0  ;;  %v3838_v34 = vsel %vm3744_vm9, %v3812_v2, 0.0  ;;  %v3840_v61 = vsel %vm3744_vm9, %v3813_v7, 0.0 }
 0x2e3   : > { %v3821_v43 = vadd.f32 %v3820_v41, %v3819_v17  ;;  %v3842_v4 = vsel %vm3744_vm9, %v3814_v19, 0.0  ;;  %v3806_v55 = vmul.f32 %v3788_v50, %v3788_v50  ;;  %v3822_v46 = vsel %vm3744_vm9, %v3804_v24, 0.0  ;;  %p5113_p1 = pnand %p5112_p10, %p5106_p8 }
 0x2e4   : > { %v3844_v25 = vsel %vm3744_vm9, %v3815_v36, 0.0  ;;  %v3846_v30 = vsel %vm3744_vm9, %v3816_v35, 0.0  ;;  %v3807_v39 = vmul.f32 %v3789_v37, %v3789_v37  ;;  %v3824_v49 = vsel %vm3744_vm9, %v3805_v14, 0.0 }
 0x2e5   : > { %v3823_v5 = vadd.f32 %v3822_v46, %v3821_v43  ;;  %v3826_v9 = vsel %vm3744_vm9, %v3806_v55, 0.0 }
 0x2e6   : > { %v3828_v29 = vsel %vm3744_vm9, %v3807_v39, 0.0 }
 0x2e7   : > { %v3825_v18 = vadd.f32 %v3824_v49, %v3823_v5 }
 0x2e9   : > { %v3827_v6 = vadd.f32 %v3826_v9, %v3825_v18 }
 0x2eb   : > { %v3829_v33 = vadd.f32 %v3828_v29, %v3827_v6 }
 0x2ed   : > { %v3831_v27 = vadd.f32 %v3830_v59, %v3829_v33 }
 0x2ef   : > { %v3833_v45 = vadd.f32 %v3832_v57, %v3831_v27 }
 0x2f1   : > { %v3835_v60 = vadd.f32 %v3834_v40, %v3833_v45 }
 0x2f3   : > { %v3837_v58 = vadd.f32 %v3836_v13, %v3835_v60 }
 0x2f5   : > { %v3839_v20 = vadd.f32 %v3838_v34, %v3837_v58 }
 0x2f7   : > { %v3841_v62 = vadd.f32 %v3840_v61, %v3839_v20 }
 0x2f9   : > { %v3843_v22 = vadd.f32 %v3842_v4, %v3841_v62 }
 0x2fb   : > { %v3845_v53 = vadd.f32 %v3844_v25, %v3843_v22 }
 0x2fd   : > { %v3847_v48 = vadd.f32 %v3846_v30, %v3845_v53 }
 0x2ff   : > { %v3848_v38 = vrot.slane %v3847_v48, 4 }
 0x301   : > { %v3849_v51 = vadd.f32 %v3848_v38, %v3847_v48 }
 0x303   : > { %v3850_v21 = vrot.slane %v3849_v51, 2 }
 0x305   : > { %v3851_v54 = vadd.f32 %v3850_v21, %v3849_v51 }
 0x307   : > { %v3852_v28 = vrot.slane %v3851_v54, 1 }
 0x309   : > { %v3853_v16 = vadd.f32 %v3852_v28, %v3851_v54 }
 0x30b   : > { %3854 = vst.msk [vmem:[%s370_s15] sm:$0x1] %vm652_vm8, %v3853_v16 }
 0x30c   : > { %5116 = shalt.err (!%p5113_p1)
}
 0x30d   : > { %s5117_s29 = scalar_lea.hbm %s7090_s0, 16  ;;  %s5121_s8 = scalar_lea.hbm %s7230_s5, 64 }
 0x30e   : > { %p5118_p7 = scmp.ne.s32.totalorder %s7090_s0, %s5117_s29  ;;  %p5122_p4 = scmp.lt.u32.totalorder %s7090_s0, %s7230_s5 }
 0x30f   : > { %p5123_p9 = scmp.lt.u32.totalorder %s5121_s8, %s5117_s29  ;;  %p5125_p0 = scmp.lt.u32.totalorder %s5117_s29, %s7090_s0 }
 0x310   : > { %p5119_p6 = pnand %p5118_p7, %p7227_p13 }
 0x311   : > { %p5124_p11 = por %p5123_p9, %p5122_p4 }
 0x312   : > { %p5120_p3 = pneg %p5119_p6 }
 0x313   : > { %p5126_p5 = por %p5125_p0, %p5124_p11 }
 0x315   : > { %p5127_p8 = pnand %p5126_p5, %p5120_p3 }
 0x317   : > { %5130 = shalt.err (!%p5127_p8)
}
 0x318   : > { %4772 = dma.vmem_to_hbm [thread:$0]  (%p7227_p13), %s3914_s16, 16, %s7090_s0, %s7028_s27  }
 0x319 PF: > { %s7231_s9 = sld [smem:[#allocation21_spill]]  ;;  %s7232_s21 = sld [smem:[#allocation24_spill]] }
 0x31a   : > { %p4805_p12 = scmp.ge.s32.totalorder %s5241_s7, 2 }
 0x31f   : > { %s3925_s19 = sand.u32 1, %s7231_s9   ;;  %p7233_p2 = scmp.ne.s32.totalorder %s7232_s21, 0 }
 0x320   : > { %s3926_s15 = scalar_lea.sflag [#allocation5], %s3925_s19 }
 0x321   : > { %p4791_p10 = pnand %p4805_p12, %p7233_p2 }
 0x323   : > { %5192 = dma.done.wait (!%p4791_p10), %s3926_s15, 1024  }
 0x324   : > { %5194 = vsyncadd (!%p4791_p10), %s3926_s15, 4294966272  ;;  %s7234_s6 = sadd.s32 4294967294, %s5241_s7  }
 0x325   : > { %s3934_s20 = sand.u32 1, %s7234_s6  }
 0x326   : > { %s3935_s30 = scalar_lea.sflag [#allocation13], %s3934_s20 }
 0x327   : > { %5196 = dma.done.wait (!%p4791_p10), %s3935_s30, 32  }
 0x328   : > { %5198 = vsyncadd (!%p4791_p10), %s3935_s30, 4294967264  ;;  %s30_s7 = sadd.s32 1, %s5241_s7   ;;  %s7235_s12 = sld [smem:[#allocation27_spill]] }
 0x329   : > { %p27_p13 = scmp.ge.s32.totalorder %s30_s7, 6   ;;  %s7236_s27 = sld [smem:[#allocation22_spill]] }
 0x32a   : > { %s7237_s28 = sld [smem:[#allocation23_spill]]  ;;  %s7238_s29 = sld [smem:[#allocation25_spill]] }
 0x32b   : > { %s7239_s30 = sld [smem:[#allocation26_spill]]  ;;  %s7240_s21 = smov %s5205_s22 }
 0x32c   : > { %s7241_s22 = smov %s5209_s23  ;;  %s7242_s23 = smov %s5472_s3 }
 0x32d   : > { %s7243_s24 = smov %s5217_s25  ;;  %s7244_s25 = smov %s5221_s26 }
 0x32e   : > { %s7245_s26 = smov %s7235_s12  ;;  %29 = sbr.rel (!%p27_p13) target bundleno = 21 (0x15), region = 143 }
 0x335   :  { %3947 = vsyncpa [#allocation4], 1 }
 0x336   :  { %3949 = vsyncpa [#allocation4 + $0x1], 1 }
 0x337   :  { %3950 = vsyncpa [#allocation7], 1 }
 0x338   :  { %3952 = vsyncpa [#allocation7 + $0x1], 1 }
 0x339   :  { %3953 = vsyncpa [#allocation10], 1 }
 0x33a   :  { %3954 = vsyncpa [#allocation5], 1 }
 0x33b   :  { %3956 = vsyncpa [#allocation5 + $0x1], 1 }
 0x33c   :  { %3957 = vsyncpa [#allocation13], 1 }
 0x33d   :  { %3959 = vsyncpa [#allocation13 + $0x1], 1 }

</bundles_post_ra>
